<compile_context>
chip_gen: v5e
topology: v5e:2x2
jax: 0.10.0
libtpu: 0.0.40
codegen_flags: <defaults>
</compile_context>

<pallas_src>
import jax
import jax.numpy as jnp
from jax.experimental import pallas as pl
from jax.experimental.pallas import tpu as pltpu


def _vmem_spec():
    # whole-array block resident in VMEM (shapes are tiny; no grid pipelining)
    return pl.BlockSpec(memory_space=pltpu.MemorySpace.VMEM)


# ---------- Kernel 1: both branches, conv3x3 + BN(eval) + LeakyReLU(0.1) + maxpool2x2 ----------
def _branches_kernel(pa_ref, wa_ref, sa_ref, ba_ref,
                     pb_ref, wb_ref, sb_ref, bb_ref, o_ref):
    # p*_ref: (4*Mq, 27)  im2col, rows grouped as corner*(N*Ho*Wo) + n*Ho*Wo + ho*Wo + wo
    # w*_ref: (27, C)     3x3xCin filter flattened to match the im2col column order
    # s*_ref/b*_ref: (1, C) folded BatchNorm scale / bias
    # o_ref : (Mq, 48)    cols [0:16] = cnn_in branch, [16:48] = cnn_out branch (== torch.hstack)
    def branch(p_ref, w_ref, s_ref, b_ref):
        mq = p_ref.shape[0] // 4
        # single K=27 MXU matmul covers all 4 pooling corners at once
        y = jnp.dot(p_ref[...], w_ref[...], preferred_element_type=jnp.float32)
        y = y * s_ref[...] + b_ref[...]              # folded BatchNorm (eval)
        y = jnp.where(y > 0, y, 0.1 * y)             # LeakyReLU(0.1)
        # MaxPool2d(2,2) == elementwise max over the 4 corner row-groups (VPU only,
        # static sublane slices aligned to multiples of 8 -> no relayout)
        return jnp.maximum(jnp.maximum(y[0:mq], y[mq:2 * mq]),
                           jnp.maximum(y[2 * mq:3 * mq], y[3 * mq:4 * mq]))

    ca = wa_ref.shape[1]
    o_ref[:, 0:ca] = branch(pa_ref, wa_ref, sa_ref, ba_ref)
    o_ref[:, ca:] = branch(pb_ref, wb_ref, sb_ref, bb_ref)


def _corner_im2col(x_nchw):
    """3x3 / stride-1 / pad-1 im2col with rows grouped by 2x2 maxpool corner.

    Returns (4*N*Ho*Wo, 9*Cin); row = corner*(N*Ho*Wo) + n*Ho*Wo + ho*Wo + wo,
    col = (ky*3 + kx)*Cin + c  (matches the HWIO weight reshape).
    Pure zero-FLOP XLA glue (pad + static slices + reshape/transpose) on ~13 KB.
    """
    N, Cin, H, W = x_nchw.shape
    Ho, Wo = H // 2, W // 2
    x = jnp.transpose(x_nchw, (0, 2, 3, 1))                        # NHWC
    xp = jnp.pad(x, ((0, 0), (1, 1), (1, 1), (0, 0)))              # (N, H+2, W+2, Cin)
    taps = jnp.concatenate(
        [xp[:, ky:ky + H, kx:kx + W, :] for ky in range(3) for kx in range(3)],
        axis=-1)                                                   # (N, H, W, 9*Cin)
    t = taps.reshape(N, Ho, 2, Wo, 2, 9 * Cin)
    t = jnp.transpose(t, (2, 4, 0, 1, 3, 5))                       # (dy, dx, N, Ho, Wo, 27)
    return t.reshape(4 * N * Ho * Wo, 9 * Cin)


def cnn_branches(a_nchw, b_nchw, pa, pb):
    N, _, H, W = a_nchw.shape
    Ho, Wo = H // 2, W // 2
    ca, cb = pa["w"].shape[-1], pb["w"].shape[-1]
    cin_a, cin_b = pa["w"].shape[2], pb["w"].shape[2]
    pat_a = _corner_im2col(a_nchw)
    pat_b = _corner_im2col(b_nchw)
    out = pl.pallas_call(
        _branches_kernel,
        out_shape=jax.ShapeDtypeStruct((N * Ho * Wo, ca + cb), jnp.float32),
        in_specs=[_vmem_spec()] * 8,
        out_specs=_vmem_spec(),
    )(pat_a, pa["w"].reshape(9 * cin_a, ca),
      pa["scale"].reshape(1, ca), pa["bias"].reshape(1, ca),
      pat_b, pb["w"].reshape(9 * cin_b, cb),
      pb["scale"].reshape(1, cb), pb["bias"].reshape(1, cb))
    # (N*Ho*Wo, 48): row = n*Ho*Wo + ho*Wo + wo, col = hstack channel index
    return out


# ---------- Kernel 2: fc1 (bf16 weights) + LeakyReLU(0.1) + fc2, fully fused ----------
def _fused_fc_kernel(x_ref, w1_ref, b1_ref, w2_ref, b2_ref, o_ref):
    # fc1: bf16 MXU matmul, f32 accumulation; epilogue stays f32 (v5e has no bf16 VPU).
    h = jnp.dot(x_ref[...].astype(jnp.bfloat16), w1_ref[...],
                preferred_element_type=jnp.float32)
    h = h + b1_ref[...]
    # Dropout(0.1): eval-mode identity
    h = jnp.where(h > 0, h, 0.1 * h)                 # LeakyReLU(0.1)
    y = jnp.dot(h, w2_ref[...], preferred_element_type=jnp.float32) + b2_ref[...]
    o_ref[...] = y.astype(o_ref.dtype)


def fused_fc(x, w1_bf16, b1, w2, b2):
    # NOTE: a 2-block "parallel" grid over fc1's 256 output columns could shard the
    # 1.5 MB weight DMA across v7x's two TensorCores, but fc2 would then need a
    # cross-block reduction (extra output + an XLA sum ~= one more dispatch),
    # which outweighs the sub-microsecond saving at this size; kept grid-less.
    B = x.shape[0]
    n_out = w2.shape[1]
    return pl.pallas_call(
        _fused_fc_kernel,
        out_shape=jax.ShapeDtypeStruct((B, n_out), jnp.float32),
        in_specs=[_vmem_spec()] * 5,
        out_specs=_vmem_spec(),
    )(x, w1_bf16, b1.reshape(1, -1), w2, b2.reshape(1, -1))


# ---------- parameter init (deterministic, synthetic) ----------
def _init_conv_block(key, cin, cout):
    k1, k2, k3, k4, k5 = jax.random.split(key, 5)
    w = 0.1 * jax.random.normal(k1, (3, 3, cin, cout), jnp.float32)       # HWIO
    gamma = 1.0 + 0.1 * jax.random.normal(k2, (cout,), jnp.float32)
    beta = 0.1 * jax.random.normal(k3, (cout,), jnp.float32)
    run_mean = 0.1 * jax.random.normal(k4, (cout,), jnp.float32)
    run_var = jnp.abs(jax.random.normal(k5, (cout,), jnp.float32)) + 0.5
    eps = 1e-5
    scale = gamma / jnp.sqrt(run_var + eps)
    bias = beta - run_mean * scale
    return {"w": w, "scale": scale, "bias": bias}


def _flatten_permutation(n_ch, hw):
    # Pallas activation order (kernel-1 output reshaped to (N, hw*n_ch)):
    #   q = s*n_ch + c'   with s = ho*Wo + wo, c' = hstack channel
    # PyTorch nn.Flatten of the hstacked NCHW tensor:
    #   p = c'*hw + s
    # perm[q] = p  so that  x_pallas @ W[perm, :] == x_torch @ W
    s = jnp.arange(hw)
    c = jnp.arange(n_ch)
    return (c[None, :] * hw + s[:, None]).reshape(-1)


def init_params(key):
    k1, k2, k3, k4, k5, k6 = jax.random.split(key, 6)
    blk_in = _init_conv_block(k1, 3, 16)     # (3, 16, 1, 1) then ('M', 2, 2)
    blk_out = _init_conv_block(k2, 3, 32)    # (3, 32, 1, 1) then ('M', 2, 2)
    # fc1 weight in (in, out) order w.r.t. the PyTorch NCHW flatten of the
    # hstacked (N, 48, 8, 8) tensor; bake the hstack/flatten permutation into its
    # rows once here (free at init) and store it in bf16 to halve the dominant
    # HBM transfer of the forward pass.
    fc1_w = jax.random.normal(k3, (3072, 256), jnp.float32) / jnp.sqrt(3072.0)
    perm = _flatten_permutation(48, 64)
    fc1_w = fc1_w[perm, :].astype(jnp.bfloat16)
    params = {
        "cnn_in": [blk_in],
        "cnn_out": [blk_out],
        "fc1_w": fc1_w,
        "fc1_b": 0.01 * jax.random.normal(k4, (256,), jnp.float32),
        "fc2_w": jax.random.normal(k5, (256, 5), jnp.float32) / jnp.sqrt(256.0),
        "fc2_b": 0.01 * jax.random.normal(k6, (5,), jnp.float32),
    }
    return params


# ---------- TimeModel.forward ----------
def time_model_forward(params, a_nchw, b_nchw):
    pa = params["cnn_in"][0]
    pb = params["cnn_out"][0]
    # Kernel 1: conv+BN+LeakyReLU+maxpool for both branches, hstack done in-kernel.
    pooled = cnn_branches(a_nchw, b_nchw, pa, pb)        # (N*64, 48)
    N = a_nchw.shape[0]
    # 24 KB row-major reshape; the order mismatch vs PyTorch's NCHW flatten is
    # absorbed by the permutation baked into fc1_w at init time.
    x = pooled.reshape(N, -1)                            # (N, 3072)
    # Kernel 2: Linear(3072,256) -> Dropout(eval id) -> LeakyReLU(0.1) -> Linear(256,5)
    return fused_fc(x, params["fc1_w"], params["fc1_b"],
                    params["fc2_w"], params["fc2_b"])


if __name__ == "__main__":
    key = jax.random.PRNGKey(0)
    kp, ka, kb = jax.random.split(key, 3)
    params = init_params(kp)
    a = jax.random.normal(ka, (2, 3, 16, 16), jnp.float32)
    b = jax.random.normal(kb, (2, 3, 16, 16), jnp.float32)

    out = jax.jit(time_model_forward)(params, a, b)
    out = jax.block_until_ready(out)
    assert out.shape == (2, 5), out.shape
    assert jnp.all(jnp.isfinite(out))
    print("KERNEL_OK")
</pallas_src>

<mosaic_0001>
module attributes {stable_mosaic.version = 11 : i64} {
  func.func @_branches_kernel(%arg0: memref<512x27xf32, #tpu.memory_space<vmem>>, %arg1: memref<27x16xf32, #tpu.memory_space<vmem>>, %arg2: memref<1x16xf32, #tpu.memory_space<vmem>>, %arg3: memref<1x16xf32, #tpu.memory_space<vmem>>, %arg4: memref<512x27xf32, #tpu.memory_space<vmem>>, %arg5: memref<27x32xf32, #tpu.memory_space<vmem>>, %arg6: memref<1x32xf32, #tpu.memory_space<vmem>>, %arg7: memref<1x32xf32, #tpu.memory_space<vmem>>, %arg8: memref<128x48xf32, #tpu.memory_space<vmem>>) attributes {dimension_semantics = [], scalar_prefetch = 0 : i64, scratch_operands = 0 : i64, tpu.core_type = #tpu.core_type<tc>} {
    %c0 = arith.constant 0 : index
    %c0_0 = arith.constant 0 : index
    %0 = vector.load %arg0[%c0, %c0_0] : memref<512x27xf32, #tpu.memory_space<vmem>>, vector<512x27xf32>
    %c0_1 = arith.constant 0 : index
    %c0_2 = arith.constant 0 : index
    %1 = vector.load %arg1[%c0_1, %c0_2] : memref<27x16xf32, #tpu.memory_space<vmem>>, vector<27x16xf32>
    %cst = arith.constant dense<0.000000e+00> : vector<512x16xf32>
    %2 = tpu.matmul %0, %1, %cst {dimension_numbers = #tpu.dot_dimension_numbers<[1], [0], [0], [1], [0, 0, 1, 1], [], []>} : vector<512x27xf32>, vector<27x16xf32>, vector<512x16xf32> -> vector<512x16xf32>
    %c0_3 = arith.constant 0 : index
    %c0_4 = arith.constant 0 : index
    %3 = vector.load %arg2[%c0_3, %c0_4] : memref<1x16xf32, #tpu.memory_space<vmem>>, vector<1x16xf32>
    %4 = vector.broadcast %3 : vector<1x16xf32> to vector<512x16xf32>
    %5 = arith.mulf %2, %4 : vector<512x16xf32>
    %c0_5 = arith.constant 0 : index
    %c0_6 = arith.constant 0 : index
    %6 = vector.load %arg3[%c0_5, %c0_6] : memref<1x16xf32, #tpu.memory_space<vmem>>, vector<1x16xf32>
    %7 = vector.broadcast %6 : vector<1x16xf32> to vector<512x16xf32>
    %8 = arith.addf %5, %7 : vector<512x16xf32>
    %cst_7 = arith.constant 0.000000e+00 : f32
    %9 = vector.broadcast %cst_7 : f32 to vector<512x16xf32>
    %10 = arith.cmpf ogt, %8, %9 : vector<512x16xf32>
    %cst_8 = arith.constant 1.000000e-01 : f32
    %11 = vector.broadcast %cst_8 : f32 to vector<512x16xf32>
    %12 = arith.mulf %11, %8 : vector<512x16xf32>
    %13 = arith.select %10, %8, %12 : vector<512x16xi1>, vector<512x16xf32>
    %14 = vector.extract_strided_slice %13 {offsets = [0, 0], sizes = [128, 16], strides = [1, 1]} : vector<512x16xf32> to vector<128x16xf32>
    %15 = vector.extract_strided_slice %13 {offsets = [128, 0], sizes = [128, 16], strides = [1, 1]} : vector<512x16xf32> to vector<128x16xf32>
    %16 = arith.maximumf %14, %15 : vector<128x16xf32>
    %17 = vector.extract_strided_slice %13 {offsets = [256, 0], sizes = [128, 16], strides = [1, 1]} : vector<512x16xf32> to vector<128x16xf32>
    %18 = vector.extract_strided_slice %13 {offsets = [384, 0], sizes = [128, 16], strides = [1, 1]} : vector<512x16xf32> to vector<128x16xf32>
    %19 = arith.maximumf %17, %18 : vector<128x16xf32>
    %20 = arith.maximumf %16, %19 : vector<128x16xf32>
    %c0_9 = arith.constant 0 : index
    %c0_10 = arith.constant 0 : index
    %21 = vector.load %arg8[%c0_9, %c0_10] : memref<128x48xf32, #tpu.memory_space<vmem>>, vector<128x16xf32>
    tpu.vector_store %arg8[%c0_9, %c0_10], %20 {strides = array<i32>} : memref<128x48xf32, #tpu.memory_space<vmem>>, vector<128x16xf32>,
    %c0_11 = arith.constant 0 : index
    %c0_12 = arith.constant 0 : index
    %22 = vector.load %arg4[%c0_11, %c0_12] : memref<512x27xf32, #tpu.memory_space<vmem>>, vector<512x27xf32>
    %c0_13 = arith.constant 0 : index
    %c0_14 = arith.constant 0 : index
    %23 = vector.load %arg5[%c0_13, %c0_14] : memref<27x32xf32, #tpu.memory_space<vmem>>, vector<27x32xf32>
    %cst_15 = arith.constant dense<0.000000e+00> : vector<512x32xf32>
    %24 = tpu.matmul %22, %23, %cst_15 {dimension_numbers = #tpu.dot_dimension_numbers<[1], [0], [0], [1], [0, 0, 1, 1], [], []>} : vector<512x27xf32>, vector<27x32xf32>, vector<512x32xf32> -> vector<512x32xf32>
    %c0_16 = arith.constant 0 : index
    %c0_17 = arith.constant 0 : index
    %25 = vector.load %arg6[%c0_16, %c0_17] : memref<1x32xf32, #tpu.memory_space<vmem>>, vector<1x32xf32>
    %26 = vector.broadcast %25 : vector<1x32xf32> to vector<512x32xf32>
    %27 = arith.mulf %24, %26 : vector<512x32xf32>
    %c0_18 = arith.constant 0 : index
    %c0_19 = arith.constant 0 : index
    %28 = vector.load %arg7[%c0_18, %c0_19] : memref<1x32xf32, #tpu.memory_space<vmem>>, vector<1x32xf32>
    %29 = vector.broadcast %28 : vector<1x32xf32> to vector<512x32xf32>
    %30 = arith.addf %27, %29 : vector<512x32xf32>
    %cst_20 = arith.constant 0.000000e+00 : f32
    %31 = vector.broadcast %cst_20 : f32 to vector<512x32xf32>
    %32 = arith.cmpf ogt, %30, %31 : vector<512x32xf32>
    %cst_21 = arith.constant 1.000000e-01 : f32
    %33 = vector.broadcast %cst_21 : f32 to vector<512x32xf32>
    %34 = arith.mulf %33, %30 : vector<512x32xf32>
    %35 = arith.select %32, %30, %34 : vector<512x32xi1>, vector<512x32xf32>
    %36 = vector.extract_strided_slice %35 {offsets = [0, 0], sizes = [128, 32], strides = [1, 1]} : vector<512x32xf32> to vector<128x32xf32>
    %37 = vector.extract_strided_slice %35 {offsets = [128, 0], sizes = [128, 32], strides = [1, 1]} : vector<512x32xf32> to vector<128x32xf32>
    %38 = arith.maximumf %36, %37 : vector<128x32xf32>
    %39 = vector.extract_strided_slice %35 {offsets = [256, 0], sizes = [128, 32], strides = [1, 1]} : vector<512x32xf32> to vector<128x32xf32>
    %40 = vector.extract_strided_slice %35 {offsets = [384, 0], sizes = [128, 32], strides = [1, 1]} : vector<512x32xf32> to vector<128x32xf32>
    %41 = arith.maximumf %39, %40 : vector<128x32xf32>
    %42 = arith.maximumf %38, %41 : vector<128x32xf32>
    %c0_22 = arith.constant 0 : index
    %c16 = arith.constant 16 : index
    %43 = vector.load %arg8[%c0_22, %c16] : memref<128x48xf32, #tpu.memory_space<vmem>>, vector<128x32xf32>
    tpu.vector_store %arg8[%c0_22, %c16], %42 {strides = array<i32>} : memref<128x48xf32, #tpu.memory_space<vmem>>, vector<128x32xf32>,
    return
  }
}

module attributes {stable_mosaic.version = 11 : i64} {
  func.func @_fused_fc_kernel(%arg0: memref<2x3072xf32, #tpu.memory_space<vmem>>, %arg1: memref<3072x256xbf16, #tpu.memory_space<vmem>>, %arg2: memref<1x256xf32, #tpu.memory_space<vmem>>, %arg3: memref<256x5xf32, #tpu.memory_space<vmem>>, %arg4: memref<1x5xf32, #tpu.memory_space<vmem>>, %arg5: memref<2x5xf32, #tpu.memory_space<vmem>>) attributes {dimension_semantics = [], scalar_prefetch = 0 : i64, scratch_operands = 0 : i64, tpu.core_type = #tpu.core_type<tc>} {
    %c0 = arith.constant 0 : index
    %c0_0 = arith.constant 0 : index
    %0 = vector.load %arg0[%c0, %c0_0] : memref<2x3072xf32, #tpu.memory_space<vmem>>, vector<2x3072xf32>
    %1 = arith.truncf %0 : vector<2x3072xf32> to vector<2x3072xbf16>
    %c0_1 = arith.constant 0 : index
    %c0_2 = arith.constant 0 : index
    %2 = vector.load %arg1[%c0_1, %c0_2] : memref<3072x256xbf16, #tpu.memory_space<vmem>>, vector<3072x256xbf16>
    %cst = arith.constant dense<0.000000e+00> : vector<2x256xf32>
    %3 = tpu.matmul %1, %2, %cst {dimension_numbers = #tpu.dot_dimension_numbers<[1], [0], [0], [1], [0, 0, 1, 1], [], []>} : vector<2x3072xbf16>, vector<3072x256xbf16>, vector<2x256xf32> -> vector<2x256xf32>
    %c0_3 = arith.constant 0 : index
    %c0_4 = arith.constant 0 : index
    %4 = vector.load %arg2[%c0_3, %c0_4] : memref<1x256xf32, #tpu.memory_space<vmem>>, vector<1x256xf32>
    %5 = vector.broadcast %4 : vector<1x256xf32> to vector<2x256xf32>
    %6 = arith.addf %3, %5 : vector<2x256xf32>
    %cst_5 = arith.constant 0.000000e+00 : f32
    %7 = vector.broadcast %cst_5 : f32 to vector<2x256xf32>
    %8 = arith.cmpf ogt, %6, %7 : vector<2x256xf32>
    %cst_6 = arith.constant 1.000000e-01 : f32
    %9 = vector.broadcast %cst_6 : f32 to vector<2x256xf32>
    %10 = arith.mulf %9, %6 : vector<2x256xf32>
    %11 = arith.select %8, %6, %10 : vector<2x256xi1>, vector<2x256xf32>
    %c0_7 = arith.constant 0 : index
    %c0_8 = arith.constant 0 : index
    %12 = vector.load %arg3[%c0_7, %c0_8] : memref<256x5xf32, #tpu.memory_space<vmem>>, vector<256x5xf32>
    %cst_9 = arith.constant dense<0.000000e+00> : vector<2x5xf32>
    %13 = tpu.matmul %11, %12, %cst_9 {dimension_numbers = #tpu.dot_dimension_numbers<[1], [0], [0], [1], [0, 0, 1, 1], [], []>} : vector<2x256xf32>, vector<256x5xf32>, vector<2x5xf32> -> vector<2x5xf32>
    %c0_10 = arith.constant 0 : index
    %c0_11 = arith.constant 0 : index
    %14 = vector.load %arg4[%c0_10, %c0_11] : memref<1x5xf32, #tpu.memory_space<vmem>>, vector<1x5xf32>
    %15 = vector.broadcast %14 : vector<1x5xf32> to vector<2x5xf32>
    %16 = arith.addf %13, %15 : vector<2x5xf32>
    %c0_12 = arith.constant 0 : index
    %c0_13 = arith.constant 0 : index
    %17 = vector.load %arg5[%c0_12, %c0_13] : memref<2x5xf32, #tpu.memory_space<vmem>>, vector<2x5xf32>
    tpu.vector_store %arg5[%c0_12, %c0_13], %16 {strides = array<i32>} : memref<2x5xf32, #tpu.memory_space<vmem>>, vector<2x5xf32>,
    return
  }
}

</mosaic_0001>

<bundles_post_ra>
// kernel: time_model_forward.2
= control target key start
LH: loop header
LB: loop body
LE: loop exit
PB: predicated region body
PF: predicated region fallthrough
CT: control target
= control target key end

     0   :  { %vm290_vm0 = vcmask 1042432   ;;  %vm97_vm1 = vcmask 220160   ;;  %s1976_s21 = smov 16   ;;  %s3537_s1 = inlined_call_operand.vmem [shape: f32[27,16], index: 1, kind: input, shape index: {}]   ;;  %s3538_s5 = inlined_call_operand.vmem [shape: f32[27,32], index: 5, kind: input, shape index: {}]   ;;  %s3539_s0 = inlined_call_operand.vmem [shape: f32[512,27], index: 0, kind: input, shape index: {}]   ;;  %s3540_s4 = inlined_call_operand.vmem [shape: f32[512,27], index: 4, kind: input, shape index: {}]   ;;  %s3541_s2 = inlined_call_operand.vmem [shape: f32[1,16], index: 2, kind: input, shape index: {}]   ;;  %s3542_s3 = inlined_call_operand.vmem [shape: f32[1,16], index: 3, kind: input, shape index: {}]   ;;  %s3543_s6 = inlined_call_operand.vmem [shape: f32[1,32], index: 6, kind: input, shape index: {}]   ;;  %s3544_s7 = inlined_call_operand.vmem [shape: f32[1,32], index: 7, kind: input, shape index: {}]   ;;  %s3545_s8 = inlined_call_operand.vmem [shape: f32[128,48], index: 8, kind: output, shape index: {}]  }
   0x1   :  { %v96_v0 = vld [vmem:[%s3537_s1 + $0x18] sm:$0x7]  ;;  %v95_v2 = vld [vmem:[%s3537_s1 + $0x10] sm:$0xff]  ;;  %v94_v4 = vld [vmem:[%s3537_s1 + $0x8] sm:$0xff] }
   0x2   :  { %v963_v1 = vld [vmem:[%s3538_s5 + $0x18] sm:$0x7]  ;;  %1829 = vmatpush.msk.msra.mxu0 %vm290_vm0, %v96_v0  ;;  %1959 = vmatpush.msk.msra.mxu2 %vm290_vm0, %v96_v0  ;;  %v962_v3 = vld [vmem:[%s3538_s5 + $0x10] sm:$0xff]  ;;  %v961_v5 = vld [vmem:[%s3538_s5 + $0x8] sm:$0xff] }
   0x3   :  { %1894 = vmatpush.msk.msra.mxu1 %vm290_vm0, %v963_v1  ;;  %1963 = vmatpush.msk.msra.mxu3 %vm290_vm0, %v963_v1  ;;  %v93_v6 = vld [vmem:[%s3537_s1] sm:$0xff]  ;;  %v30_v12 = vld [vmem:[%s3539_s0 + $0x8] sm:$0xff]  ;;  %v31_v16 = vld [vmem:[%s3539_s0 + $0x10] sm:$0xff] }
   0x4   :  { %307 = vmatpush.msra.mxu0 %v95_v2  ;;  %1960 = vmatpush.msra.mxu2 %v95_v2  ;;  %v960_v7 = vld [vmem:[%s3538_s5] sm:$0xff]  ;;  %v62_v13 = vld [vmem:[%s3539_s0 + $0x108] sm:$0xff]  ;;  %v63_v17 = vld [vmem:[%s3539_s0 + $0x110] sm:$0xff] }
   0x5   :  { %1172 = vmatpush.msra.mxu1 %v962_v3  ;;  %1964 = vmatpush.msra.mxu3 %v962_v3  ;;  %v29_v8 = vld [vmem:[%s3539_s0] sm:$0xff]  ;;  %v897_v14 = vld [vmem:[%s3540_s4 + $0x8] sm:$0xff]  ;;  %v898_v18 = vld [vmem:[%s3540_s4 + $0x10] sm:$0xff] }
   0x6   :  { %308 = vmatpush.msra.mxu0 %v94_v4  ;;  %1961 = vmatpush.msra.mxu2 %v94_v4  ;;  %v61_v9 = vld [vmem:[%s3539_s0 + $0x100] sm:$0xff]  ;;  %v929_v15 = vld [vmem:[%s3540_s4 + $0x108] sm:$0xff]  ;;  %v930_v19 = vld [vmem:[%s3540_s4 + $0x110] sm:$0xff] }
   0x7   :  { %1173 = vmatpush.msra.mxu1 %v961_v5  ;;  %1965 = vmatpush.msra.mxu3 %v961_v5  ;;  %v896_v10 = vld [vmem:[%s3540_s4] sm:$0xff]  ;;  %v32_v20 = vld [vmem:[%s3539_s0 + $0x18] sm:$0xff]  ;;  %v34_v28 = vld [vmem:[%s3539_s0 + $0x28] sm:$0xff] }
   0x8   :  { %309 = vmatpush.msra.mxu0 %v93_v6  ;;  %1962 = vmatpush.msra.mxu2 %v93_v6  ;;  %v928_v11 = vld [vmem:[%s3540_s4 + $0x100] sm:$0xff]  ;;  %v64_v21 = vld [vmem:[%s3539_s0 + $0x118] sm:$0xff]  ;;  %v66_v29 = vld [vmem:[%s3539_s0 + $0x128] sm:$0xff] }
   0x9   :  { %1174 = vmatpush.msra.mxu1 %v960_v7  ;;  %1966 = vmatpush.msra.mxu3 %v960_v7  ;;  %v899_v22 = vld [vmem:[%s3540_s4 + $0x18] sm:$0xff]  ;;  %v33_v24 = vld [vmem:[%s3539_s0 + $0x20] sm:$0xff]  ;;  %v901_v30 = vld [vmem:[%s3540_s4 + $0x28] sm:$0xff] }
   0xa   :  { %1830 = vmatmul.msk.f32.vlgmr.msra.gmra.mxu0 %vm97_vm1, %v29_v8  ;;  %1862 = vmatmul.msk.f32.vlgmr.msra.gmra.mxu2 %vm97_vm1, %v61_v9  ;;  %v931_v23 = vld [vmem:[%s3540_s4 + $0x118] sm:$0xff]  ;;  %v65_v25 = vld [vmem:[%s3539_s0 + $0x120] sm:$0xff]  ;;  %v933_v31 = vld [vmem:[%s3540_s4 + $0x128] sm:$0xff] }
   0xb   :  { %1895 = vmatmul.msk.f32.vlgmr.msra.gmra.mxu1 %vm97_vm1, %v896_v10  ;;  %1927 = vmatmul.msk.f32.vlgmr.msra.gmra.mxu3 %vm97_vm1, %v928_v11  ;;  %v900_v26 = vld [vmem:[%s3540_s4 + $0x20] sm:$0xff]  ;;  %v35_v32 = vld [vmem:[%s3539_s0 + $0x30] sm:$0xff]  ;;  %v36_v36 = vld [vmem:[%s3539_s0 + $0x38] sm:$0xff] }
   0xc   :  { %v932_v27 = vld [vmem:[%s3540_s4 + $0x120] sm:$0xff]  ;;  %v67_v33 = vld [vmem:[%s3539_s0 + $0x130] sm:$0xff]  ;;  %v68_v37 = vld [vmem:[%s3539_s0 + $0x138] sm:$0xff] }
   0xd   :  { %v902_v34 = vld [vmem:[%s3540_s4 + $0x30] sm:$0xff]  ;;  %v903_v38 = vld [vmem:[%s3540_s4 + $0x38] sm:$0xff]  ;;  %v37_v40 = vld [vmem:[%s3539_s0 + $0x40] sm:$0xff] }
   0xe   :  { %v934_v35 = vld [vmem:[%s3540_s4 + $0x130] sm:$0xff]  ;;  %v935_v39 = vld [vmem:[%s3540_s4 + $0x138] sm:$0xff]  ;;  %v69_v41 = vld [vmem:[%s3539_s0 + $0x140] sm:$0xff] }
   0xf   :  { %v904_v42 = vld [vmem:[%s3540_s4 + $0x40] sm:$0xff]  ;;  %v38_v44 = vld [vmem:[%s3539_s0 + $0x48] sm:$0xff]  ;;  %v39_v48 = vld [vmem:[%s3539_s0 + $0x50] sm:$0xff] }
  0x10   :  { %v936_v43 = vld [vmem:[%s3540_s4 + $0x140] sm:$0xff]  ;;  %v70_v45 = vld [vmem:[%s3539_s0 + $0x148] sm:$0xff]  ;;  %v71_v49 = vld [vmem:[%s3539_s0 + $0x150] sm:$0xff] }
  0x11   :  { %v905_v46 = vld [vmem:[%s3540_s4 + $0x48] sm:$0xff]  ;;  %v906_v50 = vld [vmem:[%s3540_s4 + $0x50] sm:$0xff]  ;;  %v40_v52 = vld [vmem:[%s3539_s0 + $0x58] sm:$0xff] }
  0x12   :  { %1831 = vmatmul.msk.f32.gmra.mxu0 %vm97_vm1, %v30_v12  ;;  %1863 = vmatmul.msk.f32.gmra.mxu2 %vm97_vm1, %v62_v13  ;;  %v937_v47 = vld [vmem:[%s3540_s4 + $0x148] sm:$0xff]  ;;  %v938_v51 = vld [vmem:[%s3540_s4 + $0x150] sm:$0xff]  ;;  %v72_v53 = vld [vmem:[%s3539_s0 + $0x158] sm:$0xff] }
  0x13   :  { %1896 = vmatmul.msk.f32.gmra.mxu1 %vm97_vm1, %v897_v14  ;;  %1928 = vmatmul.msk.f32.gmra.mxu3 %vm97_vm1, %v929_v15  ;;  %v907_v54 = vld [vmem:[%s3540_s4 + $0x58] sm:$0xff]  ;;  %v41_v56 = vld [vmem:[%s3539_s0 + $0x60] sm:$0xff]  ;;  %v42_v60 = vld [vmem:[%s3539_s0 + $0x68] sm:$0xff] }
  0x14   :  { %v939_v55 = vld [vmem:[%s3540_s4 + $0x158] sm:$0xff]  ;;  %v73_v57 = vld [vmem:[%s3539_s0 + $0x160] sm:$0xff]  ;;  %v74_v61 = vld [vmem:[%s3539_s0 + $0x168] sm:$0xff] }
  0x15   :  { %v908_v58 = vld [vmem:[%s3540_s4 + $0x60] sm:$0xff]  ;;  %v909_v62 = vld [vmem:[%s3540_s4 + $0x68] sm:$0xff]  ;;  %v43_v0 = vld [vmem:[%s3539_s0 + $0x70] sm:$0xff] }
  0x16   :  { %v940_v59 = vld [vmem:[%s3540_s4 + $0x160] sm:$0xff]  ;;  %v941_v63 = vld [vmem:[%s3540_s4 + $0x168] sm:$0xff]  ;;  %v75_v1 = vld [vmem:[%s3539_s0 + $0x170] sm:$0xff] }
  0x17   :  { %v910_v2 = vld [vmem:[%s3540_s4 + $0x70] sm:$0xff]  ;;  %v44_v4 = vld [vmem:[%s3539_s0 + $0x78] sm:$0xff]  ;;  %v45_v9 = vld [vmem:[%s3539_s0 + $0x80] sm:$0xff] }
  0x18   :  { %v942_v3 = vld [vmem:[%s3540_s4 + $0x170] sm:$0xff]  ;;  %v76_v5 = vld [vmem:[%s3539_s0 + $0x178] sm:$0xff]  ;;  %v77_v10 = vld [vmem:[%s3539_s0 + $0x180] sm:$0xff] }
  0x19   :  { %v911_v6 = vld [vmem:[%s3540_s4 + $0x78] sm:$0xff]  ;;  %v912_v12 = vld [vmem:[%s3540_s4 + $0x80] sm:$0xff] }
  0x1a   :  { %1832 = vmatmul.msk.f32.gmra.mxu0 %vm97_vm1, %v31_v16  ;;  %1864 = vmatmul.msk.f32.gmra.mxu2 %vm97_vm1, %v63_v17  ;;  %v943_v7 = vld [vmem:[%s3540_s4 + $0x178] sm:$0xff]  ;;  %v944_v13 = vld [vmem:[%s3540_s4 + $0x180] sm:$0xff]  ;;  %v46_v17 = vld [vmem:[%s3539_s0 + $0x88] sm:$0xff] }
  0x1b   :  { %1897 = vmatmul.msk.f32.gmra.mxu1 %vm97_vm1, %v898_v18  ;;  %1929 = vmatmul.msk.f32.gmra.mxu3 %vm97_vm1, %v930_v19  ;;  %v78_v18 = vld [vmem:[%s3539_s0 + $0x188] sm:$0xff] }
  0x22   :  { %1833 = vmatmul.msk.f32.gmra.mxu0 %vm97_vm1, %v32_v20  ;;  %1865 = vmatmul.msk.f32.gmra.mxu2 %vm97_vm1, %v64_v21  ;;  %v913_v20 = vld [vmem:[%s3540_s4 + $0x88] sm:$0xff] }
  0x23   :  { %1898 = vmatmul.msk.f32.gmra.mxu1 %vm97_vm1, %v899_v22  ;;  %1930 = vmatmul.msk.f32.gmra.mxu3 %vm97_vm1, %v931_v23  ;;  %v945_v21 = vld [vmem:[%s3540_s4 + $0x188] sm:$0xff] }
  0x2a   :  { %1834 = vmatmul.msk.f32.gmra.mxu0 %vm97_vm1, %v33_v24  ;;  %1866 = vmatmul.msk.f32.gmra.mxu2 %vm97_vm1, %v65_v25  ;;  %v47_v25 = vld [vmem:[%s3539_s0 + $0x90] sm:$0xff] }
  0x2b   :  { %1899 = vmatmul.msk.f32.gmra.mxu1 %vm97_vm1, %v900_v26  ;;  %1931 = vmatmul.msk.f32.gmra.mxu3 %vm97_vm1, %v932_v27  ;;  %v79_v26 = vld [vmem:[%s3539_s0 + $0x190] sm:$0xff] }
  0x32   :  { %1835 = vmatmul.msk.f32.gmra.mxu0 %vm97_vm1, %v34_v28  ;;  %1867 = vmatmul.msk.f32.gmra.mxu2 %vm97_vm1, %v66_v29  ;;  %v914_v28 = vld [vmem:[%s3540_s4 + $0x90] sm:$0xff] }
  0x33   :  { %1900 = vmatmul.msk.f32.gmra.mxu1 %vm97_vm1, %v901_v30  ;;  %1932 = vmatmul.msk.f32.gmra.mxu3 %vm97_vm1, %v933_v31  ;;  %v946_v29 = vld [vmem:[%s3540_s4 + $0x190] sm:$0xff] }
  0x3a   :  { %1836 = vmatmul.msk.f32.gmra.mxu0 %vm97_vm1, %v35_v32  ;;  %1868 = vmatmul.msk.f32.gmra.mxu2 %vm97_vm1, %v67_v33  ;;  %v48_v33 = vld [vmem:[%s3539_s0 + $0x98] sm:$0xff] }
  0x3b   :  { %1901 = vmatmul.msk.f32.gmra.mxu1 %vm97_vm1, %v902_v34  ;;  %1933 = vmatmul.msk.f32.gmra.mxu3 %vm97_vm1, %v934_v35  ;;  %v80_v34 = vld [vmem:[%s3539_s0 + $0x198] sm:$0xff] }
  0x42   :  { %1837 = vmatmul.msk.f32.gmra.mxu0 %vm97_vm1, %v36_v36  ;;  %1869 = vmatmul.msk.f32.gmra.mxu2 %vm97_vm1, %v68_v37  ;;  %v915_v36 = vld [vmem:[%s3540_s4 + $0x98] sm:$0xff] }
  0x43   :  { %1902 = vmatmul.msk.f32.gmra.mxu1 %vm97_vm1, %v903_v38  ;;  %1934 = vmatmul.msk.f32.gmra.mxu3 %vm97_vm1, %v935_v39  ;;  %v947_v37 = vld [vmem:[%s3540_s4 + $0x198] sm:$0xff] }
  0x4a   :  { %1838 = vmatmul.msk.f32.gmra.mxu0 %vm97_vm1, %v37_v40  ;;  %1870 = vmatmul.msk.f32.gmra.mxu2 %vm97_vm1, %v69_v41  ;;  %v49_v41 = vld [vmem:[%s3539_s0 + $0xa0] sm:$0xff] }
  0x4b   :  { %1903 = vmatmul.msk.f32.gmra.mxu1 %vm97_vm1, %v904_v42  ;;  %1935 = vmatmul.msk.f32.gmra.mxu3 %vm97_vm1, %v936_v43  ;;  %v81_v42 = vld [vmem:[%s3539_s0 + $0x1a0] sm:$0xff] }
  0x52   :  { %1839 = vmatmul.msk.f32.gmra.mxu0 %vm97_vm1, %v38_v44  ;;  %1871 = vmatmul.msk.f32.gmra.mxu2 %vm97_vm1, %v70_v45  ;;  %v916_v44 = vld [vmem:[%s3540_s4 + $0xa0] sm:$0xff] }
  0x53   :  { %1904 = vmatmul.msk.f32.gmra.mxu1 %vm97_vm1, %v905_v46  ;;  %1936 = vmatmul.msk.f32.gmra.mxu3 %vm97_vm1, %v937_v47  ;;  %v948_v45 = vld [vmem:[%s3540_s4 + $0x1a0] sm:$0xff] }
  0x5a   :  { %1840 = vmatmul.msk.f32.gmra.mxu0 %vm97_vm1, %v39_v48  ;;  %1872 = vmatmul.msk.f32.gmra.mxu2 %vm97_vm1, %v71_v49  ;;  %v50_v49 = vld [vmem:[%s3539_s0 + $0xa8] sm:$0xff] }
  0x5b   :  { %1905 = vmatmul.msk.f32.gmra.mxu1 %vm97_vm1, %v906_v50  ;;  %1937 = vmatmul.msk.f32.gmra.mxu3 %vm97_vm1, %v938_v51  ;;  %v82_v50 = vld [vmem:[%s3539_s0 + $0x1a8] sm:$0xff] }
  0x62   :  { %1841 = vmatmul.msk.f32.gmra.mxu0 %vm97_vm1, %v40_v52  ;;  %1873 = vmatmul.msk.f32.gmra.mxu2 %vm97_vm1, %v72_v53  ;;  %v917_v52 = vld [vmem:[%s3540_s4 + $0xa8] sm:$0xff] }
  0x63   :  { %1906 = vmatmul.msk.f32.gmra.mxu1 %vm97_vm1, %v907_v54  ;;  %1938 = vmatmul.msk.f32.gmra.mxu3 %vm97_vm1, %v939_v55  ;;  %v949_v53 = vld [vmem:[%s3540_s4 + $0x1a8] sm:$0xff] }
  0x6a   :  { %1842 = vmatmul.msk.f32.gmra.mxu0 %vm97_vm1, %v41_v56  ;;  %1874 = vmatmul.msk.f32.gmra.mxu2 %vm97_vm1, %v73_v57  ;;  %v51_v57 = vld [vmem:[%s3539_s0 + $0xb0] sm:$0xff] }
  0x6b   :  { %1907 = vmatmul.msk.f32.gmra.mxu1 %vm97_vm1, %v908_v58  ;;  %1939 = vmatmul.msk.f32.gmra.mxu3 %vm97_vm1, %v940_v59  ;;  %v83_v58 = vld [vmem:[%s3539_s0 + $0x1b0] sm:$0xff] }
  0x72   :  { %1843 = vmatmul.msk.f32.gmra.mxu0 %vm97_vm1, %v42_v60  ;;  %1875 = vmatmul.msk.f32.gmra.mxu2 %vm97_vm1, %v74_v61  ;;  %v918_v60 = vld [vmem:[%s3540_s4 + $0xb0] sm:$0xff] }
  0x73   :  { %1908 = vmatmul.msk.f32.gmra.mxu1 %vm97_vm1, %v909_v62  ;;  %1940 = vmatmul.msk.f32.gmra.mxu3 %vm97_vm1, %v941_v63  ;;  %v950_v61 = vld [vmem:[%s3540_s4 + $0x1b0] sm:$0xff] }
  0x7a   :  { %1844 = vmatmul.msk.f32.gmra.mxu0 %vm97_vm1, %v43_v0  ;;  %1876 = vmatmul.msk.f32.gmra.mxu2 %vm97_vm1, %v75_v1  ;;  %v52_v1 = vld [vmem:[%s3539_s0 + $0xb8] sm:$0xff] }
  0x7b   :  { %1909 = vmatmul.msk.f32.gmra.mxu1 %vm97_vm1, %v910_v2  ;;  %1941 = vmatmul.msk.f32.gmra.mxu3 %vm97_vm1, %v942_v3  ;;  %v84_v2 = vld [vmem:[%s3539_s0 + $0x1b8] sm:$0xff] }
  0x82   :  { %1845 = vmatmul.msk.f32.gmra.mxu0 %vm97_vm1, %v44_v4  ;;  %1877 = vmatmul.msk.f32.gmra.mxu2 %vm97_vm1, %v76_v5  ;;  %v919_v4 = vld [vmem:[%s3540_s4 + $0xb8] sm:$0xff] }
  0x83   :  { %1910 = vmatmul.msk.f32.gmra.mxu1 %vm97_vm1, %v911_v6  ;;  %1942 = vmatmul.msk.f32.gmra.mxu3 %vm97_vm1, %v943_v7  ;;  %v951_v5 = vld [vmem:[%s3540_s4 + $0x1b8] sm:$0xff] }
  0x87   :  { %v2302_v8 = vpop.f32.mrf.mxu0 }
  0x88   :  { %v2310_v11 = vpop.f32.mrf.mxu1 }
  0x8a   :  { %1846 = vmatmul.msk.f32.gmra.mxu0 %vm97_vm1, %v45_v9  ;;  %1878 = vmatmul.msk.f32.gmra.mxu2 %vm97_vm1, %v77_v10  ;;  %v53_v10 = vld [vmem:[%s3539_s0 + $0xc0] sm:$0xff] }
  0x8b   :  { %1911 = vmatmul.msk.f32.gmra.mxu1 %vm97_vm1, %v912_v12  ;;  %1943 = vmatmul.msk.f32.gmra.mxu3 %vm97_vm1, %v944_v13  ;;  %v85_v12 = vld [vmem:[%s3539_s0 + $0x1c0] sm:$0xff] }
  0x8d   :  { %v2322_v14 = vpop.f32.mrf.mxu2 }
  0x8e   :  { %v2324_v15 = vpop.f32.mrf.mxu3 }
  0x8f   :  { %v2326_v16 = vpop.f32.mrf.mxu0 }
  0x90   :  { %v2334_v19 = vpop.f32.mrf.mxu1 }
  0x92   :  { %1847 = vmatmul.msk.f32.gmra.mxu0 %vm97_vm1, %v46_v17  ;;  %1879 = vmatmul.msk.f32.gmra.mxu2 %vm97_vm1, %v78_v18  ;;  %v920_v17 = vld [vmem:[%s3540_s4 + $0xc0] sm:$0xff] }
  0x93   :  { %1912 = vmatmul.msk.f32.gmra.mxu1 %vm97_vm1, %v913_v20  ;;  %1944 = vmatmul.msk.f32.gmra.mxu3 %vm97_vm1, %v945_v21  ;;  %v952_v18 = vld [vmem:[%s3540_s4 + $0x1c0] sm:$0xff] }
  0x94   :  { %v2515_v20 = vld [vmem:[%s3541_s2] ss:$0 sm:$0xff] }
  0x95   :  { %v2346_v22 = vpop.f32.mrf.mxu2  ;;  %v2522_v21 = vld [vmem:[%s3543_s6] ss:$0 sm:$0xff] }
  0x96   :  { %v2348_v23 = vpop.f32.mrf.mxu3 }
  0x97   :  { %v2350_v24 = vpop.f32.mrf.mxu0 }
  0x98   :  { %v2358_v27 = vpop.f32.mrf.mxu1 }
  0x9a   :  { %1848 = vmatmul.msk.f32.gmra.mxu0 %vm97_vm1, %v47_v25  ;;  %1880 = vmatmul.msk.f32.gmra.mxu2 %vm97_vm1, %v79_v26 }
  0x9b   :  { %1913 = vmatmul.msk.f32.gmra.mxu1 %vm97_vm1, %v914_v28  ;;  %1945 = vmatmul.msk.f32.gmra.mxu3 %vm97_vm1, %v946_v29  ;;  %v507_v28 = vmul.f32 %v2515_v20, %v2302_v8  ;;  %v2533_v29 = vld [vmem:[%s3542_s3] ss:$0 sm:$0xff] }
  0x9c   :  { %v2548_v8 = vld [vmem:[%s3544_s7] ss:$0 sm:$0xff] }
  0x9d   :  { %v2370_v30 = vpop.f32.mrf.mxu2 }
  0x9e   :  { %v2372_v31 = vpop.f32.mrf.mxu3 }
  0x9f   :  { %v2374_v32 = vpop.f32.mrf.mxu0 }
  0xa0   :  { %v2382_v35 = vpop.f32.mrf.mxu1 }
  0xa2   :  { %1849 = vmatmul.msk.f32.gmra.mxu0 %vm97_vm1, %v48_v33  ;;  %1881 = vmatmul.msk.f32.gmra.mxu2 %vm97_vm1, %v80_v34  ;;  %v54_v34 = vld [vmem:[%s3539_s0 + $0xc8] sm:$0xff] }
  0xa3   :  { %1914 = vmatmul.msk.f32.gmra.mxu1 %vm97_vm1, %v915_v36  ;;  %1946 = vmatmul.msk.f32.gmra.mxu3 %vm97_vm1, %v947_v37  ;;  %v86_v36 = vld [vmem:[%s3539_s0 + $0x1c8] sm:$0xff]  ;;  %v1372_v37 = vmul.f32 %v2522_v21, %v2310_v11  ;;  %v575_v11 = vadd.f32 %v2533_v29, %v507_v28 }
  0xa5   :  { %v2394_v38 = vpop.f32.mrf.mxu2  ;;  %vm639_vm2 = vcmp.gt.f32.partialorder %v575_v11, 0.0 }
  0xa6   :  { %v2396_v39 = vpop.f32.mrf.mxu3 }
  0xa7   :  { %v2398_v40 = vpop.f32.mrf.mxu0 }
  0xa8   :  { %v2406_v43 = vpop.f32.mrf.mxu1 }
  0xaa   :  { %1850 = vmatmul.msk.f32.gmra.mxu0 %vm97_vm1, %v49_v41  ;;  %1882 = vmatmul.msk.f32.gmra.mxu2 %vm97_vm1, %v81_v42  ;;  %v921_v42 = vld [vmem:[%s3540_s4 + $0xc8] sm:$0xff] }
  0xab   :  { %1915 = vmatmul.msk.f32.gmra.mxu1 %vm97_vm1, %v916_v44  ;;  %1947 = vmatmul.msk.f32.gmra.mxu3 %vm97_vm1, %v948_v45  ;;  %v953_v44 = vld [vmem:[%s3540_s4 + $0x1c8] sm:$0xff]  ;;  %v539_v45 = vmul.f32 %v2515_v20, %v2322_v14 }
  0xad   :  { %v2418_v46 = vpop.f32.mrf.mxu2  ;;  %v607_v14 = vadd.f32 %v2533_v29, %v539_v45 }
  0xae   :  { %v2420_v47 = vpop.f32.mrf.mxu3 }
  0xaf   :  { %v2422_v48 = vpop.f32.mrf.mxu0  ;;  %vm671_vm4 = vcmp.gt.f32.partialorder %v607_v14, 0.0 }
  0xb0   :  { %v2430_v51 = vpop.f32.mrf.mxu1 }
  0xb2   :  { %1851 = vmatmul.msk.f32.gmra.mxu0 %vm97_vm1, %v50_v49  ;;  %1883 = vmatmul.msk.f32.gmra.mxu2 %vm97_vm1, %v82_v50  ;;  %v1440_v49 = vadd.f32 %v2548_v8, %v1372_v37  ;;  %v1404_v50 = vmul.f32 %v2522_v21, %v2324_v15  ;;  %v55_v15 = vld [vmem:[%s3539_s0 + $0xd0] sm:$0xff] }
  0xb3   :  { %1916 = vmatmul.msk.f32.gmra.mxu1 %vm97_vm1, %v917_v52  ;;  %1948 = vmatmul.msk.f32.gmra.mxu3 %vm97_vm1, %v949_v53  ;;  %v508_v52 = vmul.f32 %v2515_v20, %v2326_v16  ;;  %v87_v16 = vld [vmem:[%s3539_s0 + $0x1d0] sm:$0xff] }
  0xb4   :  { %vm1504_vm3 = vcmp.gt.f32.partialorder %v1440_v49, 0.0 }
  0xb5   :  { %v2442_v54 = vpop.f32.mrf.mxu2 }
  0xb6   :  { %v2444_v55 = vpop.f32.mrf.mxu3 }
  0xb7   :  { %v2446_v56 = vpop.f32.mrf.mxu0 }
  0xb8   :  { %v2454_v59 = vpop.f32.mrf.mxu1 }
  0xba   :  { %1852 = vmatmul.msk.f32.gmra.mxu0 %vm97_vm1, %v51_v57  ;;  %1884 = vmatmul.msk.f32.gmra.mxu2 %vm97_vm1, %v83_v58  ;;  %v1373_v57 = vmul.f32 %v2522_v21, %v2334_v19  ;;  %v922_v19 = vld [vmem:[%s3540_s4 + $0xd0] sm:$0xff] }
  0xbb   :  { %1917 = vmatmul.msk.f32.gmra.mxu1 %vm97_vm1, %v918_v60  ;;  %1949 = vmatmul.msk.f32.gmra.mxu3 %vm97_vm1, %v950_v61  ;;  %v540_v60 = vmul.f32 %v2515_v20, %v2346_v22  ;;  %v954_v22 = vld [vmem:[%s3540_s4 + $0x1d0] sm:$0xff] }
  0xbd   :  { %v2466_v62 = vpop.f32.mrf.mxu2  ;;  %v608_v28 = vadd.f32 %v2533_v29, %v540_v60  ;;  %v510_v60 = vmul.f32 %v2515_v20, %v2374_v32  ;;  %v923_v32 = vld [vmem:[%s3540_s4 + $0xd8] sm:$0xff] }
  0xbe   :  { %v2468_v63 = vpop.f32.mrf.mxu3 }
  0xbf   :  { %v2470_v0 = vpop.f32.mrf.mxu0  ;;  %vm672_vm8 = vcmp.gt.f32.partialorder %v608_v28, 0.0 }
  0xc0   :  { %v2478_v3 = vpop.f32.mrf.mxu1 }
  0xc2   :  { %1853 = vmatmul.msk.f32.gmra.mxu0 %vm97_vm1, %v52_v1  ;;  %1885 = vmatmul.msk.f32.gmra.mxu2 %vm97_vm1, %v84_v2  ;;  %v703_v1 = vmul.f32 0.1, %v575_v11  ;;  %v1568_v2 = vmul.f32 0.1, %v1440_v49 }
  0xc3   :  { %1918 = vmatmul.msk.f32.gmra.mxu1 %vm97_vm1, %v919_v4  ;;  %1950 = vmatmul.msk.f32.gmra.mxu3 %vm97_vm1, %v951_v5  ;;  %v1472_v5 = vadd.f32 %v2548_v8, %v1404_v50 }
  0xc4   :  { %v2612_v37 = vsel %vm1504_vm3, %v1440_v49, %v1568_v2  ;;  %v1406_v49 = vmul.f32 %v2522_v21, %v2372_v31  ;;  %v1375_v31 = vmul.f32 %v2522_v21, %v2382_v35 }
  0xc5   :  { %v2490_v6 = vpop.f32.mrf.mxu2  ;;  %vm1536_vm5 = vcmp.gt.f32.partialorder %v1472_v5, 0.0 }
  0xc6   :  { %v2492_v7 = vpop.f32.mrf.mxu3 }
  0xc7   :  { %v2494_v9 = vpop.f32.mrf.mxu0 }
  0xc8   :  { %v2502_v13 = vpop.f32.mrf.mxu1 }
  0xca   :  { %1854 = vmatmul.msk.f32.gmra.mxu0 %vm97_vm1, %v53_v10  ;;  %1886 = vmatmul.msk.f32.gmra.mxu2 %vm97_vm1, %v85_v12  ;;  %v576_v10 = vadd.f32 %v2533_v29, %v508_v52  ;;  %v1405_v12 = vmul.f32 %v2522_v21, %v2348_v23  ;;  %v509_v23 = vmul.f32 %v2515_v20, %v2350_v24 }
  0xcb   :  { %1919 = vmatmul.msk.f32.gmra.mxu1 %vm97_vm1, %v920_v17  ;;  %1951 = vmatmul.msk.f32.gmra.mxu3 %vm97_vm1, %v952_v18  ;;  %v735_v17 = vmul.f32 0.1, %v607_v14  ;;  %v1441_v18 = vadd.f32 %v2548_v8, %v1373_v57  ;;  %v541_v57 = vmul.f32 %v2515_v20, %v2370_v30  ;;  %v88_v30 = vld [vmem:[%s3539_s0 + $0x1d8] sm:$0xff] }
  0xcc   :  { %v1473_v45 = vadd.f32 %v2548_v8, %v1405_v12  ;;  %vm640_vm6 = vcmp.gt.f32.partialorder %v576_v10, 0.0 }
  0xcd   :  { %v2524_v25 = vpop.f32.mrf.mxu2  ;;  %v2617_v52 = vsel %vm671_vm4, %v607_v14, %v735_v17  ;;  %vm1505_vm7 = vcmp.gt.f32.partialorder %v1441_v18, 0.0  ;;  %v56_v14 = vld [vmem:[%s3539_s0 + $0xd8] sm:$0xff]  ;;  %v542_v17 = vmul.f32 %v2515_v20, %v2394_v38  ;;  %v609_v35 = vadd.f32 %v2533_v29, %v541_v57 }
  0xce   :  { %v2526_v26 = vpop.f32.mrf.mxu3  ;;  %v1601_v12 = vmul.f32 0.1, %v1473_v45  ;;  %vm1537_vm9 = vcmp.gt.f32.partialorder %v1473_v45, 0.0  ;;  %v1474_v38 = vadd.f32 %v2548_v8, %v1406_v49  ;;  %v1443_v57 = vadd.f32 %v2548_v8, %v1375_v31 }
  0xcf   :  { %v2535_v33 = vpop.f32.mrf.mxu0  ;;  %vm673_vm12 = vcmp.gt.f32.partialorder %v609_v35, 0.0 }
  0xd0   :  { %v2550_v41 = vpop.f32.mrf.mxu1  ;;  %v1602_v31 = vmul.f32 0.1, %v1474_v38  ;;  %vm1538_vm14 = vcmp.gt.f32.partialorder %v1474_v38, 0.0  ;;  %vm1507_vm15 = vcmp.gt.f32.partialorder %v1443_v57, 0.0 }
  0xd2   :  { %1855 = vmatmul.msk.f32.gmra.mxu0 %vm97_vm1, %v54_v34  ;;  %1887 = vmatmul.msk.f32.gmra.mxu2 %vm97_vm1, %v86_v36  ;;  %v2606_v34 = vsel %vm639_vm2, %v575_v11, %v703_v1  ;;  %v1374_v36 = vmul.f32 %v2522_v21, %v2358_v27  ;;  %v1569_v11 = vmul.f32 0.1, %v1441_v18  ;;  %v736_v27 = vmul.f32 0.1, %v608_v28 }
  0xd3   :  { %1920 = vmatmul.msk.f32.gmra.mxu1 %vm97_vm1, %v921_v42  ;;  %1952 = vmatmul.msk.f32.gmra.mxu3 %vm97_vm1, %v953_v44  ;;  %v1600_v42 = vmul.f32 0.1, %v1472_v5  ;;  %v704_v44 = vmul.f32 0.1, %v576_v10 }
  0xd4   :  { %v1442_v1 = vadd.f32 %v2548_v8, %v1374_v36  ;;  %v1407_v36 = vmul.f32 %v2522_v21, %v2396_v39 }
  0xd5   :  { %v2570_v53 = vpop.f32.mrf.mxu2 }
  0xd6   :  { %v2575_v58 = vpop.f32.mrf.mxu3  ;;  %vm1506_vm11 = vcmp.gt.f32.partialorder %v1442_v1, 0.0  ;;  %v1475_v49 = vadd.f32 %v2548_v8, %v1407_v36  ;;  %v1408_v36 = vmul.f32 %v2522_v21, %v2420_v47 }
  0xd7   :  { %v2579_v61 = vpop.f32.mrf.mxu0 }
  0xd8   :  { %v2587_v4 = vpop.f32.mrf.mxu1  ;;  %vm1539_vm2 = vcmp.gt.f32.partialorder %v1475_v49, 0.0 }
  0xda   :  { %1856 = vmatmul.msk.f32.gmra.mxu0 %vm97_vm1, %v55_v15  ;;  %1888 = vmatmul.msk.f32.gmra.mxu2 %vm97_vm1, %v87_v16  ;;  %v577_v16 = vadd.f32 %v2533_v29, %v509_v23  ;;  %v2653_v23 = vsel %vm1536_vm5, %v1472_v5, %v1600_v42  ;;  %v578_v5 = vadd.f32 %v2533_v29, %v510_v60  ;;  %v1570_v42 = vmul.f32 0.1, %v1442_v1 }
  0xdb   :  { %1921 = vmatmul.msk.f32.gmra.mxu1 %vm97_vm1, %v922_v19  ;;  %1953 = vmatmul.msk.f32.gmra.mxu3 %vm97_vm1, %v954_v22  ;;  %v955_v19 = vld [vmem:[%s3540_s4 + $0x1d8] sm:$0xff]  ;;  %v2648_v22 = vsel %vm640_vm6, %v576_v10, %v704_v44  ;;  %v2661_v10 = vsel %vm1505_vm7, %v1441_v18, %v1569_v11  ;;  %v2664_v44 = vsel %vm672_vm8, %v608_v28, %v736_v27  ;;  %v737_v27 = vmul.f32 0.1, %v609_v35 }
  0xdc   :  { %3546 = vst [vmem:[#allocation2_spill] sm:$0xff] %v2661_v10  ;;  %vm641_vm10 = vcmp.gt.f32.partialorder %v577_v16, 0.0  ;;  %v705_v39 = vmul.f32 0.1, %v577_v16  ;;  %v511_v18 = vmul.f32 %v2515_v20, %v2398_v40  ;;  %v2677_v11 = vsel %vm1537_vm9, %v1473_v45, %v1601_v12  ;;  %v57_v45 = vld [vmem:[%s3539_s0 + $0xe0] sm:$0xff] }
  0xdd   :  { %v2615_v50 = vpop.f32.mrf.mxu2  ;;  %3547 = vst [vmem:[#allocation3_spill] sm:$0xff] %v2664_v44  ;;  %v1376_v60 = vmul.f32 %v2522_v21, %v2406_v43  ;;  %vm642_vm13 = vcmp.gt.f32.partialorder %v578_v5, 0.0  ;;  %v543_v40 = vmul.f32 %v2515_v20, %v2418_v46  ;;  %v706_v12 = vmul.f32 0.1, %v578_v5 }
  0xde   :  { %v2621_v24 = vpop.f32.mrf.mxu3  ;;  %3548 = vst [vmem:[#allocation4_spill] sm:$0xff] %v2677_v11  ;;  %v2695_v43 = vsel %vm641_vm10, %v577_v16, %v705_v39  ;;  %v956_v11 = vld [vmem:[%s3540_s4 + $0x1e0] sm:$0xff]  ;;  %v579_v16 = vadd.f32 %v2533_v29, %v511_v18  ;;  %v512_v39 = vmul.f32 %v2515_v20, %v2422_v48  ;;  %v2717_v44 = vsel %vm673_vm12, %v609_v35, %v737_v27 }
  0xdf   :  { %v2627_v15 = vpop.f32.mrf.mxu0  ;;  %3550 = vst [vmem:[#allocation6_spill] sm:$0xff] %v2695_v43  ;;  %v1603_v43 = vmul.f32 0.1, %v1475_v49  ;;  %v1444_v47 = vadd.f32 %v2548_v8, %v1376_v60  ;;  %v611_v18 = vadd.f32 %v2533_v29, %v543_v40  ;;  %v1377_v48 = vmul.f32 %v2522_v21, %v2430_v51 }
  0xe0   :  { %v2639_v2 = vpop.f32.mrf.mxu1  ;;  %v2725_v60 = vsel %vm642_vm13, %v578_v5, %v706_v12  ;;  %v707_v27 = vmul.f32 0.1, %v579_v16  ;;  %v580_v51 = vadd.f32 %v2533_v29, %v512_v39  ;;  %vm643_vm3 = vcmp.gt.f32.partialorder %v579_v16, 0.0 }
  0xe1   :  { %v1572_v5 = vmul.f32 0.1, %v1444_v47  ;;  %vm1508_vm4 = vcmp.gt.f32.partialorder %v1444_v47, 0.0  ;;  %vm675_vm5 = vcmp.gt.f32.partialorder %v611_v18, 0.0  ;;  %v545_v12 = vmul.f32 %v2515_v20, %v2466_v62 }
  0xe2   :  { %1857 = vmatmul.msk.f32.gmra.mxu0 %vm97_vm1, %v56_v14  ;;  %1889 = vmatmul.msk.f32.gmra.mxu2 %vm97_vm1, %v88_v30  ;;  %v610_v14 = vadd.f32 %v2533_v29, %v542_v17  ;;  %v1571_v17 = vmul.f32 0.1, %v1443_v57  ;;  %v2773_v39 = vsel %vm643_vm3, %v579_v16, %v707_v27  ;;  %vm644_vm7 = vcmp.gt.f32.partialorder %v580_v51, 0.0 }
  0xe3   :  { %1922 = vmatmul.msk.f32.gmra.mxu1 %vm97_vm1, %v923_v32  ;;  %1954 = vmatmul.msk.f32.gmra.mxu3 %vm97_vm1, %v955_v19  ;;  %v89_v19 = vld [vmem:[%s3539_s0 + $0x1e0] sm:$0xff]  ;;  %v1410_v62 = vmul.f32 %v2522_v21, %v2468_v63 }
  0xe4   :  { %v738_v10 = vmul.f32 0.1, %v610_v14  ;;  %vm674_vm0 = vcmp.gt.f32.partialorder %v610_v14, 0.0  ;;  %v2732_v35 = vsel %vm1507_vm15, %v1443_v57, %v1571_v17  ;;  %v2747_v57 = vsel %vm1539_vm2, %v1475_v49, %v1603_v43  ;;  %v925_v17 = vld [vmem:[%s3540_s4 + $0xe8] sm:$0xff] }
  0xe5   :  { %v2674_v28 = vpop.f32.mrf.mxu2  ;;  %v1378_v43 = vmul.f32 %v2522_v21, %v2454_v59 }
  0xe6   :  { %v2682_v30 = vpop.f32.mrf.mxu3 }
  0xe7   :  { %v2686_v32 = vpop.f32.mrf.mxu0 }
  0xe8   :  { %3549 = vst [vmem:[#allocation5_spill] sm:$0xff] %v2686_v32  ;;  %v2699_v46 = vpop.f32.mrf.mxu1  ;;  %v924_v32 = vld [vmem:[%s3540_s4 + $0xe0] sm:$0xff] }
  0xe9   :  { %3551 = vst [vmem:[#allocation7_spill] sm:$0xff] %v2699_v46  ;;  %v2714_v46 = vsel %vm1506_vm11, %v1442_v1, %v1570_v42  ;;  %v2729_v1 = vsel %vm1538_vm14, %v1474_v38, %v1602_v31  ;;  %v2735_v42 = vsel %vm674_vm0, %v610_v14, %v738_v10  ;;  %v1409_v38 = vmul.f32 %v2522_v21, %v2444_v55  ;;  %v90_v55 = vld [vmem:[%s3539_s0 + $0x1e8] sm:$0xff] }
  0xea   :  { %1858 = vmatmul.msk.f32.gmra.mxu0 %vm97_vm1, %v57_v45  ;;  %1890 = vmatmul.msk.f32.gmra.mxu2 %vm97_vm1, %v89_v19  ;;  %v1476_v45 = vadd.f32 %v2548_v8, %v1408_v36  ;;  %v739_v10 = vmul.f32 0.1, %v611_v18  ;;  %v1445_v14 = vadd.f32 %v2548_v8, %v1377_v48  ;;  %v957_v36 = vld [vmem:[%s3540_s4 + $0x1e8] sm:$0xff]  ;;  %v708_v48 = vmul.f32 0.1, %v580_v51 }
  0xeb   :  { %1923 = vmatmul.msk.f32.gmra.mxu1 %vm97_vm1, %v924_v32  ;;  %1955 = vmatmul.msk.f32.gmra.mxu3 %vm97_vm1, %v956_v11  ;;  %v544_v11 = vmul.f32 %v2515_v20, %v2442_v54  ;;  %v513_v32 = vmul.f32 %v2515_v20, %v2446_v56  ;;  %v58_v54 = vld [vmem:[%s3539_s0 + $0xe8] sm:$0xff]  ;;  %v1477_v59 = vadd.f32 %v2548_v8, %v1409_v38 }
  0xec   :  { %v1604_v49 = vmul.f32 0.1, %v1476_v45  ;;  %vm1540_vm6 = vcmp.gt.f32.partialorder %v1476_v45, 0.0  ;;  %v2784_v16 = vsel %vm675_vm5, %v611_v18, %v739_v10  ;;  %vm1509_vm8 = vcmp.gt.f32.partialorder %v1445_v14, 0.0 }
  0xed   :  { %v2740_v40 = vpop.f32.mrf.mxu2  ;;  %v581_v27 = vadd.f32 %v2533_v29, %v513_v32  ;;  %v1573_v63 = vmul.f32 0.1, %v1445_v14  ;;  %v613_v38 = vadd.f32 %v2533_v29, %v545_v12  ;;  %v2798_v18 = vsel %vm644_vm7, %v580_v51, %v708_v48 }
  0xee   :  { %v2744_v31 = vpop.f32.mrf.mxu3  ;;  %3556 = vst [vmem:[#allocation12_spill] sm:$0xff] %v2798_v18  ;;  %v1379_v32 = vmul.f32 %v2522_v21, %v2478_v3  ;;  %v546_v12 = vmul.f32 %v2515_v20, %v2490_v6  ;;  %vm1541_vm10 = vcmp.gt.f32.partialorder %v1477_v59, 0.0  ;;  %v59_v3 = vld [vmem:[%s3539_s0 + $0xf0] sm:$0xff]  ;;  %v515_v48 = vmul.f32 %v2515_v20, %v2494_v9 }
  0xef   :  { %3552 = vst [vmem:[#allocation8_spill] sm:$0xff] %v2744_v31  ;;  %v2752_v19 = vpop.f32.mrf.mxu0  ;;  %vm645_vm11 = vcmp.gt.f32.partialorder %v581_v27, 0.0  ;;  %v709_v51 = vmul.f32 0.1, %v581_v27  ;;  %v741_v6 = vmul.f32 0.1, %v613_v38  ;;  %v1380_v9 = vmul.f32 %v2522_v21, %v2502_v13 }
  0xf0   :  { %3553 = vst [vmem:[#allocation9_spill] sm:$0xff] %v2752_v19  ;;  %v2764_v56 = vpop.f32.mrf.mxu1  ;;  %v612_v19 = vadd.f32 %v2533_v29, %v544_v11  ;;  %v2790_v11 = vsel %vm1508_vm4, %v1444_v47, %v1572_v5  ;;  %v1605_v47 = vmul.f32 0.1, %v1477_v59  ;;  %v1478_v5 = vadd.f32 %v2548_v8, %v1410_v62 }
  0xf1   :  { %3554 = vst [vmem:[#allocation10_spill] sm:$0xff] %v2764_v56  ;;  %v514_v56 = vmul.f32 %v2515_v20, %v2470_v0  ;;  %v1446_v0 = vadd.f32 %v2548_v8, %v1378_v43  ;;  %vm677_vm13 = vcmp.gt.f32.partialorder %v613_v38, 0.0 }
  0xf2   :  { %1859 = vmatmul.msk.f32.gmra.mxu0 %vm97_vm1, %v58_v54  ;;  %1891 = vmatmul.msk.f32.gmra.mxu2 %vm97_vm1, %v90_v55  ;;  %v2795_v54 = vsel %vm1540_vm6, %v1476_v45, %v1604_v49  ;;  %vm676_vm9 = vcmp.gt.f32.partialorder %v612_v19, 0.0  ;;  %v740_v10 = vmul.f32 0.1, %v612_v19  ;;  %v1411_v49 = vmul.f32 %v2522_v21, %v2492_v7  ;;  %v926_v7 = vld [vmem:[%s3540_s4 + $0xf0] sm:$0xff] }
  0xf3   :  { %1924 = vmatmul.msk.f32.gmra.mxu1 %vm97_vm1, %v925_v17  ;;  %1956 = vmatmul.msk.f32.gmra.mxu3 %vm97_vm1, %v957_v36  ;;  %3555 = vst [vmem:[#allocation11_spill] sm:$0xff] %v2795_v54  ;;  %v582_v43 = vadd.f32 %v2533_v29, %v514_v56  ;;  %v91_v56 = vld [vmem:[%s3539_s0 + $0x1f0] sm:$0xff]  ;;  %v1574_v36 = vmul.f32 0.1, %v1446_v0  ;;  %vm1510_vm12 = vcmp.gt.f32.partialorder %v1446_v0, 0.0  ;;  %v614_v54 = vadd.f32 %v2533_v29, %v546_v12 }
  0xf4   :  { %v1606_v18 = vmul.f32 0.1, %v1478_v5  ;;  %vm1542_vm14 = vcmp.gt.f32.partialorder %v1478_v5, 0.0  ;;  %v2846_v13 = vsel %vm1541_vm10, %v1477_v59, %v1605_v47 }
  0xf5   :  { %v2802_v55 = vpop.f32.mrf.mxu2  ;;  %v710_v31 = vmul.f32 0.1, %v582_v43  ;;  %vm646_vm15 = vcmp.gt.f32.partialorder %v582_v43, 0.0  ;;  %vm678_vm2 = vcmp.gt.f32.partialorder %v614_v54, 0.0 }
  0xf6   :  { %3557 = vst [vmem:[#allocation13_spill] sm:$0xff] %v2802_v55  ;;  %v2808_v45 = vpop.f32.mrf.mxu3  ;;  %v1447_v55 = vadd.f32 %v2548_v8, %v1379_v32  ;;  %v2856_v32 = vsel %vm1510_vm12, %v1446_v0, %v1574_v36  ;;  %v2870_v0 = vsel %vm1542_vm14, %v1478_v5, %v1606_v18 }
  0xf7   :  { %3558 = vst [vmem:[#allocation14_spill] sm:$0xff] %v2808_v45  ;;  %v2812_v17 = vpop.f32.mrf.mxu0  ;;  %v2831_v45 = vsel %vm1509_vm8, %v1445_v14, %v1573_v63  ;;  %v1479_v14 = vadd.f32 %v2548_v8, %v1411_v49  ;;  %v2852_v63 = vsel %vm677_vm13, %v613_v38, %v741_v6  ;;  %v1448_v49 = vadd.f32 %v2548_v8, %v1380_v9  ;;  %v959_v6 = vld [vmem:[%s3540_s4 + $0x1f8] sm:$0xff] }
  0xf8   :  { %3559 = vst [vmem:[#allocation15_spill] sm:$0xff] %v2812_v17  ;;  %v2822_v62 = vpop.f32.mrf.mxu1  ;;  %v958_v17 = vld [vmem:[%s3540_s4 + $0x1f0] sm:$0xff]  ;;  %vm1511_vm0 = vcmp.gt.f32.partialorder %v1447_v55, 0.0  ;;  %v1575_v12 = vmul.f32 0.1, %v1447_v55  ;;  %v2863_v47 = vsel %vm646_vm15, %v582_v43, %v710_v31  ;;  %v60_v31 = vld [vmem:[%s3539_s0 + $0xf8] sm:$0xff]  ;;  %v548_v43 = vmul.f32 %v2515_v20, %v2570_v53 }
  0xf9   :  { %3560 = vst [vmem:[#allocation16_spill] sm:$0xff] %v2822_v62  ;;  %v2837_v62 = vsel %vm676_vm9, %v612_v19, %v740_v10  ;;  %v2849_v19 = vsel %vm645_vm11, %v581_v27, %v709_v51  ;;  %v583_v10 = vadd.f32 %v2533_v29, %v515_v48  ;;  %v1412_v27 = vmul.f32 %v2522_v21, %v2526_v26  ;;  %v92_v26 = vld [vmem:[%s3539_s0 + $0x1f8] sm:$0xff] }
  0xfa   :  { %1860 = vmatmul.msk.f32.gmra.mxu0 %vm97_vm1, %v59_v3  ;;  %1892 = vmatmul.msk.f32.gmra.mxu2 %vm97_vm1, %v91_v56  ;;  %v742_v51 = vmul.f32 0.1, %v614_v54  ;;  %vm1543_vm3 = vcmp.gt.f32.partialorder %v1479_v14, 0.0  ;;  %v516_v3 = vmul.f32 %v2515_v20, %v2535_v33  ;;  %v1607_v18 = vmul.f32 0.1, %v1479_v14 }
  0xfb   :  { %1925 = vmatmul.msk.f32.gmra.mxu1 %vm97_vm1, %v926_v7  ;;  %1957 = vmatmul.msk.f32.gmra.mxu3 %vm97_vm1, %v958_v17  ;;  %v547_v17 = vmul.f32 %v2515_v20, %v2524_v25  ;;  %v1381_v25 = vmul.f32 %v2522_v21, %v2550_v41  ;;  %v711_v5 = vmul.f32 0.1, %v583_v10  ;;  %v1413_v33 = vmul.f32 %v2522_v21, %v2575_v58  ;;  %v927_v41 = vld [vmem:[%s3540_s4 + $0xf8] sm:$0xff] }
  0xfc   :  { %vm647_vm4 = vcmp.gt.f32.partialorder %v583_v10, 0.0  ;;  %v1576_v48 = vmul.f32 0.1, %v1448_v49  ;;  %v517_v53 = vmul.f32 %v2515_v20, %v2579_v61  ;;  %vm1512_vm5 = vcmp.gt.f32.partialorder %v1448_v49, 0.0 }
  0xfd   :  { %v2861_v59 = vpop.f32.mrf.mxu2  ;;  %v615_v7 = vadd.f32 %v2533_v29, %v547_v17  ;;  %v1480_v58 = vadd.f32 %v2548_v8, %v1412_v27  ;;  %v1382_v9 = vmul.f32 %v2522_v21, %v2587_v4  ;;  %v584_v17 = vadd.f32 %v2533_v29, %v516_v3 }
  0xfe   :  { %3561 = vst [vmem:[#allocation17_spill] sm:$0xff] %v2861_v59  ;;  %v2867_v38 = vpop.f32.mrf.mxu3  ;;  %v1449_v61 = vadd.f32 %v2548_v8, %v1381_v25  ;;  %v2914_v27 = vsel %vm647_vm4, %v583_v10, %v711_v5  ;;  %v616_v4 = vadd.f32 %v2533_v29, %v548_v43  ;;  %v2925_v3 = vsel %vm1512_vm5, %v1448_v49, %v1576_v48 }
  0xff   :  { %3562 = vst [vmem:[#allocation18_spill] sm:$0xff] %v2867_v38  ;;  %v2876_v56 = vpop.f32.mrf.mxu0  ;;  %vm679_vm6 = vcmp.gt.f32.partialorder %v615_v7, 0.0  ;;  %vm1544_vm7 = vcmp.gt.f32.partialorder %v1480_v58, 0.0  ;;  %v1608_v25 = vmul.f32 0.1, %v1480_v58  ;;  %v1450_v10 = vadd.f32 %v2548_v8, %v1382_v9 }
 0x100   :  { %3563 = vst [vmem:[#allocation19_spill] sm:$0xff] %v2876_v56  ;;  %v2888_v36 = vpop.f32.mrf.mxu1  ;;  %v2908_v56 = vsel %vm678_vm2, %v614_v54, %v742_v51  ;;  %v743_v54 = vmul.f32 0.1, %v615_v7  ;;  %vm1513_vm8 = vcmp.gt.f32.partialorder %v1449_v61, 0.0  ;;  %vm680_vm9 = vcmp.gt.f32.partialorder %v616_v4, 0.0 }
 0x101   :  { %3564 = vst [vmem:[#allocation20_spill] sm:$0xff] %v2888_v36  ;;  %v2905_v36 = vsel %vm1511_vm0, %v1447_v55, %v1575_v12  ;;  %v2919_v55 = vsel %vm1543_vm3, %v1479_v14, %v1607_v18  ;;  %v585_v12 = vadd.f32 %v2533_v29, %v517_v53  ;;  %v712_v14 = vmul.f32 0.1, %v584_v17 }
 0x102   :  { %1861 = vmatmul.msk.f32.gmra.mxu0 %vm97_vm1, %v60_v31  ;;  %1893 = vmatmul.msk.f32.gmra.mxu2 %vm97_vm1, %v92_v26  ;;  %v1481_v31 = vadd.f32 %v2548_v8, %v1413_v33  ;;  %3566 = vst [vmem:[#allocation22_spill] sm:$0xff] %v2925_v3  ;;  %v549_v26 = vmul.f32 %v2515_v20, %v2615_v50  ;;  %v1577_v18 = vmul.f32 0.1, %v1449_v61  ;;  %v744_v33 = vmul.f32 0.1, %v616_v4 }
 0x103   :  { %1926 = vmatmul.msk.f32.gmra.mxu1 %vm97_vm1, %v927_v41  ;;  %1958 = vmatmul.msk.f32.gmra.mxu3 %vm97_vm1, %v959_v6  ;;  %vm648_vm1 = vcmp.gt.f32.partialorder %v584_v17, 0.0  ;;  %v713_v48 = vmul.f32 0.1, %v585_v12  ;;  %v1414_v53 = vmul.f32 %v2522_v21, %v2621_v24  ;;  %vm649_vm11 = vcmp.gt.f32.partialorder %v585_v12, 0.0 }
 0x104   :  { %vm1545_vm10 = vcmp.gt.f32.partialorder %v1481_v31, 0.0  ;;  %v1609_v6 = vmul.f32 0.1, %v1481_v31  ;;  %v1578_v9 = vmul.f32 0.1, %v1450_v10  ;;  %v2939_v38 = vsel %vm679_vm6, %v615_v7, %v743_v54 }
 0x105   :  { %v2922_v51 = vpop.f32.mrf.mxu2  ;;  %vm1514_vm12 = vcmp.gt.f32.partialorder %v1450_v10, 0.0  ;;  %v2943_v59 = vsel %vm1544_vm7, %v1480_v58, %v1608_v25  ;;  %v2946_v3 = vsel %vm648_vm1, %v584_v17, %v712_v14  ;;  %v2949_v24 = vsel %vm680_vm9, %v616_v4, %v744_v33 }
 0x106   :  { %3565 = vst [vmem:[#allocation21_spill] sm:$0xff] %v2922_v51  ;;  %v2930_v5 = vpop.f32.mrf.mxu3  ;;  %v2956_v7 = vsel %vm649_vm11, %v585_v12, %v713_v48  ;;  %v2959_v54 = vadd.f32 %v2548_v8, %v1414_v53  ;;  %v1383_v58 = vmul.f32 %v2522_v21, %v2639_v2  ;;  %v2964_v17 = vsel %vm1545_vm10, %v1481_v31, %v1609_v6 }
 0x107   :  { %3567 = vst [vmem:[#allocation23_spill] sm:$0xff] %v2930_v5  ;;  %v359_v43 = vpop.f32.mrf.mxu0  ;;  %v617_v5 = vadd.f32 %v2533_v29, %v549_v26  ;;  %v518_v26 = vmul.f32 %v2515_v20, %v2627_v15  ;;  %vm879_vm5 = vcmask 130048  }
 0x108   :  { %v523_v49 = vmul.f32 %v2515_v20, %v359_v43  ;;  %v1224_v41 = vpop.f32.mrf.mxu1  ;;  %3568 = vst [vmem:[#allocation24_spill] sm:$0xff] %v2949_v24  ;;  %vm1546_vm0 = vcmp.gt.f32.partialorder %v2959_v54, 0.0  ;;  %v1610_v53 = vmul.f32 0.1, %v2959_v54 }
 0x109   :  { %v1388_v50 = vmul.f32 %v2522_v21, %v1224_v41  ;;  %3570 = vst [vmem:[#allocation26_spill] sm:$0xff] %v2956_v7  ;;  %vm681_vm13 = vcmp.gt.f32.partialorder %v617_v5, 0.0  ;;  %v745_v12 = vmul.f32 0.1, %v617_v5  ;;  %v586_v2 = vadd.f32 %v2533_v29, %v518_v26 }
 0x10a   :  { %v591_v51 = vadd.f32 %v2533_v29, %v523_v49  ;;  %v2954_v49 = vsel %vm1513_vm8, %v1449_v61, %v1577_v18  ;;  %3571 = vst [vmem:[#allocation27_spill] sm:$0xff] %v2964_v17  ;;  %v2968_v61 = vsel %vm1514_vm12, %v1450_v10, %v1578_v9  ;;  %v2977_v10 = vadd.f32 %v2548_v8, %v1383_v58 }
 0x10b   :  { %v1456_v43 = vadd.f32 %v2548_v8, %v1388_v50  ;;  %3569 = vst [vmem:[#allocation25_spill] sm:$0xff] %v2954_v49  ;;  %v2984_v7 = vsel %vm681_vm13, %v617_v5, %v745_v12  ;;  %vm650_vm4 = vcmp.gt.f32.partialorder %v586_v2, 0.0  ;;  %v714_v58 = vmul.f32 0.1, %v586_v2 }
 0x10c   :  { %v719_v4 = vmul.f32 0.1, %v591_v51  ;;  %3572 = vst [vmem:[#allocation28_spill] sm:$0xff] %v2968_v61  ;;  %vm655_vm14 = vcmp.gt.f32.partialorder %v591_v51, 0.0  ;;  %vm1515_vm1 = vcmp.gt.f32.partialorder %v2977_v10, 0.0 }
 0x10d   :  { %v455_v25 = vpop.f32.mrf.mxu2  ;;  %v1584_v18 = vmul.f32 0.1, %v1456_v43  ;;  %vm1520_vm15 = vcmp.gt.f32.partialorder %v1456_v43, 0.0 }
 0x10e   :  { %v555_v14 = vmul.f32 %v2515_v20, %v455_v25  ;;  %v1320_v15 = vpop.f32.mrf.mxu3  ;;  %v783_v25 = vsel %vm655_vm14, %v591_v51, %v719_v4 }
 0x10f   :  { %v1420_v33 = vmul.f32 %v2522_v21, %v1320_v15  ;;  %v362_v41 = vpop.f32.mrf.mxu0  ;;  %v1648_v61 = vsel %vm1520_vm15, %v1456_v43, %v1584_v18 }
 0x110   :  { %v623_v48 = vadd.f32 %v2533_v29, %v555_v14  ;;  %v524_v31 = vmul.f32 %v2515_v20, %v362_v41  ;;  %v1227_v6 = vpop.f32.mrf.mxu1 }
 0x111   :  { %v1488_v50 = vadd.f32 %v2548_v8, %v1420_v33  ;;  %v1389_v9 = vmul.f32 %v2522_v21, %v1227_v6  ;;  %v831_v33 = vmax.f32 %v2606_v34, %v783_v25  ;;  %v1579_v25 = vmul.f32 0.1, %v2977_v10 }
 0x112   :  { %vm687_vm2 = vcmp.gt.f32.partialorder %v623_v48, 0.0  ;;  %v751_v26 = vmul.f32 0.1, %v623_v48  ;;  %v592_v14 = vadd.f32 %v2533_v29, %v524_v31 }
 0x113   :  { %v1616_v15 = vmul.f32 0.1, %v1488_v50  ;;  %v1457_v41 = vadd.f32 %v2548_v8, %v1389_v9  ;;  %vm1552_vm3 = vcmp.gt.f32.partialorder %v1488_v50, 0.0  ;;  %v1696_v9 = vmax.f32 %v2612_v37, %v1648_v61 }
 0x114   :  { %v815_v17 = vsel %vm687_vm2, %v623_v48, %v751_v26  ;;  %v720_v49 = vmul.f32 0.1, %v592_v14  ;;  %vm656_vm6 = vcmp.gt.f32.partialorder %v592_v14, 0.0 }
 0x115   :  { %v847_v6 = vmax.f32 %v2617_v52, %v815_v17  ;;  %v458_v51 = vpop.f32.mrf.mxu2  ;;  %v1680_v4 = vsel %vm1552_vm3, %v1488_v50, %v1616_v15  ;;  %v1585_v12 = vmul.f32 0.1, %v1457_v41  ;;  %vm1521_vm7 = vcmp.gt.f32.partialorder %v1457_v41, 0.0 }
 0x116   :  { %v556_v31 = vmul.f32 %v2515_v20, %v458_v51  ;;  %v1323_v24 = vpop.f32.mrf.mxu3  ;;  %v1712_v43 = vmax.f32 %v2653_v23, %v1680_v4  ;;  %v3007_v51 = vsel %vm650_vm4, %v586_v2, %v714_v58  ;;  %v550_v4 = vmul.f32 %v2515_v20, %v2674_v28  ;;  %v3574_v28 = vld [vmem:[#allocation2_spill] sm:$0xff] }
 0x117   :  { %v863_v5 = vmax.f32 %v831_v33, %v847_v6  ;;  %v1421_v18 = vmul.f32 %v2522_v21, %v1323_v24  ;;  %v365_v48 = vpop.f32.mrf.mxu0  ;;  %v784_v24 = vsel %vm656_vm6, %v592_v14, %v720_v49  ;;  %v1649_v6 = vsel %vm1521_vm7, %v1457_v41, %v1585_v12 }
 0x118   :  { %v624_v34 = vadd.f32 %v2533_v29, %v556_v31  ;;  %v525_v52 = vmul.f32 %v2515_v20, %v365_v48  ;;  %v1230_v17 = vpop.f32.mrf.mxu1  ;;  %v1728_v50 = vmax.f32 %v1696_v9, %v1712_v43  ;;  %v3014_v14 = vsel %vm1546_vm0, %v2959_v54, %v1610_v53  ;;  %v3573_v43 = vld [vmem:[#allocation3_spill] sm:$0xff] }
 0x119   :  { %v1489_v37 = vadd.f32 %v2548_v8, %v1421_v18  ;;  %v1390_v23 = vmul.f32 %v2522_v21, %v1230_v17  ;;  %880 = vst.msk [vmem:[%s3545_s8] sm:$0xff] %vm879_vm5, %v863_v5  ;;  %v1415_v31 = vmul.f32 %v2522_v21, %v2682_v30  ;;  %v832_v9 = vmax.f32 %v2648_v22, %v784_v24 }
 0x11a   :  { %vm688_vm8 = vcmp.gt.f32.partialorder %v624_v34, 0.0  ;;  %v752_v61 = vmul.f32 0.1, %v624_v34  ;;  %v593_v26 = vadd.f32 %v2533_v29, %v525_v52  ;;  %1760 = vrot.lane.b32.xlu0 %v1728_v50, %s1976_s21  ;;  %v1697_v48 = vmax.f32 %v3574_v28, %v1649_v6 }
 0x11b   :  { %vm1553_vm9 = vcmp.gt.f32.partialorder %v1489_v37, 0.0  ;;  %v1617_v15 = vmul.f32 0.1, %v1489_v37  ;;  %v1458_v33 = vadd.f32 %v2548_v8, %v1390_v23  ;;  %v618_v24 = vadd.f32 %v2533_v29, %v550_v4 }
 0x11c   :  { %v816_v49 = vsel %vm688_vm8, %v624_v34, %v752_v61  ;;  %v721_v2 = vmul.f32 0.1, %v593_v26  ;;  %v3575_v34 = vld [vmem:[#allocation4_spill] sm:$0xff]  ;;  %vm657_vm10 = vcmp.gt.f32.partialorder %v593_v26, 0.0  ;;  %v3032_v6 = vsel %vm1515_vm1, %v2977_v10, %v1579_v25  ;;  %v3576_v25 = vld [vmem:[#allocation5_spill] sm:$0xff] }
 0x11d   :  { %v848_v5 = vmax.f32 %v3573_v43, %v816_v49  ;;  %v461_v41 = vpop.f32.mrf.mxu2  ;;  %v1681_v12 = vsel %vm1553_vm9, %v1489_v37, %v1617_v15  ;;  %v1586_v54 = vmul.f32 0.1, %v1458_v33  ;;  %vm1522_vm11 = vcmp.gt.f32.partialorder %v1458_v33, 0.0 }
 0x11e   :  { %v557_v58 = vmul.f32 %v2515_v20, %v461_v41  ;;  %v1326_v18 = vpop.f32.mrf.mxu3  ;;  %v1713_v52 = vmax.f32 %v3575_v34, %v1681_v12  ;;  %v785_v49 = vsel %vm657_vm10, %v593_v26, %v721_v2  ;;  %v3042_v10 = vadd.f32 %v2548_v8, %v1415_v31 }
 0x11f   :  { %v864_v17 = vmax.f32 %v832_v9, %v848_v5  ;;  %v1422_v53 = vmul.f32 %v2522_v21, %v1326_v18  ;;  %v368_v30 = vpop.f32.mrf.mxu0  ;;  %v1650_v41 = vsel %vm1522_vm11, %v1458_v33, %v1586_v54  ;;  %v519_v12 = vmul.f32 %v2515_v20, %v3576_v25  ;;  %v3578_v18 = vld [vmem:[#allocation6_spill] sm:$0xff] }
 0x120   :  { %v625_v22 = vadd.f32 %v2533_v29, %v557_v58  ;;  %v526_v50 = vmul.f32 %v2515_v20, %v368_v30  ;;  %v1233_v23 = vpop.f32.mrf.mxu1  ;;  %v1729_v37 = vmax.f32 %v1697_v48, %v1713_v52  ;;  %v3577_v58 = vld [vmem:[#allocation7_spill] sm:$0xff]  ;;  %vm682_vm14 = vcmp.gt.f32.partialorder %v618_v24, 0.0 }
 0x121   :  { %v1490_v61 = vadd.f32 %v2548_v8, %v1422_v53  ;;  %v1391_v15 = vmul.f32 %v2522_v21, %v1233_v23  ;;  %881 = vst.msk [vmem:[%s3545_s8 + $0x8] sm:$0xff] %vm879_vm5, %v864_v17  ;;  %v1384_v26 = vmul.f32 %v2522_v21, %v3577_v58  ;;  %v833_v28 = vmax.f32 %v3578_v18, %v785_v49 }
 0x122   :  { %vm689_vm12 = vcmp.gt.f32.partialorder %v625_v22, 0.0  ;;  %v753_v9 = vmul.f32 0.1, %v625_v22  ;;  %v594_v43 = vadd.f32 %v2533_v29, %v526_v50  ;;  %1762 = vrot.lane.b32.xlu0 %v1729_v37, %s1976_s21  ;;  %v1698_v31 = vmax.f32 %v2714_v46, %v1650_v41 }
 0x123   :  { %v1618_v4 = vmul.f32 0.1, %v1490_v61  ;;  %v1459_v5 = vadd.f32 %v2548_v8, %v1391_v15  ;;  %vm1554_vm13 = vcmp.gt.f32.partialorder %v1490_v61, 0.0  ;;  %v746_v49 = vmul.f32 0.1, %v618_v24 }
 0x124   :  { %v817_v2 = vsel %vm689_vm12, %v625_v22, %v753_v9  ;;  %v722_v17 = vmul.f32 0.1, %v594_v43  ;;  %vm658_vm15 = vcmp.gt.f32.partialorder %v594_v43, 0.0  ;;  %v3057_v9 = vadd.f32 %v2533_v29, %v519_v12 }
 0x125   :  { %v849_v48 = vmax.f32 %v2717_v44, %v817_v2  ;;  %v464_v34 = vpop.f32.mrf.mxu2  ;;  %v1682_v52 = vsel %vm1554_vm13, %v1490_v61, %v1618_v4  ;;  %v1587_v50 = vmul.f32 0.1, %v1459_v5  ;;  %vm1523_vm0 = vcmp.gt.f32.partialorder %v1459_v5, 0.0 }
 0x126   :  { %v558_v33 = vmul.f32 %v2515_v20, %v464_v34  ;;  %v1329_v54 = vpop.f32.mrf.mxu3  ;;  %v1714_v53 = vmax.f32 %v2729_v1, %v1682_v52  ;;  %v786_v4 = vsel %vm658_vm15, %v594_v43, %v722_v17  ;;  %vm1547_vm4 = vcmp.gt.f32.partialorder %v3042_v10, 0.0 }
 0x127   :  { %v865_v30 = vmax.f32 %v833_v28, %v849_v48  ;;  %v1423_v22 = vmul.f32 %v2522_v21, %v1329_v54  ;;  %v371_v23 = vpop.f32.mrf.mxu0  ;;  %v1651_v2 = vsel %vm1523_vm0, %v1459_v5, %v1587_v50  ;;  %v1611_v18 = vmul.f32 0.1, %v3042_v10 }
 0x128   :  { %v626_v37 = vadd.f32 %v2533_v29, %v558_v33  ;;  %v527_v44 = vmul.f32 %v2515_v20, %v371_v23  ;;  %v1236_v61 = vpop.f32.mrf.mxu1  ;;  %v1730_v15 = vmax.f32 %v1698_v31, %v1714_v53  ;;  %v3072_v28 = vadd.f32 %v2548_v8, %v1384_v26 }
 0x129   :  { %v1491_v46 = vadd.f32 %v2548_v8, %v1423_v22  ;;  %v1392_v1 = vmul.f32 %v2522_v21, %v1236_v61  ;;  %882 = vst.msk [vmem:[%s3545_s8 + $0x10] sm:$0xff] %vm879_vm5, %v865_v30  ;;  %v3075_v48 = vsel %vm682_vm14, %v618_v24, %v746_v49  ;;  %v834_v34 = vmax.f32 %v2725_v60, %v786_v4 }
 0x12a   :  { %vm690_vm2 = vcmp.gt.f32.partialorder %v626_v37, 0.0  ;;  %v754_v41 = vmul.f32 0.1, %v626_v37  ;;  %v595_v25 = vadd.f32 %v2533_v29, %v527_v44  ;;  %1764 = vrot.lane.b32.xlu1 %v1730_v15, %s1976_s21  ;;  %v1699_v53 = vmax.f32 %v2732_v35, %v1651_v2 }
 0x12b   :  { %vm1555_vm3 = vcmp.gt.f32.partialorder %v1491_v46, 0.0  ;;  %v1619_v58 = vmul.f32 0.1, %v1491_v46  ;;  %v1460_v12 = vadd.f32 %v2548_v8, %v1392_v1  ;;  %vm651_vm1 = vcmp.gt.f32.partialorder %v3057_v9, 0.0 }
 0x12c   :  { %v818_v43 = vsel %vm690_vm2, %v626_v37, %v754_v41  ;;  %v723_v54 = vmul.f32 0.1, %v595_v25  ;;  %vm659_vm6 = vcmp.gt.f32.partialorder %v595_v25, 0.0  ;;  %v715_v44 = vmul.f32 0.1, %v3057_v9 }
 0x12d   :  { %v850_v52 = vmax.f32 %v2735_v42, %v818_v43  ;;  %v467_v17 = vpop.f32.mrf.mxu2  ;;  %v1683_v33 = vsel %vm1555_vm3, %v1491_v46, %v1619_v58  ;;  %v1588_v50 = vmul.f32 0.1, %v1460_v12  ;;  %vm1524_vm7 = vcmp.gt.f32.partialorder %v1460_v12, 0.0 }
 0x12e   :  { %v559_v5 = vmul.f32 %v2515_v20, %v467_v17  ;;  %v1332_v31 = vpop.f32.mrf.mxu3  ;;  %v1715_v30 = vmax.f32 %v2747_v57, %v1683_v33  ;;  %v787_v61 = vsel %vm659_vm6, %v595_v25, %v723_v54  ;;  %vm1516_vm10 = vcmp.gt.f32.partialorder %v3072_v28, 0.0 }
 0x12f   :  { %v866_v26 = vmax.f32 %v834_v34, %v850_v52  ;;  %v1424_v24 = vmul.f32 %v2522_v21, %v1332_v31  ;;  %v374_v22 = vpop.f32.mrf.mxu0  ;;  %v1652_v4 = vsel %vm1524_vm7, %v1460_v12, %v1588_v50  ;;  %v1580_v41 = vmul.f32 0.1, %v3072_v28  ;;  %v3579_v31 = vld [vmem:[#allocation11_spill] sm:$0xff] }
 0x130   :  { %v627_v60 = vadd.f32 %v2533_v29, %v559_v5  ;;  %v528_v42 = vmul.f32 %v2515_v20, %v374_v22  ;;  %v1239_v23 = vpop.f32.mrf.mxu1  ;;  %v1731_v37 = vmax.f32 %v1699_v53, %v1715_v30  ;;  %v3101_v25 = vsel %vm1547_vm4, %v3042_v10, %v1611_v18 }
 0x131   :  { %v1492_v35 = vadd.f32 %v2548_v8, %v1424_v24  ;;  %v1393_v57 = vmul.f32 %v2522_v21, %v1239_v23  ;;  %883 = vst.msk [vmem:[%s3545_s8 + $0x18] sm:$0xff] %vm879_vm5, %v866_v26  ;;  %v551_v2 = vmul.f32 %v2515_v20, %v2740_v40  ;;  %v835_v43 = vmax.f32 %v2773_v39, %v787_v61  ;;  %v3140_v23 = vld [vmem:[%s3542_s3] ss:$0 sm:$0xff] }
 0x132   :  { %vm691_vm8 = vcmp.gt.f32.partialorder %v627_v60, 0.0  ;;  %v755_v15 = vmul.f32 0.1, %v627_v60  ;;  %v596_v49 = vadd.f32 %v2533_v29, %v528_v42  ;;  %1766 = vrot.lane.b32.xlu1 %v1731_v37, %s1976_s21  ;;  %v1700_v5 = vmax.f32 %v2790_v11, %v1652_v4 }
 0x133   :  { %v1620_v46 = vmul.f32 0.1, %v1492_v35  ;;  %v1461_v1 = vadd.f32 %v2548_v8, %v1393_v57  ;;  %vm1556_vm9 = vcmp.gt.f32.partialorder %v1492_v35, 0.0  ;;  %v3121_v50 = vsel %vm651_vm1, %v3057_v9, %v715_v44  ;;  %v3147_v44 = vld [vmem:[%s3544_s7] ss:$0 sm:$0xff] }
 0x134   :  { %v819_v58 = vsel %vm691_vm8, %v627_v60, %v755_v15  ;;  %v724_v12 = vmul.f32 0.1, %v596_v49  ;;  %vm660_vm11 = vcmp.gt.f32.partialorder %v596_v49, 0.0  ;;  %v3152_v61 = vadd.f32 %v3140_v23, %v551_v2  ;;  %v3581_v15 = vld [vmem:[#allocation9_spill] sm:$0xff] }
 0x135   :  { %v851_v34 = vmax.f32 %v2784_v16, %v819_v58  ;;  %v470_v52 = vpop.f32.mrf.mxu2  ;;  %v1684_v17 = vsel %vm1556_vm9, %v1492_v35, %v1620_v46  ;;  %v1589_v10 = vmul.f32 0.1, %v1461_v1  ;;  %vm1525_vm12 = vcmp.gt.f32.partialorder %v1461_v1, 0.0  ;;  %v3115_v16 = vld [vmem:[%s3541_s2] ss:$0 sm:$0xff] }
 0x136   :  { %v560_v33 = vmul.f32 %v2515_v20, %v470_v52  ;;  %v1335_v54 = vpop.f32.mrf.mxu3  ;;  %v1716_v53 = vmax.f32 %v3579_v31, %v1684_v17  ;;  %v788_v9 = vsel %vm660_vm11, %v596_v49, %v724_v12  ;;  %v520_v49 = vmul.f32 %v3115_v16, %v3581_v15 }
 0x137   :  { %v867_v30 = vmax.f32 %v835_v43, %v851_v34  ;;  %v1425_v18 = vmul.f32 %v2522_v21, %v1335_v54  ;;  %v377_v40 = vpop.f32.mrf.mxu0  ;;  %v3126_v21 = vld [vmem:[%s3543_s6] ss:$0 sm:$0xff]  ;;  %v1653_v57 = vsel %vm1525_vm12, %v1461_v1, %v1589_v10  ;;  %v3159_v4 = vsel %vm1516_vm10, %v3072_v28, %v1580_v41  ;;  %v3582_v43 = vld [vmem:[#allocation12_spill] sm:$0xff] }
 0x138   :  { %v628_v39 = vadd.f32 %v2533_v29, %v560_v33  ;;  %v529_v20 = vmul.f32 %v3115_v16, %v377_v40  ;;  %v1242_v26 = vpop.f32.mrf.mxu1  ;;  %v1732_v11 = vmax.f32 %v1700_v5, %v1716_v53  ;;  %v3580_v29 = vld [vmem:[#allocation8_spill] sm:$0xff]  ;;  %v836_v34 = vmax.f32 %v3582_v43, %v788_v9  ;;  %v3583_v40 = vld [vmem:[#allocation10_spill] sm:$0xff] }
 0x139   :  { %v1416_v24 = vmul.f32 %v3126_v21, %v3580_v29  ;;  %v1493_v22 = vadd.f32 %v2548_v8, %v1425_v18  ;;  %v1394_v60 = vmul.f32 %v3126_v21, %v1242_v26  ;;  %884 = vst.msk [vmem:[%s3545_s8 + $0x20] sm:$0xff] %vm879_vm5, %v867_v30  ;;  %v1701_v54 = vmax.f32 %v2831_v45, %v1653_v57 }
 0x13a   :  { %vm692_vm13 = vcmp.gt.f32.partialorder %v628_v39, 0.0  ;;  %v756_v42 = vmul.f32 0.1, %v628_v39  ;;  %v597_v37 = vadd.f32 %v3140_v23, %v529_v20  ;;  %1768 = vrot.lane.b32.xlu2 %v1732_v11, %s1976_s21  ;;  %vm683_vm2 = vcmp.gt.f32.partialorder %v3152_v61, 0.0 }
 0x13b   :  { %vm1557_vm14 = vcmp.gt.f32.partialorder %v1493_v22, 0.0  ;;  %v1621_v8 = vmul.f32 0.1, %v1493_v22  ;;  %v1462_v35 = vadd.f32 %v3147_v44, %v1394_v60  ;;  %v3162_v58 = vadd.f32 %v3147_v44, %v1416_v24 }
 0x13c   :  { %v820_v46 = vsel %vm692_vm13, %v628_v39, %v756_v42  ;;  %v725_v2 = vmul.f32 0.1, %v597_v37  ;;  %vm661_vm15 = vcmp.gt.f32.partialorder %v597_v37, 0.0  ;;  %v1385_v45 = vmul.f32 %v3126_v21, %v3583_v40 }
 0x13d   :  { %v852_v52 = vmax.f32 %v2837_v62, %v820_v46  ;;  %v473_v1 = vpop.f32.mrf.mxu2  ;;  %v1685_v17 = vsel %vm1557_vm14, %v1493_v22, %v1621_v8  ;;  %v1590_v28 = vmul.f32 0.1, %v1462_v35  ;;  %vm1526_vm0 = vcmp.gt.f32.partialorder %v1462_v35, 0.0 }
 0x13e   :  { %v561_v12 = vmul.f32 %v3115_v16, %v473_v1  ;;  %v1338_v33 = vpop.f32.mrf.mxu3  ;;  %v1717_v5 = vmax.f32 %v2846_v13, %v1685_v17  ;;  %v789_v20 = vsel %vm661_vm15, %v597_v37, %v725_v2  ;;  %v747_v60 = vmul.f32 0.1, %v3152_v61 }
 0x13f   :  { %v868_v31 = vmax.f32 %v836_v34, %v852_v52  ;;  %v1426_v41 = vmul.f32 %v3126_v21, %v1338_v33  ;;  %v380_v53 = vpop.f32.mrf.mxu0  ;;  %v1654_v22 = vsel %vm1526_vm0, %v1462_v35, %v1590_v28  ;;  %v3187_v9 = vmul.f32 0.1, %v3162_v58 }
 0x140   :  { %v629_v30 = vadd.f32 %v3140_v23, %v561_v12  ;;  %v530_v62 = vmul.f32 %v3115_v16, %v380_v53  ;;  %v1245_v10 = vpop.f32.mrf.mxu1  ;;  %v1733_v18 = vmax.f32 %v1701_v54, %v1717_v5  ;;  %v588_v42 = vadd.f32 %v3140_v23, %v520_v49 }
 0x141   :  { %v1494_v13 = vadd.f32 %v3147_v44, %v1426_v41  ;;  %v1395_v39 = vmul.f32 %v3126_v21, %v1245_v10  ;;  %885 = vst.msk [vmem:[%s3545_s8 + $0x28] sm:$0xff] %vm879_vm5, %v868_v31  ;;  %v3191_v8 = vadd.f32 %v3147_v44, %v1385_v45  ;;  %v837_v57 = vmax.f32 %v2849_v19, %v789_v20  ;;  %v3584_v45 = vld [vmem:[#allocation13_spill] sm:$0xff] }
 0x142   :  { %vm693_vm3 = vcmp.gt.f32.partialorder %v629_v30, 0.0  ;;  %v757_v26 = vmul.f32 0.1, %v629_v30  ;;  %v598_v11 = vadd.f32 %v3140_v23, %v530_v62  ;;  %1770 = vrot.lane.b32.xlu2 %v1733_v18, %s1976_s21  ;;  %vm1548_vm6 = vcmp.gt.f32.partialorder %v3162_v58, 0.0 }
 0x143   :  { %vm1558_vm4 = vcmp.gt.f32.partialorder %v1494_v13, 0.0  ;;  %v1622_v29 = vmul.f32 0.1, %v1494_v13  ;;  %v1463_v24 = vadd.f32 %v3147_v44, %v1395_v39  ;;  %v1702_v1 = vmax.f32 %v2856_v32, %v1654_v22 }
 0x144   :  { %v821_v37 = vsel %vm693_vm3, %v629_v30, %v757_v26  ;;  %v726_v35 = vmul.f32 0.1, %v598_v11  ;;  %vm662_vm7 = vcmp.gt.f32.partialorder %v598_v11, 0.0  ;;  %v3205_v31 = vsel %vm683_vm2, %v3152_v61, %v747_v60 }
 0x145   :  { %v853_v15 = vmax.f32 %v2852_v63, %v821_v37  ;;  %v476_v46 = vpop.f32.mrf.mxu2  ;;  %v1686_v43 = vsel %vm1558_vm4, %v1494_v13, %v1622_v29  ;;  %v1591_v2 = vmul.f32 0.1, %v1463_v24  ;;  %vm1527_vm1 = vcmp.gt.f32.partialorder %v1463_v24, 0.0 }
 0x146   :  { %v562_v34 = vmul.f32 %v3115_v16, %v476_v46  ;;  %v1341_v52 = vpop.f32.mrf.mxu3  ;;  %v1718_v49 = vmax.f32 %v2870_v0, %v1686_v43  ;;  %vm652_vm8 = vcmp.gt.f32.partialorder %v588_v42, 0.0  ;;  %v790_v28 = vsel %vm662_vm7, %v598_v11, %v726_v35 }
 0x147   :  { %v869_v17 = vmax.f32 %v837_v57, %v853_v15  ;;  %v1427_v12 = vmul.f32 %v3126_v21, %v1341_v52  ;;  %v383_v19 = vpop.f32.mrf.mxu0  ;;  %v1655_v62 = vsel %vm1527_vm1, %v1463_v24, %v1591_v2  ;;  %v716_v10 = vmul.f32 0.1, %v588_v42 }
 0x148   :  { %v630_v63 = vadd.f32 %v3140_v23, %v562_v34  ;;  %v531_v33 = vmul.f32 %v3115_v16, %v383_v19  ;;  %v1248_v54 = vpop.f32.mrf.mxu1  ;;  %v1734_v5 = vmax.f32 %v1702_v1, %v1718_v49  ;;  %vm1517_vm11 = vcmp.gt.f32.partialorder %v3191_v8, 0.0 }
 0x149   :  { %v1495_v32 = vadd.f32 %v3147_v44, %v1427_v12  ;;  %v1396_v0 = vmul.f32 %v3126_v21, %v1248_v54  ;;  %886 = vst.msk [vmem:[%s3545_s8 + $0x30] sm:$0xff] %vm879_vm5, %v869_v17  ;;  %v1581_v18 = vmul.f32 0.1, %v3191_v8  ;;  %v552_v13 = vmul.f32 %v3115_v16, %v3584_v45 }
 0x14a   :  { %vm694_vm9 = vcmp.gt.f32.partialorder %v630_v63, 0.0  ;;  %v758_v41 = vmul.f32 0.1, %v630_v63  ;;  %v599_v53 = vadd.f32 %v3140_v23, %v531_v33  ;;  %1772 = vrot.lane.b32.xlu0 %v1734_v5, %s1976_s21  ;;  %v838_v39 = vmax.f32 %v2863_v47, %v790_v28  ;;  %v3586_v5 = vld [vmem:[#allocation15_spill] sm:$0xff] }
 0x14b   :  { %vm1559_vm10 = vcmp.gt.f32.partialorder %v1495_v32, 0.0  ;;  %v1623_v61 = vmul.f32 0.1, %v1495_v32  ;;  %v1464_v30 = vadd.f32 %v3147_v44, %v1396_v0  ;;  %v1703_v24 = vmax.f32 %v2905_v36, %v1655_v62 }
 0x14c   :  { %v822_v40 = vsel %vm694_vm9, %v630_v63, %v758_v41  ;;  %v727_v29 = vmul.f32 0.1, %v599_v53  ;;  %vm663_vm12 = vcmp.gt.f32.partialorder %v599_v53, 0.0  ;;  %v3230_v52 = vsel %vm652_vm8, %v588_v42, %v716_v10  ;;  %v3587_v10 = vld [vmem:[#allocation22_spill] sm:$0xff] }
 0x14d   :  { %v854_v20 = vmax.f32 %v2908_v56, %v822_v40  ;;  %v479_v26 = vpop.f32.mrf.mxu2  ;;  %v1687_v11 = vsel %vm1559_vm10, %v1495_v32, %v1623_v61  ;;  %v1592_v15 = vmul.f32 0.1, %v1464_v30  ;;  %vm1528_vm13 = vcmp.gt.f32.partialorder %v1464_v30, 0.0 }
 0x14e   :  { %v563_v22 = vmul.f32 %v3115_v16, %v479_v26  ;;  %v1344_v60 = vpop.f32.mrf.mxu3  ;;  %v1719_v37 = vmax.f32 %v2919_v55, %v1687_v11  ;;  %v3238_v1 = vsel %vm1548_vm6, %v3162_v58, %v3187_v9  ;;  %v791_v49 = vsel %vm663_vm12, %v599_v53, %v727_v29  ;;  %v3585_v9 = vld [vmem:[#allocation14_spill] sm:$0xff]  ;;  %v3588_v29 = vld [vmem:[#allocation16_spill] sm:$0xff] }
 0x14f   :  { %v870_v57 = vmax.f32 %v838_v39, %v854_v20  ;;  %v1428_v46 = vmul.f32 %v3126_v21, %v1344_v60  ;;  %v386_v43 = vpop.f32.mrf.mxu0  ;;  %v1656_v19 = vsel %vm1528_vm13, %v1464_v30, %v1592_v15  ;;  %v3249_v58 = vadd.f32 %v3140_v23, %v552_v13 }
 0x150   :  { %v631_v47 = vadd.f32 %v3140_v23, %v563_v22  ;;  %v532_v56 = vmul.f32 %v3115_v16, %v386_v43  ;;  %v1251_v35 = vpop.f32.mrf.mxu1  ;;  %v1735_v34 = vmax.f32 %v1703_v24, %v1719_v37  ;;  %v1417_v63 = vmul.f32 %v3126_v21, %v3585_v9  ;;  %v3590_v9 = vld [vmem:[#allocation25_spill] sm:$0xff] }
 0x151   :  { %v1496_v36 = vadd.f32 %v3147_v44, %v1428_v46  ;;  %v1397_v55 = vmul.f32 %v3126_v21, %v1251_v35  ;;  %887 = vst.msk [vmem:[%s3545_s8 + $0x38] sm:$0xff] %vm879_vm5, %v870_v57  ;;  %v3256_v54 = vsel %vm1517_vm11, %v3191_v8, %v1581_v18  ;;  %v521_v32 = vmul.f32 %v3115_v16, %v3586_v5 }
 0x152   :  { %vm695_vm14 = vcmp.gt.f32.partialorder %v631_v47, 0.0  ;;  %v759_v17 = vmul.f32 0.1, %v631_v47  ;;  %v600_v42 = vadd.f32 %v3140_v23, %v532_v56  ;;  %1774 = vrot.lane.b32.xlu1 %v1735_v34, %s1976_s21  ;;  %v839_v0 = vmax.f32 %v2914_v27, %v791_v49 }
 0x153   :  { %vm1560_vm15 = vcmp.gt.f32.partialorder %v1496_v36, 0.0  ;;  %v1624_v2 = vmul.f32 0.1, %v1496_v36  ;;  %v1465_v12 = vadd.f32 %v3147_v44, %v1397_v55  ;;  %v1704_v40 = vmax.f32 %v3587_v10, %v1656_v19  ;;  %v3589_v55 = vld [vmem:[#allocation24_spill] sm:$0xff] }
 0x154   :  { %v823_v33 = vsel %vm695_vm14, %v631_v47, %v759_v17  ;;  %v728_v61 = vmul.f32 0.1, %v600_v42  ;;  %vm664_vm0 = vcmp.gt.f32.partialorder %v600_v42, 0.0  ;;  %v3269_v11 = vadd.f32 %v3147_v44, %v1417_v63 }
 0x155   :  { %v855_v28 = vmax.f32 %v2939_v38, %v823_v33  ;;  %v482_v41 = vpop.f32.mrf.mxu2  ;;  %v1688_v53 = vsel %vm1560_vm15, %v1496_v36, %v1624_v2  ;;  %v1593_v8 = vmul.f32 0.1, %v1465_v12  ;;  %vm1529_vm2 = vcmp.gt.f32.partialorder %v1465_v12, 0.0  ;;  %v3591_v33 = vld [vmem:[#allocation27_spill] sm:$0xff] }
 0x156   :  { %v564_v30 = vmul.f32 %v3115_v16, %v482_v41  ;;  %v1347_v62 = vpop.f32.mrf.mxu3  ;;  %v1720_v45 = vmax.f32 %v2943_v59, %v1688_v53  ;;  %v1386_v22 = vmul.f32 %v3126_v21, %v3588_v29  ;;  %v792_v24 = vsel %vm664_vm0, %v600_v42, %v728_v61  ;;  %v3592_v29 = vld [vmem:[#allocation26_spill] sm:$0xff] }
 0x157   :  { %v871_v13 = vmax.f32 %v839_v0, %v855_v28  ;;  %v1429_v18 = vmul.f32 %v3126_v21, %v1347_v62  ;;  %v389_v39 = vpop.f32.mrf.mxu0  ;;  %v1657_v43 = vsel %vm1529_vm2, %v1465_v12, %v1593_v8  ;;  %vm684_vm6 = vcmp.gt.f32.partialorder %v3249_v58, 0.0 }
 0x158   :  { %v632_v27 = vadd.f32 %v3140_v23, %v564_v30  ;;  %v533_v38 = vmul.f32 %v3115_v16, %v389_v39  ;;  %v1254_v20 = vpop.f32.mrf.mxu1  ;;  %v1736_v26 = vmax.f32 %v1704_v40, %v1720_v45  ;;  %v748_v47 = vmul.f32 0.1, %v3249_v58 }
 0x159   :  { %v1497_v59 = vadd.f32 %v3147_v44, %v1429_v18  ;;  %v1398_v60 = vmul.f32 %v3126_v21, %v1254_v20  ;;  %888 = vst.msk [vmem:[%s3545_s8 + $0x40] sm:$0xff] %vm879_vm5, %v871_v13  ;;  %v3286_v56 = vadd.f32 %v3140_v23, %v521_v32  ;;  %v3289_v34 = vadd.f32 %v3147_v44, %v1386_v22 }
 0x15a   :  { %vm696_vm3 = vcmp.gt.f32.partialorder %v632_v27, 0.0  ;;  %v760_v37 = vmul.f32 0.1, %v632_v27  ;;  %v601_v57 = vadd.f32 %v3140_v23, %v533_v38  ;;  %1776 = vrot.lane.b32.xlu2 %v1736_v26, %s1976_s21  ;;  %v840_v36 = vmax.f32 %v2946_v3, %v792_v24 }
 0x15b   :  { %vm1561_vm4 = vcmp.gt.f32.partialorder %v1497_v59, 0.0  ;;  %v1625_v15 = vmul.f32 0.1, %v1497_v59  ;;  %v1466_v46 = vadd.f32 %v3147_v44, %v1398_v60  ;;  %vm1549_vm7 = vcmp.gt.f32.partialorder %v3269_v11, 0.0 }
 0x15c   :  { %v824_v35 = vsel %vm696_vm3, %v632_v27, %v760_v37  ;;  %v729_v2 = vmul.f32 0.1, %v601_v57  ;;  %v1705_v63 = vmax.f32 %v3590_v9, %v1657_v43  ;;  %vm665_vm1 = vcmp.gt.f32.partialorder %v601_v57, 0.0 }
 0x15d   :  { %v856_v49 = vmax.f32 %v3589_v55, %v824_v35  ;;  %v485_v17 = vpop.f32.mrf.mxu2  ;;  %v1689_v42 = vsel %vm1561_vm4, %v1497_v59, %v1625_v15  ;;  %v1594_v0 = vmul.f32 0.1, %v1466_v46  ;;  %vm1530_vm8 = vcmp.gt.f32.partialorder %v1466_v46, 0.0 }
 0x15e   :  { %v565_v12 = vmul.f32 %v3115_v16, %v485_v17  ;;  %v1350_v19 = vpop.f32.mrf.mxu3  ;;  %v1721_v5 = vmax.f32 %v3591_v33, %v1689_v42  ;;  %v3303_v62 = vsel %vm684_vm6, %v3249_v58, %v748_v47  ;;  %v1613_v10 = vmul.f32 0.1, %v3269_v11 }
 0x15f   :  { %v872_v32 = vmax.f32 %v840_v36, %v856_v49  ;;  %v1430_v28 = vmul.f32 %v3126_v21, %v1350_v19  ;;  %v392_v3 = vpop.f32.mrf.mxu0  ;;  %v793_v13 = vsel %vm665_vm1, %v601_v57, %v729_v2  ;;  %v1658_v27 = vsel %vm1530_vm8, %v1466_v46, %v1594_v0  ;;  %v3593_v46 = vld [vmem:[#allocation28_spill] sm:$0xff] }
 0x160   :  { %v633_v41 = vadd.f32 %v3140_v23, %v565_v12  ;;  %v534_v53 = vmul.f32 %v3115_v16, %v392_v3  ;;  %v1257_v61 = vpop.f32.mrf.mxu1  ;;  %v1737_v30 = vmax.f32 %v1705_v63, %v1721_v5  ;;  %vm653_vm11 = vcmp.gt.f32.partialorder %v3286_v56, 0.0  ;;  %v3594_v12 = vld [vmem:[#allocation17_spill] sm:$0xff] }
 0x161   :  { %v1498_v40 = vadd.f32 %v3147_v44, %v1430_v28  ;;  %v1399_v45 = vmul.f32 %v3126_v21, %v1257_v61  ;;  %889 = vst.msk [vmem:[%s3545_s8 + $0x48] sm:$0xff] %vm879_vm5, %v872_v32  ;;  %v717_v38 = vmul.f32 0.1, %v3286_v56  ;;  %vm1518_vm12 = vcmp.gt.f32.partialorder %v3289_v34, 0.0 }
 0x162   :  { %vm697_vm9 = vcmp.gt.f32.partialorder %v633_v41, 0.0  ;;  %v761_v8 = vmul.f32 0.1, %v633_v41  ;;  %v602_v18 = vadd.f32 %v3140_v23, %v534_v53  ;;  %1778 = vrot.lane.b32.xlu0 %v1737_v30, %s1976_s21  ;;  %v1582_v26 = vmul.f32 0.1, %v3289_v34 }
 0x163   :  { %vm1562_vm10 = vcmp.gt.f32.partialorder %v1498_v40, 0.0  ;;  %v1626_v58 = vmul.f32 0.1, %v1498_v40  ;;  %v1467_v39 = vadd.f32 %v3147_v44, %v1399_v45  ;;  %v841_v22 = vmax.f32 %v3592_v29, %v793_v13 }
 0x164   :  { %v825_v20 = vsel %vm697_vm9, %v633_v41, %v761_v8  ;;  %v730_v37 = vmul.f32 0.1, %v602_v18  ;;  %v1706_v43 = vmax.f32 %v3593_v46, %v1658_v27  ;;  %vm666_vm13 = vcmp.gt.f32.partialorder %v602_v18, 0.0  ;;  %v3595_v41 = vld [vmem:[#allocation18_spill] sm:$0xff] }
 0x165   :  { %v857_v59 = vmax.f32 %v2984_v7, %v825_v20  ;;  %v488_v60 = vpop.f32.mrf.mxu2  ;;  %v1690_v24 = vsel %vm1562_vm10, %v1498_v40, %v1626_v58  ;;  %v1595_v36 = vmul.f32 0.1, %v1467_v39  ;;  %vm1531_vm14 = vcmp.gt.f32.partialorder %v1467_v39, 0.0 }
 0x166   :  { %v566_v57 = vmul.f32 %v3115_v16, %v488_v60  ;;  %v1353_v15 = vpop.f32.mrf.mxu3  ;;  %v1722_v47 = vmax.f32 %v3014_v14, %v1690_v24  ;;  %v553_v19 = vmul.f32 %v3115_v16, %v3594_v12  ;;  %v3335_v63 = vsel %vm1549_vm7, %v3269_v11, %v1613_v10  ;;  %v3596_v60 = vld [vmem:[#allocation19_spill] sm:$0xff] }
 0x167   :  { %v873_v35 = vmax.f32 %v841_v22, %v857_v59  ;;  %v1431_v55 = vmul.f32 %v3126_v21, %v1353_v15  ;;  %v395_v49 = vpop.f32.mrf.mxu0  ;;  %v794_v33 = vsel %vm666_vm13, %v602_v18, %v730_v37  ;;  %v1659_v3 = vsel %vm1531_vm14, %v1467_v39, %v1595_v36  ;;  %v3597_v36 = vld [vmem:[#allocation20_spill] sm:$0xff] }
 0x168   :  { %v634_v17 = vadd.f32 %v3140_v23, %v566_v57  ;;  %v535_v7 = vmul.f32 %v3115_v16, %v395_v49  ;;  %v1260_v42 = vpop.f32.mrf.mxu1  ;;  %v1738_v2 = vmax.f32 %v1706_v43, %v1722_v47  ;;  %v3348_v11 = vsel %vm653_vm11, %v3286_v56, %v717_v38 }
 0x169   :  { %v1499_v9 = vadd.f32 %v3147_v44, %v1431_v55  ;;  %v1400_v14 = vmul.f32 %v3126_v21, %v1260_v42  ;;  %890 = vst.msk [vmem:[%s3545_s8 + $0x50] sm:$0xff] %vm879_vm5, %v873_v35  ;;  %v1418_v53 = vmul.f32 %v3126_v21, %v3595_v41  ;;  %v3355_v30 = vsel %vm1518_vm12, %v3289_v34, %v1582_v26 }
 0x16a   :  { %vm698_vm15 = vcmp.gt.f32.partialorder %v634_v17, 0.0  ;;  %v762_v5 = vmul.f32 0.1, %v634_v17  ;;  %v603_v32 = vadd.f32 %v3140_v23, %v535_v7  ;;  %1780 = vrot.lane.b32.xlu1 %v1738_v2, %s1976_s21  ;;  %v3358_v10 = vadd.f32 %v3140_v23, %v553_v19 }
 0x16b   :  { %vm1563_vm0 = vcmp.gt.f32.partialorder %v1499_v9, 0.0  ;;  %v1627_v0 = vmul.f32 0.1, %v1499_v9  ;;  %v1468_v28 = vadd.f32 %v3147_v44, %v1400_v14  ;;  %v842_v40 = vmax.f32 %v3007_v51, %v794_v33 }
 0x16c   :  { %v826_v61 = vsel %vm698_vm15, %v634_v17, %v762_v5  ;;  %v731_v56 = vmul.f32 0.1, %v603_v32  ;;  %v1707_v39 = vmax.f32 %v3032_v6, %v1659_v3  ;;  %vm667_vm2 = vcmp.gt.f32.partialorder %v603_v32, 0.0 }
 0x16d   :  { %v858_v45 = vmax.f32 %v3075_v48, %v826_v61  ;;  %v491_v13 = vpop.f32.mrf.mxu2  ;;  %v1691_v8 = vsel %vm1563_vm0, %v1499_v9, %v1627_v0  ;;  %v1596_v34 = vmul.f32 0.1, %v1468_v28  ;;  %vm1532_vm3 = vcmp.gt.f32.partialorder %v1468_v28, 0.0 }
 0x16e   :  { %v567_v18 = vmul.f32 %v3115_v16, %v491_v13  ;;  %v1356_v58 = vpop.f32.mrf.mxu3  ;;  %v1723_v27 = vmax.f32 %v3101_v25, %v1691_v8  ;;  %v3369_v59 = vadd.f32 %v3147_v44, %v1418_v53  ;;  %v522_v6 = vmul.f32 %v3115_v16, %v3596_v60 }
 0x16f   :  { %v874_v38 = vmax.f32 %v842_v40, %v858_v45  ;;  %v1432_v20 = vmul.f32 %v3126_v21, %v1356_v58  ;;  %v398_v26 = vpop.f32.mrf.mxu0  ;;  %v795_v37 = vsel %vm667_vm2, %v603_v32, %v731_v56  ;;  %v1660_v47 = vsel %vm1532_vm3, %v1468_v28, %v1596_v34  ;;  %v3598_v34 = vld [vmem:[#allocation21_spill] sm:$0xff] }
 0x170   :  { %v635_v51 = vadd.f32 %v3140_v23, %v567_v18  ;;  %v536_v48 = vmul.f32 %v3115_v16, %v398_v26  ;;  %v1263_v29 = vpop.f32.mrf.mxu1  ;;  %v1739_v22 = vmax.f32 %v1707_v39, %v1723_v27  ;;  %vm685_vm7 = vcmp.gt.f32.partialorder %v3358_v10, 0.0 }
 0x171   :  { %v1500_v25 = vadd.f32 %v3147_v44, %v1432_v20  ;;  %v1401_v24 = vmul.f32 %v3126_v21, %v1263_v29  ;;  %891 = vst.msk [vmem:[%s3545_s8 + $0x58] sm:$0xff] %vm879_vm5, %v874_v38  ;;  %v749_v35 = vmul.f32 0.1, %v3358_v10  ;;  %v1387_v55 = vmul.f32 %v3126_v21, %v3597_v36 }
 0x172   :  { %vm699_vm4 = vcmp.gt.f32.partialorder %v635_v51, 0.0  ;;  %v763_v57 = vmul.f32 0.1, %v635_v51  ;;  %v604_v15 = vadd.f32 %v3140_v23, %v536_v48  ;;  %1782 = vrot.lane.b32.xlu2 %v1739_v22, %s1976_s21  ;;  %v3388_v17 = vadd.f32 %v3140_v23, %v522_v6 }
 0x173   :  { %vm1564_vm6 = vcmp.gt.f32.partialorder %v1500_v25, 0.0  ;;  %v1628_v46 = vmul.f32 0.1, %v1500_v25  ;;  %v1469_v43 = vadd.f32 %v3147_v44, %v1401_v24  ;;  %v843_v7 = vmax.f32 %v3121_v50, %v795_v37 }
 0x174   :  { %v827_v49 = vsel %vm699_vm4, %v635_v51, %v763_v57  ;;  %v732_v19 = vmul.f32 0.1, %v604_v15  ;;  %v1708_v33 = vmax.f32 %v3159_v4, %v1660_v47  ;;  %vm668_vm1 = vcmp.gt.f32.partialorder %v604_v15, 0.0 }
 0x175   :  { %v859_v42 = vmax.f32 %v3205_v31, %v827_v49  ;;  %v494_v2 = vpop.f32.mrf.mxu2  ;;  %v1692_v12 = vsel %vm1564_vm6, %v1500_v25, %v1628_v46  ;;  %v1597_v0 = vmul.f32 0.1, %v1469_v43  ;;  %vm1533_vm8 = vcmp.gt.f32.partialorder %v1469_v43, 0.0 }
 0x176   :  { %v568_v9 = vmul.f32 %v3115_v16, %v494_v2  ;;  %v1359_v14 = vpop.f32.mrf.mxu3  ;;  %v1724_v5 = vmax.f32 %v3238_v1, %v1692_v12  ;;  %vm1550_vm9 = vcmp.gt.f32.partialorder %v3369_v59, 0.0  ;;  %v1614_v61 = vmul.f32 0.1, %v3369_v59 }
 0x177   :  { %v875_v32 = vmax.f32 %v843_v7, %v859_v42  ;;  %v1433_v28 = vmul.f32 %v3126_v21, %v1359_v14  ;;  %v401_v3 = vpop.f32.mrf.mxu0  ;;  %v796_v40 = vsel %vm668_vm1, %v604_v15, %v732_v19  ;;  %v1661_v18 = vsel %vm1533_vm8, %v1469_v43, %v1597_v0 }
 0x178   :  { %v636_v50 = vadd.f32 %v3140_v23, %v568_v9  ;;  %v537_v31 = vmul.f32 %v3115_v16, %v401_v3  ;;  %v1266_v41 = vpop.f32.mrf.mxu1  ;;  %v1740_v53 = vmax.f32 %v1708_v33, %v1724_v5  ;;  %v813_v58 = vsel %vm685_vm7, %v3358_v10, %v749_v35 }
 0x179   :  { %v1501_v4 = vadd.f32 %v3147_v44, %v1433_v28  ;;  %v1402_v1 = vmul.f32 %v3126_v21, %v1266_v41  ;;  %892 = vst.msk [vmem:[%s3545_s8 + $0x60] sm:$0xff] %vm879_vm5, %v875_v32  ;;  %v3414_v39 = vmul.f32 0.1, %v3388_v17  ;;  %v3417_v27 = vadd.f32 %v3147_v44, %v1387_v55 }
 0x17a   :  { %vm700_vm10 = vcmp.gt.f32.partialorder %v636_v50, 0.0  ;;  %v764_v45 = vmul.f32 0.1, %v636_v50  ;;  %v605_v13 = vadd.f32 %v3140_v23, %v537_v31  ;;  %1784 = vrot.lane.b32.xlu0 %v1740_v53, %s1976_s21  ;;  %v554_v20 = vmul.f32 %v3115_v16, %v3598_v34 }
 0x17b   :  { %vm1565_vm11 = vcmp.gt.f32.partialorder %v1501_v4, 0.0  ;;  %v1629_v8 = vmul.f32 0.1, %v1501_v4  ;;  %v1470_v56 = vadd.f32 %v3147_v44, %v1402_v1  ;;  %v844_v26 = vmax.f32 %v3230_v52, %v796_v40 }
 0x17c   :  { %v828_v38 = vsel %vm700_vm10, %v636_v50, %v764_v45  ;;  %v733_v22 = vmul.f32 0.1, %v605_v13  ;;  %v1709_v6 = vmax.f32 %v3256_v54, %v1661_v18  ;;  %vm669_vm12 = vcmp.gt.f32.partialorder %v605_v13, 0.0  ;;  %v3599_v54 = vld [vmem:[#allocation23_spill] sm:$0xff] }
 0x17d   :  { %v860_v51 = vmax.f32 %v3303_v62, %v828_v38  ;;  %v497_v48 = vpop.f32.mrf.mxu2  ;;  %v1693_v29 = vsel %vm1565_vm11, %v1501_v4, %v1629_v8  ;;  %v1598_v37 = vmul.f32 0.1, %v1470_v56  ;;  %vm1534_vm13 = vcmp.gt.f32.partialorder %v1470_v56, 0.0 }
 0x17e   :  { %v569_v60 = vmul.f32 %v3115_v16, %v497_v48  ;;  %v1362_v10 = vpop.f32.mrf.mxu3  ;;  %v1725_v25 = vmax.f32 %v3335_v63, %v1693_v29  ;;  %vm654_vm14 = vcmp.gt.f32.partialorder %v3388_v17, 0.0  ;;  %vm1519_vm15 = vcmp.gt.f32.partialorder %v3417_v27, 0.0 }
 0x17f   :  { %v876_v24 = vmax.f32 %v844_v26, %v860_v51  ;;  %v1434_v57 = vmul.f32 %v3126_v21, %v1362_v10  ;;  %v404_v15 = vpop.f32.mrf.mxu0  ;;  %v1419_v63 = vmul.f32 %v3126_v21, %v3599_v54  ;;  %v797_v36 = vsel %vm669_vm12, %v605_v13, %v733_v22 }
 0x180   :  { %v637_v52 = vadd.f32 %v3140_v23, %v569_v60  ;;  %v538_v62 = vmul.f32 %v3115_v16, %v404_v15  ;;  %v1269_v46 = vpop.f32.mrf.mxu1  ;;  %v1741_v43 = vmax.f32 %v1709_v6, %v1725_v25  ;;  %v1662_v2 = vsel %vm1534_vm13, %v1470_v56, %v1598_v37 }
 0x181   :  { %v1502_v47 = vadd.f32 %v3147_v44, %v1434_v57  ;;  %v1403_v35 = vmul.f32 %v3126_v21, %v1269_v46  ;;  %893 = vst.msk [vmem:[%s3545_s8 + $0x68] sm:$0xff] %vm879_vm5, %v876_v24  ;;  %v1583_v12 = vmul.f32 0.1, %v3417_v27  ;;  %v622_v19 = vadd.f32 %v3140_v23, %v554_v20 }
 0x182   :  { %vm701_vm0 = vcmp.gt.f32.partialorder %v637_v52, 0.0  ;;  %v765_v55 = vmul.f32 0.1, %v637_v52  ;;  %v606_v49 = vadd.f32 %v3140_v23, %v538_v62  ;;  %1786 = vrot.lane.b32.xlu1 %v1741_v43, %s1976_s21  ;;  %v1678_v14 = vsel %vm1550_vm9, %v3369_v59, %v1614_v61 }
 0x183   :  { %vm1566_vm2 = vcmp.gt.f32.partialorder %v1502_v47, 0.0  ;;  %v1630_v7 = vmul.f32 0.1, %v1502_v47  ;;  %v1471_v42 = vadd.f32 %v3147_v44, %v1403_v35  ;;  %v1487_v33 = vadd.f32 %v3147_v44, %v1419_v63 }
 0x184   :  { %v829_v9 = vsel %vm701_vm0, %v637_v52, %v765_v55  ;;  %v845_v5 = vmax.f32 %v3348_v11, %v797_v36  ;;  %v734_v3 = vmul.f32 0.1, %v606_v49  ;;  %v1710_v41 = vmax.f32 %v3355_v30, %v1662_v2 }
 0x185   :  { %v861_v32 = vmax.f32 %v813_v58, %v829_v9  ;;  %v500_v0 = vpop.f32.mrf.mxu2  ;;  %v1694_v28 = vsel %vm1566_vm2, %v1502_v47, %v1630_v7  ;;  %vm670_vm3 = vcmp.gt.f32.partialorder %v606_v49, 0.0  ;;  %v1599_v1 = vmul.f32 0.1, %v1471_v42 }
 0x186   :  { %v570_v50 = vmul.f32 %v3115_v16, %v500_v0  ;;  %v1365_v31 = vpop.f32.mrf.mxu3  ;;  %v1726_v53 = vmax.f32 %v1678_v14, %v1694_v28  ;;  %v750_v59 = vmul.f32 0.1, %v622_v19  ;;  %vm1535_vm4 = vcmp.gt.f32.partialorder %v1471_v42, 0.0 }
 0x187   :  { %v877_v4 = vmax.f32 %v845_v5, %v861_v32  ;;  %v1435_v40 = vmul.f32 %v3126_v21, %v1365_v31  ;;  %vm686_vm6 = vcmp.gt.f32.partialorder %v622_v19, 0.0  ;;  %vm1551_vm7 = vcmp.gt.f32.partialorder %v1487_v33, 0.0 }
 0x188   :  { %v638_v61 = vadd.f32 %v3140_v23, %v570_v50  ;;  %v1742_v11 = vmax.f32 %v1710_v41, %v1726_v53  ;;  %v1615_v45 = vmul.f32 0.1, %v1487_v33  ;;  %v798_v16 = vsel %vm670_vm3, %v606_v49, %v734_v3 }
 0x189   :  { %v1503_v13 = vadd.f32 %v3147_v44, %v1435_v40  ;;  %894 = vst.msk [vmem:[%s3545_s8 + $0x70] sm:$0xff] %vm879_vm5, %v877_v4  ;;  %vm1808_vm8 = vcmask 392320   ;;  %v1663_v23 = vsel %vm1535_vm4, %v1471_v42, %v1599_v1  ;;  %v782_v8 = vsel %vm654_vm14, %v3388_v17, %v3414_v39 }
 0x18a   :  { %vm702_vm1 = vcmp.gt.f32.partialorder %v638_v61, 0.0  ;;  %v766_v30 = vmul.f32 0.1, %v638_v61  ;;  %1788 = vrot.lane.b32.xlu2 %v1742_v11, %s1976_s21  ;;  %v814_v44 = vsel %vm686_vm6, %v622_v19, %v750_v59  ;;  %v1647_v58 = vsel %vm1519_vm15, %v3417_v27, %v1583_v12 }
 0x18b   :  { %vm1567_vm9 = vcmp.gt.f32.partialorder %v1503_v13, 0.0  ;;  %v1631_v21 = vmul.f32 0.1, %v1503_v13  ;;  %v846_v38 = vmax.f32 %v782_v8, %v798_v16  ;;  %v1679_v20 = vsel %vm1551_vm7, %v1487_v33, %v1615_v45 }
 0x18c   :  { %v830_v56 = vsel %vm702_vm1, %v638_v61, %v766_v30  ;;  %v1761_v18 = vpop.permute.xlu0 %1760  ;;  %v1711_v51 = vmax.f32 %v1647_v58, %v1663_v23 }
 0x18d   :  { %v862_v34 = vmax.f32 %v814_v44, %v830_v56  ;;  %1809 = vst.msk [vmem:[%s3545_s8] sm:$0xff] %vm1808_vm8, %v1761_v18  ;;  %v1695_v26 = vsel %vm1567_vm9, %v1503_v13, %v1631_v21 }
 0x18e   :  { %v1727_v48 = vmax.f32 %v1679_v20, %v1695_v26 }
 0x18f   :  { %v878_v17 = vmax.f32 %v846_v38, %v862_v34 }
 0x190   :  { %v1743_v39 = vmax.f32 %v1711_v51, %v1727_v48 }
 0x191   :  { %895 = vst.msk [vmem:[%s3545_s8 + $0x78] sm:$0xff] %vm879_vm5, %v878_v17 }
 0x192   :  { %1790 = vrot.lane.b32.xlu0 %v1743_v39, %s1976_s21 }
 0x194   :  { %v1763_v27 = vpop.permute.xlu0 %1762  ;;  %v1769_v29 = vpop.permute.xlu2 %1768 }
 0x195   :  { %1810 = vst.msk [vmem:[%s3545_s8 + $0x8] sm:$0xff] %vm1808_vm8, %v1763_v27 }
 0x196   :  { %1813 = vst.msk [vmem:[%s3545_s8 + $0x20] sm:$0xff] %vm1808_vm8, %v1769_v29 }
 0x19c   :  { %v1765_v22 = vpop.permute.xlu1 %1764  ;;  %v1771_v60 = vpop.permute.xlu2 %1770 }
 0x19d   :  { %1811 = vst.msk [vmem:[%s3545_s8 + $0x10] sm:$0xff] %vm1808_vm8, %v1765_v22 }
 0x19e   :  { %1814 = vst.msk [vmem:[%s3545_s8 + $0x28] sm:$0xff] %vm1808_vm8, %v1771_v60 }
 0x1a4   :  { %v1767_v10 = vpop.permute.xlu1 %1766 }
 0x1a5   :  { %1812 = vst.msk [vmem:[%s3545_s8 + $0x18] sm:$0xff] %vm1808_vm8, %v1767_v10 }
 0x1b4   :  { %v1777_v6 = vpop.permute.xlu2 %1776 }
 0x1b5   :  { %1817 = vst.msk [vmem:[%s3545_s8 + $0x40] sm:$0xff] %vm1808_vm8, %v1777_v6 }
 0x1bc   :  { %v1773_v25 = vpop.permute.xlu0 %1772 }
 0x1bd   :  { %1815 = vst.msk [vmem:[%s3545_s8 + $0x30] sm:$0xff] %vm1808_vm8, %v1773_v25 }
 0x1c4   :  { %v1775_v24 = vpop.permute.xlu1 %1774 }
 0x1c5   :  { %1816 = vst.msk [vmem:[%s3545_s8 + $0x38] sm:$0xff] %vm1808_vm8, %v1775_v24 }
 0x1cc   :  { %v1783_v37 = vpop.permute.xlu2 %1782 }
 0x1cd   :  { %1820 = vst.msk [vmem:[%s3545_s8 + $0x58] sm:$0xff] %vm1808_vm8, %v1783_v37 }
 0x1d4   :  { %v1779_v57 = vpop.permute.xlu0 %1778 }
 0x1d5   :  { %1818 = vst.msk [vmem:[%s3545_s8 + $0x48] sm:$0xff] %vm1808_vm8, %v1779_v57 }
 0x1dc   :  { %v1781_v15 = vpop.permute.xlu1 %1780 }
 0x1dd   :  { %1819 = vst.msk [vmem:[%s3545_s8 + $0x50] sm:$0xff] %vm1808_vm8, %v1781_v15 }
 0x1e4   :  { %v1789_v52 = vpop.permute.xlu2 %1788 }
 0x1e5   :  { %1823 = vst.msk [vmem:[%s3545_s8 + $0x70] sm:$0xff] %vm1808_vm8, %v1789_v52 }
 0x1ec   :  { %v1785_v62 = vpop.permute.xlu0 %1784 }
 0x1ed   :  { %1821 = vst.msk [vmem:[%s3545_s8 + $0x60] sm:$0xff] %vm1808_vm8, %v1785_v62 }
 0x1f4   :  { %v1787_v46 = vpop.permute.xlu1 %1786 }
 0x1f5   :  { %1822 = vst.msk [vmem:[%s3545_s8 + $0x68] sm:$0xff] %vm1808_vm8, %v1787_v46 }
 0x204   :  { %v1791_v43 = vpop.permute.xlu0 %1790 }
 0x205   :  { %1824 = vst.msk [vmem:[%s3545_s8 + $0x78] sm:$0xff] %vm1808_vm8, %v1791_v43 }

// kernel: time_model_forward.3
= control target key start
LH: loop header
LB: loop body
LE: loop exit
PB: predicated region body
PF: predicated region fallthrough
CT: control target
= control target key end

     0   :  { %s7704_s0 = inlined_call_operand.vmem [shape: f32[2,3072], index: 0, kind: input, shape index: {}]   ;;  %s7705_s1 = inlined_call_operand.vmem [shape: bf16[3072,256], index: 1, kind: input, shape index: {}]   ;;  %s7706_s2 = inlined_call_operand.vmem [shape: f32[1,256], index: 2, kind: input, shape index: {}]   ;;  %s7707_s3 = inlined_call_operand.vmem [shape: f32[256,5], index: 3, kind: input, shape index: {}]   ;;  %s7708_s4 = inlined_call_operand.vmem [shape: f32[1,5], index: 4, kind: input, shape index: {}]   ;;  %s7709_s5 = inlined_call_operand.hbm [shape: f32[2,5], index: 5, kind: output, shape index: {}]  }
   0x1   :  { %v3204_v0 = vld [vmem:[%s7705_s1 + $0x70] sm:$0xf]  ;;  %v4697_v1 = vld [vmem:[%s7705_s1 + $0x74] sm:$0xf0]  ;;  %v3196_v11 = vld [vmem:[%s7705_s1 + $0x60] sm:$0xf] }
   0x2   :  { %v3268_v2 = vld [vmem:[%s7705_s1 + $0xf0] sm:$0xf]  ;;  %v3205_v3 = vor.u32 %v4697_v1, %v3204_v0  ;;  %v4713_v4 = vld [vmem:[%s7705_s1 + $0xf4] sm:$0xf0]  ;;  %v4695_v13 = vld [vmem:[%s7705_s1 + $0x64] sm:$0xf0] }
   0x3   :  { %v3332_v5 = vld [vmem:[%s7705_s1 + $0x170] sm:$0xf]  ;;  %v4729_v6 = vld [vmem:[%s7705_s1 + $0x174] sm:$0xf0]  ;;  %v3269_v7 = vor.u32 %v4713_v4, %v3268_v2  ;;  %v3260_v14 = vld [vmem:[%s7705_s1 + $0xe0] sm:$0xf]  ;;  %v3197_v16 = vor.u32 %v4695_v13, %v3196_v11 }
   0x4   :  { %v3333_v8 = vor.u32 %v4729_v6, %v3332_v5  ;;  %v3396_v9 = vld [vmem:[%s7705_s1 + $0x1f0] sm:$0xf]  ;;  %v4745_v10 = vld [vmem:[%s7705_s1 + $0x1f4] sm:$0xf0]  ;;  %2422 = vmatpush.bf16.msra.mxu0 %v3205_v3  ;;  %v4711_v15 = vld [vmem:[%s7705_s1 + $0xe4] sm:$0xf0] }
   0x5   :  { %v3397_v12 = vor.u32 %v4745_v10, %v3396_v9  ;;  %2435 = vmatpush.bf16.msra.mxu1 %v3269_v7  ;;  %v3261_v17 = vor.u32 %v4711_v15, %v3260_v14  ;;  %v3324_v18 = vld [vmem:[%s7705_s1 + $0x160] sm:$0xf]  ;;  %v4727_v19 = vld [vmem:[%s7705_s1 + $0x164] sm:$0xf0]  ;;  %v3188_v23 = vld [vmem:[%s7705_s1 + $0x50] sm:$0xf] }
   0x6   :  { %2448 = vmatpush.bf16.msra.mxu2 %v3333_v8  ;;  %v3388_v20 = vld [vmem:[%s7705_s1 + $0x1e0] sm:$0xf]  ;;  %v3325_v21 = vor.u32 %v4727_v19, %v3324_v18  ;;  %v4743_v22 = vld [vmem:[%s7705_s1 + $0x1e4] sm:$0xf0]  ;;  %v4693_v24 = vld [vmem:[%s7705_s1 + $0x54] sm:$0xf0] }
   0x7   :  { %2461 = vmatpush.bf16.msra.mxu3 %v3397_v12  ;;  %v3389_v25 = vor.u32 %v4743_v22, %v3388_v20  ;;  %v3252_v26 = vld [vmem:[%s7705_s1 + $0xd0] sm:$0xf]  ;;  %v4709_v27 = vld [vmem:[%s7705_s1 + $0xd4] sm:$0xf0]  ;;  %v3189_v29 = vor.u32 %v4693_v24, %v3188_v23  ;;  %v3180_v35 = vld [vmem:[%s7705_s1 + $0x40] sm:$0xf] }
   0x8   :  { %v3316_v28 = vld [vmem:[%s7705_s1 + $0x150] sm:$0xf]  ;;  %2423 = vmatpush.bf16.msra.mxu0 %v3197_v16  ;;  %v4725_v30 = vld [vmem:[%s7705_s1 + $0x154] sm:$0xf0]  ;;  %v3253_v33 = vor.u32 %v4709_v27, %v3252_v26  ;;  %v4691_v36 = vld [vmem:[%s7705_s1 + $0x44] sm:$0xf0] }
   0x9   :  { %v3380_v31 = vld [vmem:[%s7705_s1 + $0x1d0] sm:$0xf]  ;;  %v4741_v32 = vld [vmem:[%s7705_s1 + $0x1d4] sm:$0xf0]  ;;  %2436 = vmatpush.bf16.msra.mxu1 %v3261_v17  ;;  %v3317_v34 = vor.u32 %v4725_v30, %v3316_v28  ;;  %v3244_v37 = vld [vmem:[%s7705_s1 + $0xc0] sm:$0xf]  ;;  %v3181_v44 = vor.u32 %v4691_v36, %v3180_v35 }
   0xa   :  { %2449 = vmatpush.bf16.msra.mxu2 %v3325_v21  ;;  %v3381_v38 = vor.u32 %v4741_v32, %v3380_v31  ;;  %v4707_v39 = vld [vmem:[%s7705_s1 + $0xc4] sm:$0xf0]  ;;  %v3308_v40 = vld [vmem:[%s7705_s1 + $0x140] sm:$0xf]  ;;  %v3172_v47 = vld [vmem:[%s7705_s1 + $0x30] sm:$0xf] }
   0xb   :  { %2462 = vmatpush.bf16.msra.mxu3 %v3389_v25  ;;  %v4723_v41 = vld [vmem:[%s7705_s1 + $0x144] sm:$0xf0]  ;;  %v3372_v42 = vld [vmem:[%s7705_s1 + $0x1c0] sm:$0xf]  ;;  %v3245_v45 = vor.u32 %v4707_v39, %v3244_v37  ;;  %v4689_v48 = vld [vmem:[%s7705_s1 + $0x34] sm:$0xf0] }
   0xc   :  { %v4739_v43 = vld [vmem:[%s7705_s1 + $0x1c4] sm:$0xf0]  ;;  %2424 = vmatpush.bf16.msra.mxu0 %v3189_v29  ;;  %v3309_v46 = vor.u32 %v4723_v41, %v3308_v40  ;;  %v3236_v49 = vld [vmem:[%s7705_s1 + $0xb0] sm:$0xf]  ;;  %v4705_v51 = vld [vmem:[%s7705_s1 + $0xb4] sm:$0xf0]  ;;  %v3173_v56 = vor.u32 %v4689_v48, %v3172_v47 }
   0xd   :  { %2437 = vmatpush.bf16.msra.mxu1 %v3253_v33  ;;  %v3373_v50 = vor.u32 %v4739_v43, %v3372_v42  ;;  %v3300_v52 = vld [vmem:[%s7705_s1 + $0x130] sm:$0xf]  ;;  %v4721_v53 = vld [vmem:[%s7705_s1 + $0x134] sm:$0xf0]  ;;  %v3237_v57 = vor.u32 %v4705_v51, %v3236_v49  ;;  %v3164_v59 = vld [vmem:[%s7705_s1 + $0x20] sm:$0xf] }
   0xe   :  { %2450 = vmatpush.bf16.msra.mxu2 %v3317_v34  ;;  %v3364_v54 = vld [vmem:[%s7705_s1 + $0x1b0] sm:$0xf]  ;;  %v4737_v55 = vld [vmem:[%s7705_s1 + $0x1b4] sm:$0xf0]  ;;  %v3301_v58 = vor.u32 %v4721_v53, %v3300_v52  ;;  %v4687_v60 = vld [vmem:[%s7705_s1 + $0x24] sm:$0xf0] }
   0xf   :  { %2463 = vmatpush.bf16.msra.mxu3 %v3381_v38  ;;  %v3228_v61 = vld [vmem:[%s7705_s1 + $0xa0] sm:$0xf]  ;;  %v3365_v62 = vor.u32 %v4737_v55, %v3364_v54  ;;  %v4703_v63 = vld [vmem:[%s7705_s1 + $0xa4] sm:$0xf0]  ;;  %v3165_v4 = vor.u32 %v4687_v60, %v3164_v59  ;;  %v3156_v7 = vld [vmem:[%s7705_s1 + $0x10] sm:$0xf] }
  0x10   :  { %2425 = vmatpush.bf16.msra.mxu0 %v3181_v44  ;;  %v3292_v0 = vld [vmem:[%s7705_s1 + $0x120] sm:$0xf]  ;;  %v4719_v1 = vld [vmem:[%s7705_s1 + $0x124] sm:$0xf0]  ;;  %v3229_v5 = vor.u32 %v4703_v63, %v3228_v61  ;;  %v4685_v8 = vld [vmem:[%s7705_s1 + $0x14] sm:$0xf0] }
  0x11   :  { %2438 = vmatpush.bf16.msra.mxu1 %v3245_v45  ;;  %v3356_v2 = vld [vmem:[%s7705_s1 + $0x1a0] sm:$0xf]  ;;  %v4735_v3 = vld [vmem:[%s7705_s1 + $0x1a4] sm:$0xf0]  ;;  %v3293_v6 = vor.u32 %v4719_v1, %v3292_v0  ;;  %v3220_v9 = vld [vmem:[%s7705_s1 + $0x90] sm:$0xf]  ;;  %v3157_v16 = vor.u32 %v4685_v8, %v3156_v7 }
  0x12   :  { %2451 = vmatpush.bf16.msra.mxu2 %v3309_v46  ;;  %v3357_v10 = vor.u32 %v4735_v3, %v3356_v2  ;;  %v4701_v11 = vld [vmem:[%s7705_s1 + $0x94] sm:$0xf0]  ;;  %v3284_v12 = vld [vmem:[%s7705_s1 + $0x110] sm:$0xf]  ;;  %v3148_v17 = vld [vmem:[%s7705_s1] sm:$0xf] }
  0x13   :  { %2464 = vmatpush.bf16.msra.mxu3 %v3373_v50  ;;  %v4717_v13 = vld [vmem:[%s7705_s1 + $0x114] sm:$0xf0]  ;;  %v3348_v14 = vld [vmem:[%s7705_s1 + $0x190] sm:$0xf]  ;;  %v4683_v18 = vld [vmem:[%s7705_s1 + $0x4] sm:$0xf0]  ;;  %v3221_v19 = vor.u32 %v4701_v11, %v3220_v9 }
  0x14   :  { %2426 = vmatpush.bf16.msra.mxu0 %v3173_v56  ;;  %v4733_v15 = vld [vmem:[%s7705_s1 + $0x194] sm:$0xf0]  ;;  %v3285_v20 = vor.u32 %v4717_v13, %v3284_v12  ;;  %v3212_v21 = vld [vmem:[%s7705_s1 + $0x80] sm:$0xf]  ;;  %v4699_v22 = vld [vmem:[%s7705_s1 + $0x84] sm:$0xf0]  ;;  %v3149_v31 = vor.u32 %v4683_v18, %v3148_v17 }
  0x15   :  { %2439 = vmatpush.bf16.msra.mxu1 %v3237_v57  ;;  %v3276_v23 = vld [vmem:[%s7705_s1 + $0x100] sm:$0xf]  ;;  %v3349_v24 = vor.u32 %v4733_v15, %v3348_v14  ;;  %v4715_v25 = vld [vmem:[%s7705_s1 + $0x104] sm:$0xf0]  ;;  %v3460_v28 = vld [vmem:[%s7705_s1 + $0x270] sm:$0xf]  ;;  %v3213_v35 = vor.u32 %v4699_v22, %v3212_v21 }
  0x16   :  { %2452 = vmatpush.bf16.msra.mxu2 %v3301_v58  ;;  %v3340_v26 = vld [vmem:[%s7705_s1 + $0x180] sm:$0xf]  ;;  %v4731_v27 = vld [vmem:[%s7705_s1 + $0x184] sm:$0xf0]  ;;  %v4761_v29 = vld [vmem:[%s7705_s1 + $0x274] sm:$0xf0]  ;;  %v3277_v36 = vor.u32 %v4715_v25, %v3276_v23 }
  0x17   :  { %2465 = vmatpush.bf16.msra.mxu3 %v3365_v62  ;;  %v3524_v30 = vld [vmem:[%s7705_s1 + $0x2f0] sm:$0xf]  ;;  %v4777_v32 = vld [vmem:[%s7705_s1 + $0x2f4] sm:$0xf0]  ;;  %v3341_v39 = vor.u32 %v4731_v27, %v3340_v26  ;;  %v3461_v40 = vor.u32 %v4761_v29, %v3460_v28  ;;  %v3452_v43 = vld [vmem:[%s7705_s1 + $0x260] sm:$0xf] }
  0x18   :  { %2427 = vmatpush.bf16.msra.mxu0 %v3165_v4  ;;  %v3588_v33 = vld [vmem:[%s7705_s1 + $0x370] sm:$0xf]  ;;  %v4793_v34 = vld [vmem:[%s7705_s1 + $0x374] sm:$0xf0]  ;;  %v3525_v41 = vor.u32 %v4777_v32, %v3524_v30  ;;  %v4759_v44 = vld [vmem:[%s7705_s1 + $0x264] sm:$0xf0] }
  0x19   :  { %2440 = vmatpush.bf16.msra.mxu1 %v3229_v5  ;;  %v3652_v37 = vld [vmem:[%s7705_s1 + $0x3f0] sm:$0xf]  ;;  %v4809_v38 = vld [vmem:[%s7705_s1 + $0x3f4] sm:$0xf0]  ;;  %v3589_v42 = vor.u32 %v4793_v34, %v3588_v33  ;;  %v3516_v45 = vld [vmem:[%s7705_s1 + $0x2e0] sm:$0xf]  ;;  %v3453_v52 = vor.u32 %v4759_v44, %v3452_v43 }
  0x1a   :  { %2453 = vmatpush.bf16.msra.mxu2 %v3293_v6  ;;  %v3653_v46 = vor.u32 %v4809_v38, %v3652_v37  ;;  %v4775_v47 = vld [vmem:[%s7705_s1 + $0x2e4] sm:$0xf0]  ;;  %v3580_v48 = vld [vmem:[%s7705_s1 + $0x360] sm:$0xf]  ;;  %v3444_v55 = vld [vmem:[%s7705_s1 + $0x250] sm:$0xf] }
  0x1b   :  { %2466 = vmatpush.bf16.msra.mxu3 %v3357_v10  ;;  %v4791_v49 = vld [vmem:[%s7705_s1 + $0x364] sm:$0xf0]  ;;  %v3644_v50 = vld [vmem:[%s7705_s1 + $0x3e0] sm:$0xf]  ;;  %v3517_v53 = vor.u32 %v4775_v47, %v3516_v45  ;;  %v4757_v56 = vld [vmem:[%s7705_s1 + $0x254] sm:$0xf0] }
  0x1c   :  { %2428 = vmatpush.bf16.msra.mxu0 %v3157_v16  ;;  %v4807_v51 = vld [vmem:[%s7705_s1 + $0x3e4] sm:$0xf0]  ;;  %v3581_v54 = vor.u32 %v4791_v49, %v3580_v48  ;;  %v3508_v57 = vld [vmem:[%s7705_s1 + $0x2d0] sm:$0xf]  ;;  %v4773_v59 = vld [vmem:[%s7705_s1 + $0x2d4] sm:$0xf0]  ;;  %v3445_v0 = vor.u32 %v4757_v56, %v3444_v55 }
  0x1d   :  { %2441 = vmatpush.bf16.msra.mxu1 %v3221_v19  ;;  %v3645_v58 = vor.u32 %v4807_v51, %v3644_v50  ;;  %v3572_v60 = vld [vmem:[%s7705_s1 + $0x350] sm:$0xf]  ;;  %v4789_v61 = vld [vmem:[%s7705_s1 + $0x354] sm:$0xf0]  ;;  %v3436_v1 = vld [vmem:[%s7705_s1 + $0x240] sm:$0xf]  ;;  %v3509_v3 = vor.u32 %v4773_v59, %v3508_v57 }
  0x1e   :  { %2454 = vmatpush.bf16.msra.mxu2 %v3285_v20  ;;  %v3636_v62 = vld [vmem:[%s7705_s1 + $0x3d0] sm:$0xf]  ;;  %v4805_v63 = vld [vmem:[%s7705_s1 + $0x3d4] sm:$0xf0]  ;;  %v21_v2 = vld [vmem:[%s7704_s0] sm:$0xff]  ;;  %v3573_v4 = vor.u32 %v4789_v61, %v3572_v60 }
  0x1f   :  { %2467 = vmatpush.bf16.msra.mxu3 %v3349_v24  ;;  %v4755_v5 = vld [vmem:[%s7705_s1 + $0x244] sm:$0xf0]  ;;  %v3500_v6 = vld [vmem:[%s7705_s1 + $0x2c0] sm:$0xf]  ;;  %33 = vst [vmem:[#allocation1] ss:$4 sm:$0xff] %v21_v2  ;;  %v3637_v7 = vor.u32 %v4805_v63, %v3636_v62 }
  0x20   :  { %2429 = vmatpush.bf16.msra.mxu0 %v3149_v31  ;;  %v4771_v8 = vld [vmem:[%s7705_s1 + $0x2c4] sm:$0xf0]  ;;  %v3564_v9 = vld [vmem:[%s7705_s1 + $0x340] sm:$0xf]  ;;  %v3437_v13 = vor.u32 %v4755_v5, %v3436_v1  ;;  %v3428_v14 = vld [vmem:[%s7705_s1 + $0x230] sm:$0xf] }
  0x21   :  { %2442 = vmatpush.bf16.msra.mxu1 %v3213_v35  ;;  %v4787_v10 = vld [vmem:[%s7705_s1 + $0x344] sm:$0xf0]  ;;  %v3628_v11 = vld [vmem:[%s7705_s1 + $0x3c0] sm:$0xf]  ;;  %v4753_v15 = vld [vmem:[%s7705_s1 + $0x234] sm:$0xf0]  ;;  %v3501_v16 = vor.u32 %v4771_v8, %v3500_v6 }
  0x22   :  { %2455 = vmatpush.bf16.msra.mxu2 %v3277_v36  ;;  %v4803_v12 = vld [vmem:[%s7705_s1 + $0x3c4] sm:$0xf0]  ;;  %v3565_v17 = vor.u32 %v4787_v10, %v3564_v9  ;;  %v3492_v18 = vld [vmem:[%s7705_s1 + $0x2b0] sm:$0xf]  ;;  %v4769_v19 = vld [vmem:[%s7705_s1 + $0x2b4] sm:$0xf0]  ;;  %v3429_v28 = vor.u32 %v4753_v15, %v3428_v14 }
  0x23   :  { %2468 = vmatpush.bf16.msra.mxu3 %v3341_v39  ;;  %v3556_v20 = vld [vmem:[%s7705_s1 + $0x330] sm:$0xf]  ;;  %v3629_v21 = vor.u32 %v4803_v12, %v3628_v11  ;;  %v4785_v22 = vld [vmem:[%s7705_s1 + $0x334] sm:$0xf0]  ;;  %v3420_v25 = vld [vmem:[%s7705_s1 + $0x220] sm:$0xf]  ;;  %v3493_v29 = vor.u32 %v4769_v19, %v3492_v18 }
  0x24   :  { %2474 = vmatpush.bf16.msrb.mxu0 %v3461_v40  ;;  %v3620_v23 = vld [vmem:[%s7705_s1 + $0x3b0] sm:$0xf]  ;;  %v4801_v24 = vld [vmem:[%s7705_s1 + $0x3b4] sm:$0xf0]  ;;  %v4751_v26 = vld [vmem:[%s7705_s1 + $0x224] sm:$0xf0]  ;;  %v3557_v34 = vor.u32 %v4785_v22, %v3556_v20 }
  0x25   :  { %2487 = vmatpush.bf16.msrb.mxu1 %v3525_v41  ;;  %v23_v27 = vld [vmem:[%s7704_s0 + $0x10] sm:$0xff]  ;;  %v3484_v30 = vld [vmem:[%s7705_s1 + $0x2a0] sm:$0xf]  ;;  %v4767_v31 = vld [vmem:[%s7705_s1 + $0x2a4] sm:$0xf0]  ;;  %v3621_v39 = vor.u32 %v4801_v24, %v3620_v23 }
  0x26   :  { %2500 = vmatpush.bf16.msrb.mxu2 %v3589_v42  ;;  %v38_v32 = vld.sshfl [vmem:[#allocation1 + $0x10] sm:$0xff pattern:$0x73625140]  ;;  %v36_v33 = vld.sshfl [vmem:[#allocation1] sm:$0xff pattern:$0x73625140]  ;;  %v3485_v49 = vor.u32 %v4767_v31, %v3484_v30 }
  0x27   :  { %2513 = vmatpush.bf16.msrb.mxu3 %v3653_v46  ;;  %v5456_v35 = vpack.c.bf16 %v38_v32, %v38_v32  ;;  %v5458_v36 = vpack.c.bf16 %v36_v33, %v36_v33  ;;  %v39_v37 = vld.sshfl [vmem:[#allocation1 + $0x18] sm:$0xff pattern:$0x73625140]  ;;  %v37_v38 = vld.sshfl [vmem:[#allocation1 + $0x8] sm:$0xff pattern:$0x73625140]  ;;  %v3421_v46 = vor.u32 %v4751_v26, %v3420_v25 }
  0x28   :  { %2475 = vmatpush.bf16.msrb.mxu0 %v3453_v52  ;;  %v3548_v40 = vld [vmem:[%s7705_s1 + $0x320] sm:$0xf]  ;;  %v4783_v41 = vld [vmem:[%s7705_s1 + $0x324] sm:$0xf0]  ;;  %v5466_v42 = vpack.c.bf16 %v39_v37, %v39_v37  ;;  %44 = vst [vmem:[#allocation1] ss:$4 sm:$0xff] %v23_v27  ;;  %v5468_v43 = vpack.c.bf16 %v37_v38, %v37_v38 }
  0x29   :  { %2488 = vmatpush.bf16.msrb.mxu1 %v3517_v53  ;;  %v3612_v44 = vld [vmem:[%s7705_s1 + $0x3a0] sm:$0xf]  ;;  %v4799_v45 = vld [vmem:[%s7705_s1 + $0x3a4] sm:$0xf0]  ;;  %2456 = vmatmul.bf16.vlgmr.msra.gmra.mxu2 %v5456_v35  ;;  %v3412_v47 = vld [vmem:[%s7705_s1 + $0x210] sm:$0xf]  ;;  %v3549_v50 = vor.u32 %v4783_v41, %v3548_v40 }
  0x2a   :  { %2501 = vmatpush.bf16.msrb.mxu2 %v3581_v54  ;;  %2430 = vmatmul.bf16.vlgmr.msra.gmra.mxu0 %v5458_v36  ;;  %v4749_v48 = vld [vmem:[%s7705_s1 + $0x214] sm:$0xf0]  ;;  %v3476_v51 = vld [vmem:[%s7705_s1 + $0x290] sm:$0xf]  ;;  %v3613_v54 = vor.u32 %v4799_v45, %v3612_v44  ;;  %v22_v57 = vld [vmem:[%s7704_s0 + $0x8] sm:$0xff] }
  0x2b   :  { %2514 = vmatpush.bf16.msrb.mxu3 %v3645_v58  ;;  %v4765_v52 = vld [vmem:[%s7705_s1 + $0x294] sm:$0xf0]  ;;  %v3540_v53 = vld [vmem:[%s7705_s1 + $0x310] sm:$0xf]  ;;  %2443 = vmatmul.bf16.vlgmr.msra.gmra.mxu1 %v5468_v43  ;;  %v3404_v59 = vld [vmem:[%s7705_s1 + $0x200] sm:$0xf]  ;;  %v3413_v60 = vor.u32 %v4749_v48, %v3412_v47 }
  0x2c   :  { %2476 = vmatpush.bf16.msrb.mxu0 %v3445_v0  ;;  %2469 = vmatmul.bf16.vlgmr.msra.gmra.mxu3 %v5466_v42  ;;  %v4781_v55 = vld [vmem:[%s7705_s1 + $0x314] sm:$0xf0]  ;;  %v3604_v56 = vld [vmem:[%s7705_s1 + $0x390] sm:$0xf]  ;;  %35 = vst [vmem:[#allocation1 + $0x20] ss:$4 sm:$0xff] %v22_v57  ;;  %v3477_v0 = vor.u32 %v4765_v52, %v3476_v51 }
  0x2d   :  { %2489 = vmatpush.bf16.msrb.mxu1 %v3509_v3  ;;  %v4797_v58 = vld [vmem:[%s7705_s1 + $0x394] sm:$0xf0]  ;;  %v4747_v61 = vld [vmem:[%s7705_s1 + $0x204] sm:$0xf0]  ;;  %v3468_v62 = vld [vmem:[%s7705_s1 + $0x280] sm:$0xf]  ;;  %v3541_v1 = vor.u32 %v4781_v55, %v3540_v53 }
  0x2e   :  { %2502 = vmatpush.bf16.msrb.mxu2 %v3573_v4  ;;  %v4763_v63 = vld [vmem:[%s7705_s1 + $0x284] sm:$0xf0]  ;;  %v3532_v2 = vld [vmem:[%s7705_s1 + $0x300] sm:$0xf]  ;;  %v3605_v5 = vor.u32 %v4797_v58, %v3604_v56  ;;  %v4825_v8 = vld [vmem:[%s7705_s1 + $0x474] sm:$0xf0]  ;;  %v3405_v12 = vor.u32 %v4747_v61, %v3404_v59 }
  0x2f   :  { %2515 = vmatpush.bf16.msrb.mxu3 %v3637_v7  ;;  %v4779_v3 = vld [vmem:[%s7705_s1 + $0x304] sm:$0xf0]  ;;  %v3596_v4 = vld [vmem:[%s7705_s1 + $0x380] sm:$0xf]  ;;  %v3716_v7 = vld [vmem:[%s7705_s1 + $0x470] sm:$0xf] }
  0x30   :  { %2477 = vmatpush.bf16.msrb.mxu0 %v3437_v13  ;;  %v4795_v6 = vld [vmem:[%s7705_s1 + $0x384] sm:$0xf0]  ;;  %v3780_v9 = vld [vmem:[%s7705_s1 + $0x4f0] sm:$0xf]  ;;  %v4841_v10 = vld [vmem:[%s7705_s1 + $0x4f4] sm:$0xf0]  ;;  %v3717_v22 = vor.u32 %v4825_v8, %v3716_v7 }
  0x31   :  { %2490 = vmatpush.bf16.msrb.mxu1 %v3501_v16  ;;  %v3844_v11 = vld [vmem:[%s7705_s1 + $0x570] sm:$0xf]  ;;  %v4857_v13 = vld [vmem:[%s7705_s1 + $0x574] sm:$0xf0]  ;;  %v3469_v16 = vor.u32 %v4763_v63, %v3468_v62  ;;  %v3708_v18 = vld [vmem:[%s7705_s1 + $0x460] sm:$0xf]  ;;  %v3781_v27 = vor.u32 %v4841_v10, %v3780_v9 }
  0x32   :  { %2503 = vmatpush.bf16.msrb.mxu2 %v3565_v17  ;;  %v3908_v14 = vld [vmem:[%s7705_s1 + $0x5f0] sm:$0xf]  ;;  %v4873_v15 = vld [vmem:[%s7705_s1 + $0x5f4] sm:$0xf0]  ;;  %v3533_v17 = vor.u32 %v4779_v3, %v3532_v2  ;;  %v4823_v19 = vld [vmem:[%s7705_s1 + $0x464] sm:$0xf0] }
  0x33   :  { %2516 = vmatpush.bf16.msrb.mxu3 %v3629_v21  ;;  %v24_v20 = vld [vmem:[%s7704_s0 + $0x18] sm:$0xff]  ;;  %v3597_v21 = vor.u32 %v4795_v6, %v3596_v4  ;;  %v3772_v23 = vld [vmem:[%s7705_s1 + $0x4e0] sm:$0xf]  ;;  %v4839_v24 = vld [vmem:[%s7705_s1 + $0x4e4] sm:$0xf0]  ;;  %v3909_v31 = vor.u32 %v4873_v15, %v3908_v14  ;;  %v3709_v41 = vor.u32 %v4823_v19, %v3708_v18 }
  0x34   :  { %2478 = vmatpush.bf16.msrb.mxu0 %v3429_v28  ;;  %v42_v25 = vld.sshfl [vmem:[#allocation1 + $0x30] sm:$0xff pattern:$0x73625140]  ;;  %v40_v26 = vld.sshfl [vmem:[#allocation1 + $0x20] sm:$0xff pattern:$0x73625140]  ;;  %v3845_v28 = vor.u32 %v4857_v13, %v3844_v11  ;;  %v3773_v45 = vor.u32 %v4839_v24, %v3772_v23 }
  0x35   :  { %2491 = vmatpush.bf16.msrb.mxu1 %v3493_v29  ;;  %v43_v29 = vld.sshfl [vmem:[#allocation1 + $0x38] sm:$0xff pattern:$0x73625140]  ;;  %v41_v30 = vld.sshfl [vmem:[#allocation1 + $0x28] sm:$0xff pattern:$0x73625140] }
  0x36   :  { %2504 = vmatpush.bf16.msrb.mxu2 %v3557_v34  ;;  %v3836_v32 = vld [vmem:[%s7705_s1 + $0x560] sm:$0xf]  ;;  %v4855_v33 = vld [vmem:[%s7705_s1 + $0x564] sm:$0xf0]  ;;  %v5576_v34 = vpack.c.bf16 %v42_v25, %v42_v25  ;;  %45 = vst [vmem:[#allocation1 + $0x20] ss:$4 sm:$0xff] %v24_v20  ;;  %v5586_v40 = vpack.c.bf16 %v43_v29, %v43_v29  ;;  %v5588_v44 = vpack.c.bf16 %v41_v30, %v41_v30 }
  0x37   :  { %2517 = vmatpush.bf16.msrb.mxu3 %v3621_v39  ;;  %v3900_v37 = vld [vmem:[%s7705_s1 + $0x5e0] sm:$0xf]  ;;  %v4871_v38 = vld [vmem:[%s7705_s1 + $0x5e4] sm:$0xf0]  ;;  %v5584_v39 = vpack.c.bf16 %v40_v26, %v40_v26  ;;  %v3700_v47 = vld [vmem:[%s7705_s1 + $0x450] sm:$0xf] }
  0x38   :  { %2479 = vmatpush.bf16.msrb.mxu0 %v3421_v46  ;;  %v3837_v46 = vor.u32 %v4855_v33, %v3836_v32  ;;  %v4821_v48 = vld [vmem:[%s7705_s1 + $0x454] sm:$0xf0]  ;;  %v3828_v52 = vld [vmem:[%s7705_s1 + $0x550] sm:$0xf]  ;;  %v3692_v59 = vld [vmem:[%s7705_s1 + $0x440] sm:$0xf] }
  0x39   :  { %2492 = vmatpush.bf16.msrb.mxu1 %v3485_v49  ;;  %v3764_v49 = vld [vmem:[%s7705_s1 + $0x4d0] sm:$0xf]  ;;  %v4837_v51 = vld [vmem:[%s7705_s1 + $0x4d4] sm:$0xf0]  ;;  %v3701_v56 = vor.u32 %v4821_v48, %v3700_v47  ;;  %v3756_v61 = vld [vmem:[%s7705_s1 + $0x4c0] sm:$0xf] }
  0x3a   :  { %2505 = vmatpush.bf16.msrb.mxu2 %v3549_v50  ;;  %v3901_v50 = vor.u32 %v4871_v38, %v3900_v37  ;;  %v4853_v53 = vld [vmem:[%s7705_s1 + $0x554] sm:$0xf0]  ;;  %v3765_v57 = vor.u32 %v4837_v51, %v3764_v49  ;;  %v4835_v63 = vld [vmem:[%s7705_s1 + $0x4c4] sm:$0xf0]  ;;  %v3884_v2 = vld [vmem:[%s7705_s1 + $0x5c0] sm:$0xf] }
  0x3b   :  { %2518 = vmatpush.bf16.msrb.mxu3 %v3613_v54  ;;  %v3892_v54 = vld [vmem:[%s7705_s1 + $0x5d0] sm:$0xf]  ;;  %v4869_v55 = vld [vmem:[%s7705_s1 + $0x5d4] sm:$0xf0]  ;;  %v3829_v58 = vor.u32 %v4853_v53, %v3828_v52  ;;  %v4867_v3 = vld [vmem:[%s7705_s1 + $0x5c4] sm:$0xf0]  ;;  %v3757_v8 = vor.u32 %v4835_v63, %v3756_v61 }
  0x3c   :  { %2480 = vmatpush.bf16.msrb.mxu0 %v3413_v60  ;;  %v4819_v60 = vld [vmem:[%s7705_s1 + $0x444] sm:$0xf0]  ;;  %v3893_v62 = vor.u32 %v4869_v55, %v3892_v54  ;;  %v4817_v6 = vld [vmem:[%s7705_s1 + $0x434] sm:$0xf0]  ;;  %v3748_v7 = vld [vmem:[%s7705_s1 + $0x4b0] sm:$0xf]  ;;  %v3885_v13 = vor.u32 %v4867_v3, %v3884_v2 }
  0x3d   :  { %2493 = vmatpush.bf16.msrb.mxu1 %v3477_v0  ;;  %v3820_v0 = vld [vmem:[%s7705_s1 + $0x540] sm:$0xf]  ;;  %v3693_v4 = vor.u32 %v4819_v60, %v3692_v59  ;;  %v4833_v10 = vld [vmem:[%s7705_s1 + $0x4b4] sm:$0xf0]  ;;  %v3812_v11 = vld [vmem:[%s7705_s1 + $0x530] sm:$0xf] }
  0x3e   :  { %2506 = vmatpush.bf16.msrb.mxu2 %v3541_v1  ;;  %v4851_v1 = vld [vmem:[%s7705_s1 + $0x544] sm:$0xf0]  ;;  %v3876_v14 = vld [vmem:[%s7705_s1 + $0x5b0] sm:$0xf]  ;;  %v4865_v15 = vld [vmem:[%s7705_s1 + $0x5b4] sm:$0xf0]  ;;  %v3749_v23 = vor.u32 %v4833_v10, %v3748_v7 }
  0x3f   :  { %2519 = vmatpush.bf16.msrb.mxu3 %v3605_v5  ;;  %v3684_v5 = vld [vmem:[%s7705_s1 + $0x430] sm:$0xf]  ;;  %v3821_v9 = vor.u32 %v4851_v1, %v3820_v0  ;;  %v5672_v18 = vld.sshfl [vmem:[#allocation1] sm:$0xff pattern:$0x73625140] }
  0x40   :  { %2481 = vmatpush.bf16.msrb.mxu0 %v3405_v12  ;;  %v4849_v12 = vld [vmem:[%s7705_s1 + $0x534] sm:$0xf0]  ;;  %v5674_v19 = vld.sshfl [vmem:[#allocation1 + $0x10] sm:$0xff pattern:$0x73625140]  ;;  %v3685_v20 = vor.u32 %v4817_v6, %v3684_v5 }
  0x41   :  { %2494 = vmatpush.bf16.msrb.mxu1 %v3469_v16  ;;  %v25_v16 = vld [vmem:[%s7704_s0 + $0x20] sm:$0xff]  ;;  %v3813_v24 = vor.u32 %v4849_v12, %v3812_v11  ;;  %v4815_v25 = vld [vmem:[%s7705_s1 + $0x424] sm:$0xf0]  ;;  %v4829_v48 = vld [vmem:[%s7705_s1 + $0x494] sm:$0xf0] }
  0x42   :  { %2507 = vmatpush.bf16.msrb.mxu2 %v3533_v17  ;;  %v3676_v17 = vld [vmem:[%s7705_s1 + $0x420] sm:$0xf]  ;;  %v4847_v30 = vld [vmem:[%s7705_s1 + $0x524] sm:$0xf0]  ;;  %v3796_v49 = vld [vmem:[%s7705_s1 + $0x510] sm:$0xf] }
  0x43   :  { %2520 = vmatpush.bf16.msrb.mxu3 %v3597_v21  ;;  %2482 = vmatmul.bf16.vlgmr.msrb.gmra.mxu0 %v5584_v39  ;;  %v5676_v21 = vld.sshfl [vmem:[#allocation1 + $0x8] sm:$0xff pattern:$0x73625140]  ;;  %v3740_v26 = vld [vmem:[%s7705_s1 + $0x4a0] sm:$0xf]  ;;  %v3677_v33 = vor.u32 %v4815_v25, %v3676_v17 }
  0x44   :  { %2526 = vmatpush.bf16.msra.mxu0 %v3717_v22  ;;  %2495 = vmatmul.bf16.vlgmr.msrb.gmra.mxu1 %v5588_v44  ;;  %v5678_v22 = vld.sshfl [vmem:[#allocation1 + $0x18] sm:$0xff pattern:$0x73625140]  ;;  %v3804_v29 = vld [vmem:[%s7705_s1 + $0x520] sm:$0xf] }
  0x45   :  { %2539 = vmatpush.bf16.msra.mxu1 %v3781_v27  ;;  %2508 = vmatmul.bf16.vlgmr.msrb.gmra.mxu2 %v5576_v34  ;;  %54 = vst [vmem:[#allocation1] ss:$4 sm:$0xff] %v25_v16  ;;  %v3877_v27 = vor.u32 %v4865_v15, %v3876_v14  ;;  %v4863_v32 = vld [vmem:[%s7705_s1 + $0x5a4] sm:$0xf0]  ;;  %v3805_v38 = vor.u32 %v4847_v30, %v3804_v29  ;;  %v3860_v51 = vld [vmem:[%s7705_s1 + $0x590] sm:$0xf] }
  0x46   :  { %2552 = vmatpush.bf16.msra.mxu2 %v3845_v28  ;;  %2521 = vmatmul.bf16.vlgmr.msrb.gmra.mxu3 %v5586_v40  ;;  %v4831_v28 = vld [vmem:[%s7705_s1 + $0x4a4] sm:$0xf0]  ;;  %v4861_v52 = vld [vmem:[%s7705_s1 + $0x594] sm:$0xf0]  ;;  %v3660_v54 = vld [vmem:[%s7705_s1 + $0x400] sm:$0xf] }
  0x47   :  { %2565 = vmatpush.bf16.msra.mxu3 %v3909_v31  ;;  %v3868_v31 = vld [vmem:[%s7705_s1 + $0x5a0] sm:$0xf]  ;;  %v3741_v37 = vor.u32 %v4831_v28, %v3740_v26  ;;  %v4811_v55 = vld [vmem:[%s7705_s1 + $0x404] sm:$0xf0]  ;;  %v3861_v61 = vor.u32 %v4861_v52, %v3860_v51  ;;  %v3972_v1 = vld [vmem:[%s7705_s1 + $0x670] sm:$0xf]  ;;  %v5797_v28 = vpack.c.bf16 %v5674_v19, %v5674_v19 }
  0x48   :  { %2527 = vmatpush.bf16.msra.mxu0 %v3709_v41  ;;  %v3668_v41 = vld [vmem:[%s7705_s1 + $0x410] sm:$0xf]  ;;  %v3869_v47 = vor.u32 %v4863_v32, %v3868_v31  ;;  %v4827_v59 = vld [vmem:[%s7705_s1 + $0x484] sm:$0xf0]  ;;  %v3788_v60 = vld [vmem:[%s7705_s1 + $0x500] sm:$0xf]  ;;  %v5811_v31 = vpack.c.bf16 %v5678_v22, %v5678_v22 }
  0x49   :  { %2540 = vmatpush.bf16.msra.mxu1 %v3773_v45  ;;  %v4813_v45 = vld [vmem:[%s7705_s1 + $0x414] sm:$0xf0]  ;;  %v3852_v63 = vld [vmem:[%s7705_s1 + $0x580] sm:$0xf]  ;;  %v4859_v0 = vld [vmem:[%s7705_s1 + $0x584] sm:$0xf0] }
  0x4a   :  { %2553 = vmatpush.bf16.msra.mxu2 %v3837_v46  ;;  %v3732_v46 = vld [vmem:[%s7705_s1 + $0x490] sm:$0xf]  ;;  %v3669_v53 = vor.u32 %v4813_v45, %v3668_v41  ;;  %v4889_v2 = vld [vmem:[%s7705_s1 + $0x674] sm:$0xf0]  ;;  %v3853_v12 = vor.u32 %v4859_v0, %v3852_v63  ;;  %v3964_v16 = vld [vmem:[%s7705_s1 + $0x660] sm:$0xf] }
  0x4b   :  { %2566 = vmatpush.bf16.msra.mxu3 %v3901_v50  ;;  %v4845_v50 = vld [vmem:[%s7705_s1 + $0x514] sm:$0xf0]  ;;  %v4036_v3 = vld [vmem:[%s7705_s1 + $0x6f0] sm:$0xf]  ;;  %v4887_v17 = vld [vmem:[%s7705_s1 + $0x664] sm:$0xf0] }
  0x4c   :  { %2528 = vmatpush.bf16.msra.mxu0 %v3701_v56  ;;  %v3733_v56 = vor.u32 %v4829_v48, %v3732_v46  ;;  %v4905_v5 = vld [vmem:[%s7705_s1 + $0x6f4] sm:$0xf0]  ;;  %v4100_v6 = vld [vmem:[%s7705_s1 + $0x770] sm:$0xf]  ;;  %v4903_v25 = vld [vmem:[%s7705_s1 + $0x6e4] sm:$0xf0]  ;;  %v3965_v19 = vor.u32 %v4887_v17, %v3964_v16 }
  0x4d   :  { %2541 = vmatpush.bf16.msra.mxu1 %v3765_v57  ;;  %v3797_v57 = vor.u32 %v4845_v50, %v3796_v49  ;;  %v4921_v7 = vld [vmem:[%s7705_s1 + $0x774] sm:$0xf0]  ;;  %v4164_v10 = vld [vmem:[%s7705_s1 + $0x7f0] sm:$0xf]  ;;  %v4037_v14 = vor.u32 %v4905_v5, %v4036_v3  ;;  %v4092_v26 = vld [vmem:[%s7705_s1 + $0x760] sm:$0xf] }
  0x4e   :  { %2554 = vmatpush.bf16.msra.mxu2 %v3829_v58  ;;  %v3724_v58 = vld [vmem:[%s7705_s1 + $0x480] sm:$0xf]  ;;  %v4937_v11 = vld [vmem:[%s7705_s1 + $0x7f4] sm:$0xf0]  ;;  %v4101_v15 = vor.u32 %v4921_v7, %v4100_v6  ;;  %v4935_v30 = vld [vmem:[%s7705_s1 + $0x7e4] sm:$0xf0] }
  0x4f   :  { %2567 = vmatpush.bf16.msra.mxu3 %v3893_v62  ;;  %v4843_v62 = vld [vmem:[%s7705_s1 + $0x504] sm:$0xf0]  ;;  %v4156_v29 = vld [vmem:[%s7705_s1 + $0x7e0] sm:$0xf]  ;;  %v4901_v22 = vld [vmem:[%s7705_s1 + $0x6d4] sm:$0xf0] }
  0x50   :  { %2529 = vmatpush.bf16.msra.mxu0 %v3693_v4  ;;  %v3661_v4 = vor.u32 %v4811_v55, %v3660_v54  ;;  %v4157_v41 = vor.u32 %v4935_v30, %v4156_v29  ;;  %v4084_v45 = vld [vmem:[%s7705_s1 + $0x750] sm:$0xf]  ;;  %v4917_v46 = vld [vmem:[%s7705_s1 + $0x754] sm:$0xf0]  ;;  %v3948_v49 = vld [vmem:[%s7705_s1 + $0x640] sm:$0xf] }
  0x51   :  { %2542 = vmatpush.bf16.msra.mxu1 %v3757_v8  ;;  %v3725_v8 = vor.u32 %v4827_v59, %v3724_v58  ;;  %v4933_v48 = vld [vmem:[%s7705_s1 + $0x7d4] sm:$0xf0]  ;;  %v4883_v50 = vld [vmem:[%s7705_s1 + $0x644] sm:$0xf0]  ;;  %v4012_v52 = vld [vmem:[%s7705_s1 + $0x6c0] sm:$0xf]  ;;  %v4085_v58 = vor.u32 %v4917_v46, %v4084_v45 }
  0x52   :  { %2555 = vmatpush.bf16.msra.mxu2 %v3821_v9  ;;  %v3789_v9 = vor.u32 %v4843_v62, %v3788_v60  ;;  %v4076_v54 = vld [vmem:[%s7705_s1 + $0x740] sm:$0xf]  ;;  %v4915_v55 = vld [vmem:[%s7705_s1 + $0x744] sm:$0xf0]  ;;  %v3940_v5 = vld [vmem:[%s7705_s1 + $0x630] sm:$0xf] }
  0x53   :  { %2568 = vmatpush.bf16.msra.mxu3 %v3885_v13  ;;  %v3973_v13 = vor.u32 %v4889_v2, %v3972_v1  ;;  %v5862_v59 = vld.sshfl [vmem:[#allocation1 + $0x20] sm:$0xff pattern:$0x73625140]  ;;  %v5864_v60 = vld.sshfl [vmem:[#allocation1 + $0x30] sm:$0xff pattern:$0x73625140]  ;;  %v3949_v2 = vor.u32 %v4883_v50, %v3948_v49 }
  0x54   :  { %2530 = vmatpush.bf16.msra.mxu0 %v3685_v20  ;;  %v4028_v20 = vld [vmem:[%s7705_s1 + $0x6e0] sm:$0xf]  ;;  %v5866_v62 = vld.sshfl [vmem:[#allocation1 + $0x28] sm:$0xff pattern:$0x73625140] }
  0x55   :  { %2543 = vmatpush.bf16.msra.mxu1 %v3749_v23  ;;  %v4165_v23 = vor.u32 %v4937_v11, %v4164_v10  ;;  %v4029_v32 = vor.u32 %v4903_v25, %v4028_v20  ;;  %v5868_v63 = vld.sshfl [vmem:[#allocation1 + $0x38] sm:$0xff pattern:$0x73625140]  ;;  %v4140_v0 = vld [vmem:[%s7705_s1 + $0x7c0] sm:$0xf] }
  0x56   :  { %2556 = vmatpush.bf16.msra.mxu2 %v3813_v24  ;;  %v5784_v24 = vpack.c.bf16 %v5672_v18, %v5672_v18  ;;  %v5801_v18 = vpack.c.bf16 %v5676_v21, %v5676_v21  ;;  %v3956_v21 = vld [vmem:[%s7705_s1 + $0x650] sm:$0xf]  ;;  %v4931_v1 = vld [vmem:[%s7705_s1 + $0x7c4] sm:$0xf0]  ;;  %v4881_v6 = vld [vmem:[%s7705_s1 + $0x634] sm:$0xf0] }
  0x57   :  { %2569 = vmatpush.bf16.msra.mxu3 %v3877_v27  ;;  %v4919_v27 = vld [vmem:[%s7705_s1 + $0x764] sm:$0xf0]  ;;  %v4004_v7 = vld [vmem:[%s7705_s1 + $0x6b0] sm:$0xf]  ;;  %v4913_v11 = vld [vmem:[%s7705_s1 + $0x734] sm:$0xf0] }
  0x58   :  { %2531 = vmatpush.bf16.msra.mxu0 %v3677_v33  ;;  %v4093_v33 = vor.u32 %v4919_v27, %v4092_v26  ;;  %v4068_v10 = vld [vmem:[%s7705_s1 + $0x730] sm:$0xf]  ;;  %v3932_v17 = vld [vmem:[%s7705_s1 + $0x620] sm:$0xf]  ;;  %v4879_v20 = vld [vmem:[%s7705_s1 + $0x624] sm:$0xf0] }
  0x59   :  { %2544 = vmatpush.bf16.msra.mxu1 %v3741_v37  ;;  %v4885_v37 = vld [vmem:[%s7705_s1 + $0x654] sm:$0xf0]  ;;  %v4069_v16 = vor.u32 %v4913_v11, %v4068_v10  ;;  %v4895_v26 = vld [vmem:[%s7705_s1 + $0x6a4] sm:$0xf0]  ;;  %v4060_v27 = vld [vmem:[%s7705_s1 + $0x720] sm:$0xf] }
  0x5a   :  { %2557 = vmatpush.bf16.msra.mxu2 %v3805_v38  ;;  %v4020_v38 = vld [vmem:[%s7705_s1 + $0x6d0] sm:$0xf]  ;;  %v3957_v51 = vor.u32 %v4885_v37, %v3956_v21  ;;  %v4911_v29 = vld [vmem:[%s7705_s1 + $0x724] sm:$0xf0]  ;;  %v4124_v30 = vld [vmem:[%s7705_s1 + $0x7a0] sm:$0xf]  ;;  %v3933_v21 = vor.u32 %v4879_v20, %v3932_v17 }
  0x5b   :  { %2570 = vmatpush.bf16.msra.mxu3 %v3869_v47  ;;  %v4148_v47 = vld [vmem:[%s7705_s1 + $0x7d0] sm:$0xf]  ;;  %v4893_v45 = vld [vmem:[%s7705_s1 + $0x694] sm:$0xf0]  ;;  %v3916_v50 = vld [vmem:[%s7705_s1 + $0x600] sm:$0xf] }
  0x5c   :  { %2532 = vmatpush.bf16.msra.mxu0 %v3669_v53  ;;  %v4899_v53 = vld [vmem:[%s7705_s1 + $0x6c4] sm:$0xf0]  ;;  %v3924_v37 = vld [vmem:[%s7705_s1 + $0x610] sm:$0xf]  ;;  %v4925_v49 = vld [vmem:[%s7705_s1 + $0x794] sm:$0xf0] }
  0x5d   :  { %2545 = vmatpush.bf16.msra.mxu1 %v3733_v56  ;;  %v26_v56 = vld [vmem:[%s7704_s0 + $0x28] sm:$0xff]  ;;  %v4013_v3 = vor.u32 %v4899_v53, %v4012_v52  ;;  %v4052_v46 = vld [vmem:[%s7705_s1 + $0x710] sm:$0xf]  ;;  %v3980_v53 = vld [vmem:[%s7705_s1 + $0x680] sm:$0xf] }
  0x5e   :  { %2558 = vmatpush.bf16.msra.mxu2 %v3797_v57  ;;  %v4021_v57 = vor.u32 %v4901_v22, %v4020_v38  ;;  %55 = vst [vmem:[#allocation1 + $0x20] ss:$4 sm:$0xff] %v26_v56  ;;  %v4877_v38 = vld [vmem:[%s7705_s1 + $0x614] sm:$0xf0]  ;;  %v3988_v22 = vld [vmem:[%s7705_s1 + $0x690] sm:$0xf] }
  0x5f   :  { %2571 = vmatpush.bf16.msra.mxu3 %v3861_v61  ;;  %v4149_v61 = vor.u32 %v4933_v48, %v4148_v47  ;;  %v4909_v47 = vld [vmem:[%s7705_s1 + $0x714] sm:$0xf0]  ;;  %v4116_v48 = vld [vmem:[%s7705_s1 + $0x790] sm:$0xf]  ;;  %v4875_v52 = vld [vmem:[%s7705_s1 + $0x604] sm:$0xf0] }
  0x60   :  { %2533 = vmatpush.bf16.msra.mxu0 %v3661_v4  ;;  %v4077_v4 = vor.u32 %v4915_v55, %v4076_v54  ;;  %v4891_v54 = vld [vmem:[%s7705_s1 + $0x684] sm:$0xf0]  ;;  %v3989_v55 = vor.u32 %v4893_v45, %v3988_v22  ;;  %v4053_v56 = vor.u32 %v4909_v47, %v4052_v46 }
  0x61   :  { %2546 = vmatpush.bf16.msra.mxu1 %v3725_v8  ;;  %v4141_v8 = vor.u32 %v4931_v1, %v4140_v0  ;;  %v4117_v0 = vor.u32 %v4925_v49, %v4116_v48  ;;  %v4923_v1 = vld [vmem:[%s7705_s1 + $0x784] sm:$0xf0] }
  0x62   :  { %2559 = vmatpush.bf16.msra.mxu2 %v3789_v9  ;;  %v4897_v9 = vld [vmem:[%s7705_s1 + $0x6b4] sm:$0xf0] }
  0x63   :  { %2572 = vmatpush.bf16.msra.mxu3 %v3853_v12  ;;  %2534 = vmatmul.bf16.vlgmr.msra.gmra.mxu0 %v5784_v24  ;;  %v4132_v12 = vld [vmem:[%s7705_s1 + $0x7b0] sm:$0xf] }
  0x64   :  { %2578 = vmatpush.bf16.msrb.mxu0 %v3973_v13  ;;  %2547 = vmatmul.bf16.vlgmr.msra.gmra.mxu1 %v5801_v18  ;;  %v4929_v13 = vld [vmem:[%s7705_s1 + $0x7b4] sm:$0xf0] }
  0x65   :  { %2591 = vmatpush.bf16.msrb.mxu1 %v4037_v14  ;;  %2560 = vmatmul.bf16.vlgmr.msra.gmra.mxu2 %v5797_v28  ;;  %v3941_v14 = vor.u32 %v4881_v6, %v3940_v5  ;;  %v4133_v25 = vor.u32 %v4929_v13, %v4132_v12 }
  0x66   :  { %2604 = vmatpush.bf16.msrb.mxu2 %v4101_v15  ;;  %2573 = vmatmul.bf16.vlgmr.msra.gmra.mxu3 %v5811_v31  ;;  %v4005_v15 = vor.u32 %v4897_v9, %v4004_v7 }
  0x67   :  { %2617 = vmatpush.bf16.msrb.mxu3 %v4165_v23  ;;  %v3996_v23 = vld [vmem:[%s7705_s1 + $0x6a0] sm:$0xf] }
  0x68   :  { %2579 = vmatpush.bf16.msrb.mxu0 %v3965_v19  ;;  %v4927_v19 = vld [vmem:[%s7705_s1 + $0x7a4] sm:$0xf0] }
  0x69   :  { %2592 = vmatpush.bf16.msrb.mxu1 %v4029_v32  ;;  %v3997_v32 = vor.u32 %v4895_v26, %v3996_v23 }
  0x6a   :  { %2605 = vmatpush.bf16.msrb.mxu2 %v4093_v33  ;;  %v4061_v33 = vor.u32 %v4911_v29, %v4060_v27 }
  0x6b   :  { %2618 = vmatpush.bf16.msrb.mxu3 %v4157_v41  ;;  %v4125_v41 = vor.u32 %v4927_v19, %v4124_v30 }
  0x6c   :  { %2580 = vmatpush.bf16.msrb.mxu0 %v3957_v51  ;;  %v3925_v51 = vor.u32 %v4877_v38, %v3924_v37 }
  0x6d   :  { %2593 = vmatpush.bf16.msrb.mxu1 %v4021_v57  ;;  %v4044_v57 = vld [vmem:[%s7705_s1 + $0x700] sm:$0xf] }
  0x6e   :  { %2606 = vmatpush.bf16.msrb.mxu2 %v4085_v58  ;;  %v4907_v58 = vld [vmem:[%s7705_s1 + $0x704] sm:$0xf0] }
  0x6f   :  { %2619 = vmatpush.bf16.msrb.mxu3 %v4149_v61  ;;  %v4108_v61 = vld [vmem:[%s7705_s1 + $0x780] sm:$0xf] }
  0x70   :  { %2581 = vmatpush.bf16.msrb.mxu0 %v3949_v2  ;;  %v4228_v2 = vld [vmem:[%s7705_s1 + $0x870] sm:$0xf] }
  0x71   :  { %2594 = vmatpush.bf16.msrb.mxu1 %v4013_v3  ;;  %v4953_v3 = vld [vmem:[%s7705_s1 + $0x874] sm:$0xf0] }
  0x72   :  { %2607 = vmatpush.bf16.msrb.mxu2 %v4077_v4  ;;  %v4292_v4 = vld [vmem:[%s7705_s1 + $0x8f0] sm:$0xf] }
  0x73   :  { %2620 = vmatpush.bf16.msrb.mxu3 %v4141_v8 }
  0x74   :  { %2582 = vmatpush.bf16.msrb.mxu0 %v3941_v14 }
  0x75   :  { %2595 = vmatpush.bf16.msrb.mxu1 %v4005_v15 }
  0x76   :  { %2608 = vmatpush.bf16.msrb.mxu2 %v4069_v16 }
  0x77   :  { %2621 = vmatpush.bf16.msrb.mxu3 %v4133_v25 }
  0x78   :  { %2583 = vmatpush.bf16.msrb.mxu0 %v3933_v21 }
  0x79   :  { %2596 = vmatpush.bf16.msrb.mxu1 %v3997_v32 }
  0x7a   :  { %2609 = vmatpush.bf16.msrb.mxu2 %v4061_v33 }
  0x7b   :  { %2622 = vmatpush.bf16.msrb.mxu3 %v4125_v41 }
  0x7c   :  { %10 = vsyncpa [#allocation3], 0  ;;  %2584 = vmatpush.bf16.msrb.mxu0 %v3925_v51  ;;  %v3917_v5 = vor.u32 %v4875_v52, %v3916_v50  ;;  %v4969_v6 = vld [vmem:[%s7705_s1 + $0x8f4] sm:$0xf0]  ;;  %v4356_v7 = vld [vmem:[%s7705_s1 + $0x970] sm:$0xf]  ;;  %v3981_v9 = vor.u32 %v4891_v54, %v3980_v53  ;;  %v4045_v10 = vor.u32 %v4907_v58, %v4044_v57  ;;  %v4109_v13 = vor.u32 %v4923_v1, %v4108_v61 }
  0x7d   :  { %v4985_v8 = vld [vmem:[%s7705_s1 + $0x974] sm:$0xf0]  ;;  %2597 = vmatpush.bf16.msrb.mxu1 %v3989_v55  ;;  %v4420_v11 = vld [vmem:[%s7705_s1 + $0x9f0] sm:$0xf]  ;;  %v4229_v14 = vor.u32 %v4953_v3, %v4228_v2  ;;  %v4293_v15 = vor.u32 %v4969_v6, %v4292_v4  ;;  %v4220_v17 = vld [vmem:[%s7705_s1 + $0x860] sm:$0xf]  ;;  %v6007_v26 = vpack.c.bf16 %v5862_v59, %v5862_v59  ;;  %v6020_v19 = vpack.c.bf16 %v5864_v60, %v5864_v60 }
  0x7e   :  { %2610 = vmatpush.bf16.msrb.mxu2 %v4053_v56  ;;  %v5001_v12 = vld [vmem:[%s7705_s1 + $0x9f4] sm:$0xf0]  ;;  %v4357_v16 = vor.u32 %v4985_v8, %v4356_v7  ;;  %v4951_v20 = vld [vmem:[%s7705_s1 + $0x864] sm:$0xf0]  ;;  %v4284_v23 = vld [vmem:[%s7705_s1 + $0x8e0] sm:$0xf]  ;;  %v6024_v59 = vpack.c.bf16 %v5866_v62, %v5866_v62  ;;  %v6034_v33 = vpack.c.bf16 %v5868_v63, %v5868_v63 }
  0x7f   :  { %2623 = vmatpush.bf16.msrb.mxu3 %v4117_v0  ;;  %v4421_v25 = vor.u32 %v5001_v12, %v4420_v11  ;;  %v4967_v27 = vld [vmem:[%s7705_s1 + $0x8e4] sm:$0xf0]  ;;  %v4348_v29 = vld [vmem:[%s7705_s1 + $0x960] sm:$0xf]  ;;  %v4221_v60 = vor.u32 %v4951_v20, %v4220_v17  ;;  %v4212_v38 = vld [vmem:[%s7705_s1 + $0x850] sm:$0xf] }
  0x80   :  { %2585 = vmatpush.bf16.msrb.mxu0 %v3917_v5  ;;  %v4983_v30 = vld [vmem:[%s7705_s1 + $0x964] sm:$0xf0]  ;;  %v4412_v21 = vld [vmem:[%s7705_s1 + $0x9e0] sm:$0xf]  ;;  %v4285_v37 = vor.u32 %v4967_v27, %v4284_v23  ;;  %v4949_v22 = vld [vmem:[%s7705_s1 + $0x854] sm:$0xf0] }
  0x81   :  { %2598 = vmatpush.bf16.msrb.mxu1 %v3981_v9  ;;  %v4999_v32 = vld [vmem:[%s7705_s1 + $0x9e4] sm:$0xf0]  ;;  %v4349_v62 = vor.u32 %v4983_v30, %v4348_v29  ;;  %v4276_v41 = vld [vmem:[%s7705_s1 + $0x8d0] sm:$0xf]  ;;  %v4965_v45 = vld [vmem:[%s7705_s1 + $0x8d4] sm:$0xf0]  ;;  %v4213_v50 = vor.u32 %v4949_v22, %v4212_v38 }
  0x82   :  { %2611 = vmatpush.bf16.msrb.mxu2 %v4045_v10  ;;  %v4413_v63 = vor.u32 %v4999_v32, %v4412_v21  ;;  %v4340_v46 = vld [vmem:[%s7705_s1 + $0x950] sm:$0xf]  ;;  %v4981_v47 = vld [vmem:[%s7705_s1 + $0x954] sm:$0xf0]  ;;  %v4277_v51 = vor.u32 %v4965_v45, %v4276_v41  ;;  %v4204_v53 = vld [vmem:[%s7705_s1 + $0x840] sm:$0xf] }
  0x83   :  { %2624 = vmatpush.bf16.msrb.mxu3 %v4109_v13  ;;  %2586 = vmatmul.bf16.vlgmr.msrb.gmra.mxu0 %v6007_v26  ;;  %v4404_v48 = vld [vmem:[%s7705_s1 + $0x9d0] sm:$0xf]  ;;  %v4997_v49 = vld [vmem:[%s7705_s1 + $0x9d4] sm:$0xf0]  ;;  %v4341_v52 = vor.u32 %v4981_v47, %v4340_v46  ;;  %v4947_v54 = vld [vmem:[%s7705_s1 + $0x844] sm:$0xf0] }
  0x84   :  { %2630 = vmatpush.bf16.msra.mxu0 %v4229_v14  ;;  %2599 = vmatmul.bf16.vlgmr.msrb.gmra.mxu1 %v6024_v59  ;;  %v4268_v55 = vld [vmem:[%s7705_s1 + $0x8c0] sm:$0xf]  ;;  %v4405_v56 = vor.u32 %v4997_v49, %v4404_v48  ;;  %v4963_v57 = vld [vmem:[%s7705_s1 + $0x8c4] sm:$0xf0]  ;;  %v4205_v2 = vor.u32 %v4947_v54, %v4204_v53  ;;  %v4196_v5 = vld [vmem:[%s7705_s1 + $0x830] sm:$0xf] }
  0x85   :  { %2643 = vmatpush.bf16.msra.mxu1 %v4293_v15  ;;  %2612 = vmatmul.bf16.vlgmr.msrb.gmra.mxu2 %v6020_v19  ;;  %v4332_v58 = vld [vmem:[%s7705_s1 + $0x940] sm:$0xf]  ;;  %v4979_v61 = vld [vmem:[%s7705_s1 + $0x944] sm:$0xf0]  ;;  %v4269_v3 = vor.u32 %v4963_v57, %v4268_v55  ;;  %v4945_v6 = vld [vmem:[%s7705_s1 + $0x834] sm:$0xf0] }
  0x86   :  { %2656 = vmatpush.bf16.msra.mxu2 %v4357_v16  ;;  %2625 = vmatmul.bf16.vlgmr.msrb.gmra.mxu3 %v6034_v33  ;;  %v4396_v0 = vld [vmem:[%s7705_s1 + $0x9c0] sm:$0xf]  ;;  %v4995_v1 = vld [vmem:[%s7705_s1 + $0x9c4] sm:$0xf0]  ;;  %v4333_v4 = vor.u32 %v4979_v61, %v4332_v58  ;;  %v4260_v7 = vld [vmem:[%s7705_s1 + $0x8b0] sm:$0xf]  ;;  %v4197_v14 = vor.u32 %v4945_v6, %v4196_v5 }
  0x87   :  { %2669 = vmatpush.bf16.msra.mxu3 %v4421_v25  ;;  %v4397_v8 = vor.u32 %v4995_v1, %v4396_v0  ;;  %v4961_v9 = vld [vmem:[%s7705_s1 + $0x8b4] sm:$0xf0]  ;;  %v4324_v10 = vld [vmem:[%s7705_s1 + $0x930] sm:$0xf]  ;;  %v4188_v17 = vld [vmem:[%s7705_s1 + $0x820] sm:$0xf] }
  0x88   :  { %2631 = vmatpush.bf16.msra.mxu0 %v4221_v60  ;;  %v4977_v11 = vld [vmem:[%s7705_s1 + $0x934] sm:$0xf0]  ;;  %v4388_v12 = vld [vmem:[%s7705_s1 + $0x9b0] sm:$0xf]  ;;  %v4261_v15 = vor.u32 %v4961_v9, %v4260_v7  ;;  %v4943_v20 = vld [vmem:[%s7705_s1 + $0x824] sm:$0xf0] }
  0x89   :  { %2644 = vmatpush.bf16.msra.mxu1 %v4285_v37  ;;  %v4993_v13 = vld [vmem:[%s7705_s1 + $0x9b4] sm:$0xf0]  ;;  %v4325_v16 = vor.u32 %v4977_v11, %v4324_v10  ;;  %v4252_v23 = vld [vmem:[%s7705_s1 + $0x8a0] sm:$0xf]  ;;  %v4959_v27 = vld [vmem:[%s7705_s1 + $0x8a4] sm:$0xf0]  ;;  %v4189_v60 = vor.u32 %v4943_v20, %v4188_v17 }
  0x8a   :  { %2657 = vmatpush.bf16.msra.mxu2 %v4349_v62  ;;  %v4389_v25 = vor.u32 %v4993_v13, %v4388_v12  ;;  %v4316_v29 = vld [vmem:[%s7705_s1 + $0x920] sm:$0xf]  ;;  %v4975_v30 = vld [vmem:[%s7705_s1 + $0x924] sm:$0xf0]  ;;  %v4253_v37 = vor.u32 %v4959_v27, %v4252_v23  ;;  %v4180_v38 = vld [vmem:[%s7705_s1 + $0x810] sm:$0xf] }
  0x8b   :  { %2670 = vmatpush.bf16.msra.mxu3 %v4413_v63  ;;  %v4380_v21 = vld [vmem:[%s7705_s1 + $0x9a0] sm:$0xf]  ;;  %v4991_v32 = vld [vmem:[%s7705_s1 + $0x9a4] sm:$0xf0]  ;;  %v4317_v62 = vor.u32 %v4975_v30, %v4316_v29  ;;  %v4941_v22 = vld [vmem:[%s7705_s1 + $0x814] sm:$0xf0] }
  0x8c   :  { %2632 = vmatpush.bf16.msra.mxu0 %v4213_v50  ;;  %v4244_v41 = vld [vmem:[%s7705_s1 + $0x890] sm:$0xf]  ;;  %v4381_v63 = vor.u32 %v4991_v32, %v4380_v21  ;;  %v4957_v45 = vld [vmem:[%s7705_s1 + $0x894] sm:$0xf0]  ;;  %v4172_v50 = vld [vmem:[%s7705_s1 + $0x800] sm:$0xf] }
  0x8d   :  { %2645 = vmatpush.bf16.msra.mxu1 %v4277_v51  ;;  %v4308_v46 = vld [vmem:[%s7705_s1 + $0x910] sm:$0xf]  ;;  %v4973_v47 = vld [vmem:[%s7705_s1 + $0x914] sm:$0xf0]  ;;  %v4181_v51 = vor.u32 %v4941_v22, %v4180_v38  ;;  %v4236_v53 = vld [vmem:[%s7705_s1 + $0x880] sm:$0xf]  ;;  %v4245_v55 = vor.u32 %v4957_v45, %v4244_v41 }
  0x8e   :  { %2658 = vmatpush.bf16.msra.mxu2 %v4341_v52  ;;  %v4372_v48 = vld [vmem:[%s7705_s1 + $0x990] sm:$0xf]  ;;  %v4989_v49 = vld [vmem:[%s7705_s1 + $0x994] sm:$0xf0]  ;;  %v4939_v52 = vld [vmem:[%s7705_s1 + $0x804] sm:$0xf0] }
  0x8f   :  { %2671 = vmatpush.bf16.msra.mxu3 %v4405_v56  ;;  %v4955_v54 = vld [vmem:[%s7705_s1 + $0x884] sm:$0xf0]  ;;  %v4309_v56 = vor.u32 %v4973_v47, %v4308_v46  ;;  %v4300_v57 = vld [vmem:[%s7705_s1 + $0x900] sm:$0xf]  ;;  %v4373_v0 = vor.u32 %v4989_v49, %v4372_v48  ;;  %v5033_v5 = vld [vmem:[%s7705_s1 + $0xaf4] sm:$0xf0]  ;;  %v4173_v7 = vor.u32 %v4939_v52, %v4172_v50 }
  0x90   :  { %2633 = vmatpush.bf16.msra.mxu0 %v4205_v2  ;;  %v4971_v58 = vld [vmem:[%s7705_s1 + $0x904] sm:$0xf0]  ;;  %v4364_v61 = vld [vmem:[%s7705_s1 + $0x980] sm:$0xf]  ;;  %v4484_v2 = vld [vmem:[%s7705_s1 + $0xa70] sm:$0xf]  ;;  %v4237_v11 = vor.u32 %v4955_v54, %v4236_v53 }
  0x91   :  { %2646 = vmatpush.bf16.msra.mxu1 %v4269_v3  ;;  %v4987_v1 = vld [vmem:[%s7705_s1 + $0x984] sm:$0xf0]  ;;  %v5017_v3 = vld [vmem:[%s7705_s1 + $0xa74] sm:$0xf0]  ;;  %v4612_v6 = vld [vmem:[%s7705_s1 + $0xb70] sm:$0xf]  ;;  %v4301_v12 = vor.u32 %v4971_v58, %v4300_v57 }
  0x92   :  { %2659 = vmatpush.bf16.msra.mxu2 %v4333_v4  ;;  %v4548_v4 = vld [vmem:[%s7705_s1 + $0xaf0] sm:$0xf]  ;;  %v5065_v10 = vld [vmem:[%s7705_s1 + $0xbf4] sm:$0xf0]  ;;  %v4476_v27 = vld [vmem:[%s7705_s1 + $0xa60] sm:$0xf] }
  0x93   :  { %2672 = vmatpush.bf16.msra.mxu3 %v4397_v8  ;;  %v5049_v8 = vld [vmem:[%s7705_s1 + $0xb74] sm:$0xf0]  ;;  %v4676_v9 = vld [vmem:[%s7705_s1 + $0xbf0] sm:$0xf]  ;;  %v4549_v23 = vor.u32 %v5033_v5, %v4548_v4  ;;  %v5015_v29 = vld [vmem:[%s7705_s1 + $0xa64] sm:$0xf0] }
  0x94   :  { %2634 = vmatpush.bf16.msra.mxu0 %v4197_v14  ;;  %v56_v13 = vld.sshfl [vmem:[#allocation1] sm:$0xff pattern:$0x73625140]  ;;  %v58_v14 = vld.sshfl [vmem:[#allocation1 + $0x10] sm:$0xff pattern:$0x73625140]  ;;  %v4677_v21 = vor.u32 %v5065_v10, %v4676_v9  ;;  %v4477_v46 = vor.u32 %v5015_v29, %v4476_v27 }
  0x95   :  { %2647 = vmatpush.bf16.msra.mxu1 %v4261_v15  ;;  %v4365_v15 = vor.u32 %v4987_v1, %v4364_v61  ;;  %v57_v17 = vld.sshfl [vmem:[#allocation1 + $0x8] sm:$0xff pattern:$0x73625140]  ;;  %v59_v20 = vld.sshfl [vmem:[#allocation1 + $0x18] sm:$0xff pattern:$0x73625140]  ;;  %v6217_v32 = vpack.c.bf16 %v56_v13, %v56_v13  ;;  %v6228_v38 = vpack.c.bf16 %v58_v14, %v58_v14 }
  0x96   :  { %2660 = vmatpush.bf16.msra.mxu2 %v4325_v16  ;;  %v4485_v16 = vor.u32 %v5017_v3, %v4484_v2  ;;  %v4540_v30 = vld [vmem:[%s7705_s1 + $0xae0] sm:$0xf]  ;;  %v6230_v22 = vpack.c.bf16 %v57_v17, %v57_v17  ;;  %v6238_v45 = vpack.c.bf16 %v59_v20, %v59_v20  ;;  %v4468_v49 = vld [vmem:[%s7705_s1 + $0xa50] sm:$0xf]  ;;  %v5013_v50 = vld [vmem:[%s7705_s1 + $0xa54] sm:$0xf0] }
  0x97   :  { %2673 = vmatpush.bf16.msra.mxu3 %v4389_v25  ;;  %v4613_v25 = vor.u32 %v5049_v8, %v4612_v6  ;;  %v4668_v41 = vld [vmem:[%s7705_s1 + $0xbe0] sm:$0xf]  ;;  %v5029_v53 = vld [vmem:[%s7705_s1 + $0xad4] sm:$0xf0]  ;;  %v4596_v54 = vld [vmem:[%s7705_s1 + $0xb50] sm:$0xf]  ;;  %v4469_v58 = vor.u32 %v5013_v50, %v4468_v49 }
  0x98   :  { %2635 = vmatpush.bf16.msra.mxu0 %v4189_v60  ;;  %v5031_v60 = vld [vmem:[%s7705_s1 + $0xae4] sm:$0xf0]  ;;  %v5061_v57 = vld [vmem:[%s7705_s1 + $0xbd4] sm:$0xf0]  ;;  %v4460_v1 = vld [vmem:[%s7705_s1 + $0xa40] sm:$0xf] }
  0x99   :  { %2648 = vmatpush.bf16.msra.mxu1 %v4253_v37  ;;  %v4604_v37 = vld [vmem:[%s7705_s1 + $0xb60] sm:$0xf]  ;;  %v4541_v47 = vor.u32 %v5031_v60, %v4540_v30  ;;  %v5011_v2 = vld [vmem:[%s7705_s1 + $0xa44] sm:$0xf0]  ;;  %v4452_v13 = vld [vmem:[%s7705_s1 + $0xa30] sm:$0xf] }
  0x9a   :  { %2661 = vmatpush.bf16.msra.mxu2 %v4317_v62  ;;  %v5047_v62 = vld [vmem:[%s7705_s1 + $0xb64] sm:$0xf0]  ;;  %v4524_v3 = vld [vmem:[%s7705_s1 + $0xac0] sm:$0xf]  ;;  %v4461_v10 = vor.u32 %v5011_v2, %v4460_v1  ;;  %v5009_v14 = vld [vmem:[%s7705_s1 + $0xa34] sm:$0xf0] }
  0x9b   :  { %2674 = vmatpush.bf16.msra.mxu3 %v4381_v63  ;;  %v5063_v63 = vld [vmem:[%s7705_s1 + $0xbe4] sm:$0xf0]  ;;  %v4605_v48 = vor.u32 %v5047_v62, %v4604_v37  ;;  %v4588_v6 = vld [vmem:[%s7705_s1 + $0xb40] sm:$0xf]  ;;  %v5025_v17 = vld [vmem:[%s7705_s1 + $0xab4] sm:$0xf0]  ;;  %v4453_v29 = vor.u32 %v5009_v14, %v4452_v13 }
  0x9c   :  { %2636 = vmatpush.bf16.msra.mxu0 %v4181_v51  ;;  %v4532_v51 = vld [vmem:[%s7705_s1 + $0xad0] sm:$0xf]  ;;  %v4669_v52 = vor.u32 %v5063_v63, %v4668_v41  ;;  %v5027_v5 = vld [vmem:[%s7705_s1 + $0xac4] sm:$0xf0]  ;;  %v4652_v8 = vld [vmem:[%s7705_s1 + $0xbc0] sm:$0xf] }
  0x9d   :  { %2649 = vmatpush.bf16.msra.mxu1 %v4245_v55  ;;  %v5045_v55 = vld [vmem:[%s7705_s1 + $0xb54] sm:$0xf0]  ;;  %v4533_v61 = vor.u32 %v5029_v53, %v4532_v51  ;;  %v5059_v9 = vld [vmem:[%s7705_s1 + $0xbc4] sm:$0xf0]  ;;  %v4580_v20 = vld [vmem:[%s7705_s1 + $0xb30] sm:$0xf] }
  0x9e   :  { %2662 = vmatpush.bf16.msra.mxu2 %v4309_v56  ;;  %v4660_v56 = vld [vmem:[%s7705_s1 + $0xbd0] sm:$0xf]  ;;  %v5057_v27 = vld [vmem:[%s7705_s1 + $0xbb4] sm:$0xf0]  ;;  %v4444_v30 = vld [vmem:[%s7705_s1 + $0xa20] sm:$0xf] }
  0x9f   :  { %2675 = vmatpush.bf16.msra.mxu3 %v4373_v0  ;;  %v4597_v0 = vor.u32 %v5045_v55, %v4596_v54  ;;  %v4661_v4 = vor.u32 %v5061_v57, %v4660_v56  ;;  %v5007_v37 = vld [vmem:[%s7705_s1 + $0xa24] sm:$0xf0]  ;;  %v4508_v62 = vld [vmem:[%s7705_s1 + $0xaa0] sm:$0xf]  ;;  %v5005_v55 = vld [vmem:[%s7705_s1 + $0xa14] sm:$0xf0] }
  0xa0   :  { %2637 = vmatpush.bf16.msra.mxu0 %v4173_v7  ;;  %v5043_v7 = vld [vmem:[%s7705_s1 + $0xb44] sm:$0xf0]  ;;  %v4636_v49 = vld [vmem:[%s7705_s1 + $0xba0] sm:$0xf]  ;;  %v4445_v51 = vor.u32 %v5007_v37, %v4444_v30  ;;  %v4500_v56 = vld [vmem:[%s7705_s1 + $0xa90] sm:$0xf] }
  0xa1   :  { %2650 = vmatpush.bf16.msra.mxu1 %v4237_v11  ;;  %v4525_v11 = vor.u32 %v5027_v5, %v4524_v3  ;;  %v5023_v41 = vld [vmem:[%s7705_s1 + $0xaa4] sm:$0xf0]  ;;  %v5037_v1 = vld [vmem:[%s7705_s1 + $0xb14] sm:$0xf0]  ;;  %v4628_v2 = vld [vmem:[%s7705_s1 + $0xb90] sm:$0xf] }
  0xa2   :  { %2663 = vmatpush.bf16.msra.mxu2 %v4301_v12  ;;  %v4589_v12 = vor.u32 %v5043_v7, %v4588_v6  ;;  %v5055_v50 = vld [vmem:[%s7705_s1 + $0xba4] sm:$0xf0]  ;;  %v4509_v53 = vor.u32 %v5023_v41, %v4508_v62  ;;  %v5053_v3 = vld [vmem:[%s7705_s1 + $0xb94] sm:$0xf0]  ;;  %v4492_v7 = vld [vmem:[%s7705_s1 + $0xa80] sm:$0xf] }
  0xa3   :  { %2676 = vmatpush.bf16.msra.mxu3 %v4365_v15  ;;  %2638 = vmatmul.bf16.vlgmr.msra.gmra.mxu0 %v6217_v32  ;;  %v4516_v15 = vld [vmem:[%s7705_s1 + $0xab0] sm:$0xf]  ;;  %v5003_v6 = vld [vmem:[%s7705_s1 + $0xa04] sm:$0xf0]  ;;  %v4620_v14 = vld [vmem:[%s7705_s1 + $0xb80] sm:$0xf] }
  0xa4   :  { %2682 = vmatpush.bf16.msrb.mxu0 %v4485_v16  ;;  %2651 = vmatmul.bf16.vlgmr.msra.gmra.mxu1 %v6230_v22  ;;  %v4653_v16 = vor.u32 %v5059_v9, %v4652_v8  ;;  %v5019_v8 = vld [vmem:[%s7705_s1 + $0xa84] sm:$0xf0]  ;;  %v4744_v37 = vld [vmem:[%s7705_s1 + $0x1f4] sm:$0xf]  ;;  %v3398_v62 = vld [vmem:[%s7705_s1 + $0x1f8] sm:$0xf0] }
  0xa5   :  { %2695 = vmatpush.bf16.msrb.mxu1 %v4549_v23  ;;  %2664 = vmatmul.bf16.vlgmr.msra.gmra.mxu2 %v6228_v38  ;;  %v5041_v23 = vld [vmem:[%s7705_s1 + $0xb34] sm:$0xf0]  ;;  %v5035_v13 = vld [vmem:[%s7705_s1 + $0xb04] sm:$0xf0]  ;;  %s5095_s7 = smov [#allocation2]   ;;  %s3137_s11 = sshll.u32 %s7709_s5, 4  ;;  %s3138_s11 = int_to_ptr.hbm [resolvable:$true] %s3137_s11 }
  0xa6   :  { %2708 = vmatpush.bf16.msrb.mxu2 %v4613_v25  ;;  %2677 = vmatmul.bf16.vlgmr.msra.gmra.mxu3 %v6238_v45  ;;  %v4644_v25 = vld [vmem:[%s7705_s1 + $0xbb0] sm:$0xf]  ;;  %v4581_v60 = vor.u32 %v5041_v23, %v4580_v20  ;;  %v4696_v20 = vld [vmem:[%s7705_s1 + $0x74] sm:$0xf]  ;;  %v3206_v23 = vld [vmem:[%s7705_s1 + $0x78] sm:$0xf0] }
  0xa7   :  { %2721 = vmatpush.bf16.msrb.mxu3 %v4677_v21  ;;  %v4517_v21 = vor.u32 %v5025_v17, %v4516_v15  ;;  %v4645_v63 = vor.u32 %v5057_v27, %v4644_v25  ;;  %v2431_v9 = vpop.f32.mrf.mxu0  ;;  %v5051_v17 = vld [vmem:[%s7705_s1 + $0xb84] sm:$0xf0]  ;;  %v4712_v25 = vld [vmem:[%s7705_s1 + $0xf4] sm:$0xf]  ;;  %v3270_v27 = vld [vmem:[%s7705_s1 + $0xf8] sm:$0xf0] }
  0xa8   :  { %2683 = vmatpush.bf16.msrb.mxu0 %v4477_v46  ;;  %v4572_v46 = vld [vmem:[%s7705_s1 + $0xb20] sm:$0xf]  ;;  %v2444_v30 = vpop.f32.mrf.mxu1  ;;  %s3135_s8 = sshll.u32 %s5095_s7, 4  ;;  %vm3128_vm2 = vcmask 33792   ;;  %s3136_s8 = int_to_ptr.vmem [resolvable:$true] %s3135_s8 }
  0xa9   :  { %2696 = vmatpush.bf16.msrb.mxu1 %v4541_v47  ;;  %v5039_v47 = vld [vmem:[%s7705_s1 + $0xb24] sm:$0xf0] }
  0xaa   :  { %2709 = vmatpush.bf16.msrb.mxu2 %v4605_v48  ;;  %v496_v48 = vld [vmem:[%s7706_s2] sm:$0x3]  ;;  %v4573_v54 = vor.u32 %v5039_v47, %v4572_v46 }
  0xab   :  { %2722 = vmatpush.bf16.msrb.mxu3 %v4669_v52  ;;  %v4436_v52 = vld [vmem:[%s7705_s1 + $0xa10] sm:$0xf]  ;;  %v498_v57 = vperm.slane %v496_v48, 0  ;;  %v60_v47 = vld.sshfl [vmem:[#allocation1 + $0x20] sm:$0xff pattern:$0x73625140] }
  0xac   :  { %2684 = vmatpush.bf16.msrb.mxu0 %v4469_v58  ;;  %v4637_v58 = vor.u32 %v5055_v50, %v4636_v49  ;;  %v4437_v5 = vor.u32 %v5005_v55, %v4436_v52  ;;  %v62_v48 = vld.sshfl [vmem:[#allocation1 + $0x30] sm:$0xff pattern:$0x73625140]  ;;  %v4621_v49 = vor.u32 %v5051_v17, %v4620_v14  ;;  %v3209_v50 = vor.u32 %v4696_v20, %v3206_v23  ;;  %v63_v52 = vld.sshfl [vmem:[#allocation1 + $0x38] sm:$0xff pattern:$0x73625140] }
  0xad   :  { %2697 = vmatpush.bf16.msrb.mxu1 %v4533_v61  ;;  %v5021_v61 = vld [vmem:[%s7705_s1 + $0xa94] sm:$0xf0]  ;;  %v2432_v15 = vadd.f32 %v2431_v9, %v498_v57  ;;  %v3198_v57 = vld [vmem:[%s7705_s1 + $0x68] sm:$0xf0]  ;;  %v4742_v9 = vld [vmem:[%s7705_s1 + $0x1e4] sm:$0xf] }
  0xae   :  { %2710 = vmatpush.bf16.msrb.mxu2 %v4597_v0  ;;  %v4564_v0 = vld [vmem:[%s7705_s1 + $0xb10] sm:$0xf]  ;;  %v3190_v17 = vld [vmem:[%s7705_s1 + $0x58] sm:$0xf0]  ;;  %v4708_v20 = vld [vmem:[%s7705_s1 + $0xd4] sm:$0xf] }
  0xaf   :  { %2723 = vmatpush.bf16.msrb.mxu3 %v4661_v4  ;;  %v4428_v4 = vld [vmem:[%s7705_s1 + $0xa00] sm:$0xf]  ;;  %v2445_v41 = vadd.f32 %v2444_v30, %v2432_v15  ;;  %v3318_v30 = vld [vmem:[%s7705_s1 + $0x158] sm:$0xf0] }
  0xb0   :  { %2685 = vmatpush.bf16.msrb.mxu0 %v4461_v10  ;;  %v4501_v10 = vor.u32 %v5021_v61, %v4500_v56  ;;  %v4694_v56 = vld [vmem:[%s7705_s1 + $0x64] sm:$0xf]  ;;  %v2446_v23 = vpop.f32.mrf.mxu1 }
  0xb1   :  { %2698 = vmatpush.bf16.msrb.mxu1 %v4525_v11  ;;  %v4565_v11 = vor.u32 %v5037_v1, %v4564_v0  ;;  %v2470_v0 = vpop.f32.mrf.mxu3  ;;  %v3401_v1 = vor.u32 %v4744_v37, %v3398_v62  ;;  %v4686_v23 = vld [vmem:[%s7705_s1 + $0x24] sm:$0xf] }
  0xb2   :  { %2711 = vmatpush.bf16.msrb.mxu2 %v4589_v12  ;;  %v4556_v12 = vld [vmem:[%s7705_s1 + $0xb00] sm:$0xf] }
  0xb3   :  { %2724 = vmatpush.bf16.msrb.mxu3 %v4653_v16  ;;  %v4629_v16 = vor.u32 %v5053_v3, %v4628_v2  ;;  %v4557_v46 = vor.u32 %v5035_v13, %v4556_v12  ;;  %v6424_v2 = vpack.c.bf16 %v60_v47, %v60_v47  ;;  %v3262_v3 = vld [vmem:[%s7705_s1 + $0xe8] sm:$0xf0]  ;;  %v6445_v12 = vpack.c.bf16 %v63_v52, %v63_v52  ;;  %v4722_v52 = vld [vmem:[%s7705_s1 + $0x144] sm:$0xf] }
  0xb4   :  { %2686 = vmatpush.bf16.msrb.mxu0 %v4453_v29  ;;  %v4728_v29 = vld [vmem:[%s7705_s1 + $0x174] sm:$0xf]  ;;  %v3201_v13 = vor.u32 %v4694_v56, %v3198_v57  ;;  %v3182_v47 = vld [vmem:[%s7705_s1 + $0x48] sm:$0xf0] }
  0xb5   :  { %2699 = vmatpush.bf16.msrb.mxu1 %v4517_v21  ;;  %v4429_v21 = vor.u32 %v5003_v6, %v4428_v4  ;;  %v4726_v4 = vld [vmem:[%s7705_s1 + $0x164] sm:$0xf]  ;;  %v2433_v6 = vpop.f32.mrf.mxu0 }
  0xb6   :  { %2712 = vmatpush.bf16.msrb.mxu2 %v4581_v60  ;;  %v3334_v60 = vld [vmem:[%s7705_s1 + $0x178] sm:$0xf0] }
  0xb7   :  { %2725 = vmatpush.bf16.msrb.mxu3 %v4645_v63  ;;  %v4493_v63 = vor.u32 %v5019_v8, %v4492_v7  ;;  %v3337_v55 = vor.u32 %v4728_v29, %v3334_v60  ;;  %v6435_v7 = vpack.c.bf16 %v62_v48, %v62_v48  ;;  %v4724_v29 = vld [vmem:[%s7705_s1 + $0x154] sm:$0xf]  ;;  %v3382_v60 = vld [vmem:[%s7705_s1 + $0x1d8] sm:$0xf0]  ;;  %v4706_v48 = vld [vmem:[%s7705_s1 + $0xc4] sm:$0xf] }
  0xb8   :  { %2687 = vmatpush.bf16.msrb.mxu0 %v4445_v51  ;;  %v61_v51 = vld.sshfl [vmem:[#allocation1 + $0x28] sm:$0xff pattern:$0x73625140] }
  0xb9   :  { %2700 = vmatpush.bf16.msrb.mxu1 %v4509_v53  ;;  %v2457_v53 = vpop.f32.mrf.mxu2  ;;  %v6437_v8 = vpack.c.bf16 %v61_v51, %v61_v51  ;;  %v3246_v51 = vld [vmem:[%s7705_s1 + $0xc8] sm:$0xf0] }
  0xba   :  { %2713 = vmatpush.bf16.msrb.mxu2 %v4573_v54  ;;  %v3273_v54 = vor.u32 %v4712_v25, %v3270_v27  ;;  %v2458_v61 = vadd.f32 %v2457_v53, %v2445_v41  ;;  %v3254_v27 = vld [vmem:[%s7705_s1 + $0xd8] sm:$0xf0]  ;;  %v3310_v53 = vld [vmem:[%s7705_s1 + $0x148] sm:$0xf0] }
  0xbb   :  { %2726 = vmatpush.bf16.msrb.mxu3 %v4637_v58  ;;  %v4710_v58 = vld [vmem:[%s7705_s1 + $0xe4] sm:$0xf]  ;;  %v3257_v41 = vor.u32 %v4708_v20, %v3254_v27 }
  0xbc   :  { %2688 = vmatpush.bf16.msrb.mxu0 %v4437_v5  ;;  %v3326_v5 = vld [vmem:[%s7705_s1 + $0x168] sm:$0xf0]  ;;  %v3265_v14 = vor.u32 %v4710_v58, %v3262_v3  ;;  %v3249_v58 = vor.u32 %v4706_v48, %v3246_v51  ;;  %v4704_v3 = vld [vmem:[%s7705_s1 + $0xb4] sm:$0xf]  ;;  %v4702_v27 = vld [vmem:[%s7705_s1 + $0xa4] sm:$0xf] }
  0xbd   :  { %2701 = vmatpush.bf16.msrb.mxu1 %v4501_v10  ;;  %v3390_v10 = vld [vmem:[%s7705_s1 + $0x1e8] sm:$0xf0]  ;;  %v3329_v15 = vor.u32 %v4726_v4, %v3326_v5 }
  0xbe   :  { %2714 = vmatpush.bf16.msrb.mxu2 %v4565_v11  ;;  %v2471_v11 = vadd.f32 %v2470_v0, %v2458_v61  ;;  %v3393_v25 = vor.u32 %v4742_v9, %v3390_v10  ;;  %v3313_v61 = vor.u32 %v4722_v52, %v3310_v53  ;;  %v4688_v0 = vld [vmem:[%s7705_s1 + $0x34] sm:$0xf]  ;;  %v3238_v9 = vld [vmem:[%s7705_s1 + $0xb8] sm:$0xf0] }
  0xbf   :  { %2727 = vmatpush.bf16.msrb.mxu3 %v4629_v16  ;;  %v4692_v16 = vld [vmem:[%s7705_s1 + $0x54] sm:$0xf]  ;;  %v3158_v53 = vld [vmem:[%s7705_s1 + $0x18] sm:$0xf0] }
  0xc0   :  { %2689 = vmatpush.bf16.msrb.mxu0 %v4429_v21  ;;  %v4740_v21 = vld [vmem:[%s7705_s1 + $0x1d4] sm:$0xf]  ;;  %v3193_v37 = vor.u32 %v4692_v16, %v3190_v17  ;;  %v2483_v57 = vpop.f32.mrf.mxu0  ;;  %v3241_v17 = vor.u32 %v4704_v3, %v3238_v9 }
  0xc1   :  { %2702 = vmatpush.bf16.msrb.mxu1 %v4493_v63  ;;  %v2459_v62 = vpop.f32.mrf.mxu2  ;;  %v3321_v63 = vor.u32 %v4724_v29, %v3318_v30  ;;  %v2484_v4 = vadd.f32 %v2483_v57, %v2471_v11  ;;  %v2496_v5 = vpop.f32.mrf.mxu1  ;;  %v4720_v10 = vld [vmem:[%s7705_s1 + $0x134] sm:$0xf]  ;;  %v3366_v11 = vld [vmem:[%s7705_s1 + $0x1b8] sm:$0xf0] }
  0xc2   :  { %2715 = vmatpush.bf16.msrb.mxu2 %v4557_v46  ;;  %v4690_v46 = vld [vmem:[%s7705_s1 + $0x44] sm:$0xf]  ;;  %v4684_v52 = vld [vmem:[%s7705_s1 + $0x14] sm:$0xf]  ;;  %v3222_v57 = vld [vmem:[%s7705_s1 + $0x98] sm:$0xf0] }
  0xc3   :  { %2728 = vmatpush.bf16.msrb.mxu3 %v4621_v49  ;;  %2690 = vmatmul.bf16.vlgmr.msrb.gmra.mxu0 %v6424_v2  ;;  %v2472_v49 = vpop.f32.mrf.mxu3  ;;  %v3185_v56 = vor.u32 %v4690_v46, %v3182_v47  ;;  %v3358_v46 = vld [vmem:[%s7705_s1 + $0x1a8] sm:$0xf0]  ;;  %v3161_v3 = vor.u32 %v4684_v52, %v3158_v53  ;;  %v4758_v52 = vld [vmem:[%s7705_s1 + $0x264] sm:$0xf] }
  0xc4   :  { %2734 = vmatpush.bf16.msra.mxu0 %v3209_v50  ;;  %2703 = vmatmul.bf16.vlgmr.msrb.gmra.mxu1 %v6437_v8  ;;  %v3385_v50 = vor.u32 %v4740_v21, %v3382_v60  ;;  %v3230_v21 = vld [vmem:[%s7705_s1 + $0xa8] sm:$0xf0]  ;;  %v4718_v60 = vld [vmem:[%s7705_s1 + $0x124] sm:$0xf] }
  0xc5   :  { %2747 = vmatpush.bf16.msra.mxu1 %v3273_v54  ;;  %2716 = vmatmul.bf16.vlgmr.msrb.gmra.mxu2 %v6435_v7  ;;  %v4738_v54 = vld [vmem:[%s7705_s1 + $0x1c4] sm:$0xf]  ;;  %v3454_v53 = vld [vmem:[%s7705_s1 + $0x268] sm:$0xf0] }
  0xc6   :  { %2760 = vmatpush.bf16.msra.mxu2 %v3337_v55  ;;  %2729 = vmatmul.bf16.vlgmr.msrb.gmra.mxu3 %v6445_v12  ;;  %v3374_v55 = vld [vmem:[%s7705_s1 + $0x1c8] sm:$0xf0] }
  0xc7   :  { %2773 = vmatpush.bf16.msra.mxu3 %v3401_v1  ;;  %v3174_v1 = vld [vmem:[%s7705_s1 + $0x38] sm:$0xf0]  ;;  %v3377_v6 = vor.u32 %v4738_v54, %v3374_v55  ;;  %v4700_v54 = vld [vmem:[%s7705_s1 + $0x94] sm:$0xf] }
  0xc8   :  { %2735 = vmatpush.bf16.msra.mxu0 %v3201_v13  ;;  %v3302_v13 = vld [vmem:[%s7705_s1 + $0x138] sm:$0xf0]  ;;  %v3177_v16 = vor.u32 %v4688_v0, %v3174_v1  ;;  %v2485_v49 = vpop.f32.mrf.mxu0  ;;  %v4732_v0 = vld [vmem:[%s7705_s1 + $0x194] sm:$0xf] }
  0xc9   :  { %2748 = vmatpush.bf16.msra.mxu1 %v3265_v14  ;;  %v4736_v14 = vld [vmem:[%s7705_s1 + $0x1b4] sm:$0xf]  ;;  %v3305_v20 = vor.u32 %v4720_v10, %v3302_v13  ;;  %v2509_v29 = vpop.f32.mrf.mxu2  ;;  %v2498_v55 = vpop.f32.mrf.mxu1  ;;  %v3350_v1 = vld [vmem:[%s7705_s1 + $0x198] sm:$0xf0]  ;;  %v4698_v10 = vld [vmem:[%s7705_s1 + $0x84] sm:$0xf] }
  0xca   :  { %2761 = vmatpush.bf16.msra.mxu2 %v3329_v15  ;;  %v2497_v15 = vadd.f32 %v2496_v5, %v2484_v4  ;;  %v3369_v30 = vor.u32 %v4736_v14, %v3366_v11  ;;  %v4682_v4 = vld [vmem:[%s7705_s1 + $0x4] sm:$0xf]  ;;  %v3150_v5 = vld [vmem:[%s7705_s1 + $0x8] sm:$0xf0] }
  0xcb   :  { %2774 = vmatpush.bf16.msra.mxu3 %v3393_v25  ;;  %v3166_v25 = vld [vmem:[%s7705_s1 + $0x28] sm:$0xf0]  ;;  %v4714_v14 = vld [vmem:[%s7705_s1 + $0x104] sm:$0xf] }
  0xcc   :  { %2736 = vmatpush.bf16.msra.mxu0 %v3193_v37  ;;  %v3294_v37 = vld [vmem:[%s7705_s1 + $0x128] sm:$0xf0]  ;;  %v2510_v62 = vadd.f32 %v2509_v29, %v2497_v15  ;;  %v3169_v47 = vor.u32 %v4686_v23, %v3166_v25  ;;  %v3353_v15 = vor.u32 %v4732_v0, %v3350_v1  ;;  %v4760_v25 = vld [vmem:[%s7705_s1 + $0x274] sm:$0xf]  ;;  %v3457_v1 = vor.u32 %v4758_v52, %v3454_v53  ;;  %v3494_v52 = vld [vmem:[%s7705_s1 + $0x2b8] sm:$0xf0] }
  0xcd   :  { %2749 = vmatpush.bf16.msra.mxu1 %v3257_v41  ;;  %v2522_v41 = vpop.f32.mrf.mxu3  ;;  %v3297_v51 = vor.u32 %v4718_v60, %v3294_v37  ;;  %v3214_v13 = vld [vmem:[%s7705_s1 + $0x88] sm:$0xf0]  ;;  %v4776_v29 = vld [vmem:[%s7705_s1 + $0x2f4] sm:$0xf]  ;;  %v3590_v37 = vld [vmem:[%s7705_s1 + $0x378] sm:$0xf0] }
  0xce   :  { %2762 = vmatpush.bf16.msra.mxu2 %v3321_v63  ;;  %v4734_v63 = vld [vmem:[%s7705_s1 + $0x1a4] sm:$0xf]  ;;  %v6547_v48 = vadd.f32 %v2522_v41, %v2510_v62  ;;  %v4792_v60 = vld [vmem:[%s7705_s1 + $0x374] sm:$0xf]  ;;  %v3217_v62 = vor.u32 %v4698_v10, %v3214_v13  ;;  %v3646_v0 = vld [vmem:[%s7705_s1 + $0x3e8] sm:$0xf0] }
  0xcf   :  { %2775 = vmatpush.bf16.msra.mxu3 %v3385_v50  ;;  %v3233_v50 = vor.u32 %v4702_v27, %v3230_v21  ;;  %v3462_v27 = vld [vmem:[%s7705_s1 + $0x278] sm:$0xf0]  ;;  %v4784_v53 = vld [vmem:[%s7705_s1 + $0x334] sm:$0xf] }
  0xd0   :  { %2737 = vmatpush.bf16.msra.mxu0 %v3185_v56  ;;  %v3361_v56 = vor.u32 %v4734_v63, %v3358_v46  ;;  %v3526_v21 = vld [vmem:[%s7705_s1 + $0x2f8] sm:$0xf0]  ;;  %v4808_v63 = vld [vmem:[%s7705_s1 + $0x3f4] sm:$0xf]  ;;  %v3465_v49 = vor.u32 %v4760_v25, %v3462_v27  ;;  %v3438_v25 = vld [vmem:[%s7705_s1 + $0x248] sm:$0xf0] }
  0xd1   :  { %2750 = vmatpush.bf16.msra.mxu1 %v3249_v58  ;;  %v4716_v58 = vld [vmem:[%s7705_s1 + $0x114] sm:$0xf]  ;;  %v2511_v11 = vpop.f32.mrf.mxu2  ;;  %v3654_v46 = vld [vmem:[%s7705_s1 + $0x3f8] sm:$0xf0]  ;;  %v4786_v27 = vld [vmem:[%s7705_s1 + $0x344] sm:$0xf] }
  0xd2   :  { %2763 = vmatpush.bf16.msra.mxu2 %v3313_v61  ;;  %v3286_v61 = vld [vmem:[%s7705_s1 + $0x118] sm:$0xf0]  ;;  %v3657_v55 = vor.u32 %v4808_v63, %v3654_v46 }
  0xd3   :  { %2776 = vmatpush.bf16.msra.mxu3 %v3377_v6  ;;  %v3225_v6 = vor.u32 %v4700_v54, %v3222_v57  ;;  %v3289_v9 = vor.u32 %v4716_v58, %v3286_v61  ;;  %v4774_v54 = vld [vmem:[%s7705_s1 + $0x2e4] sm:$0xf]  ;;  %v3582_v58 = vld [vmem:[%s7705_s1 + $0x368] sm:$0xf0]  ;;  %v3510_v13 = vld [vmem:[%s7705_s1 + $0x2d8] sm:$0xf0] }
  0xd4   :  { %2738 = vmatpush.bf16.msra.mxu0 %v3177_v16  ;;  %v3278_v16 = vld [vmem:[%s7705_s1 + $0x108] sm:$0xf0]  ;;  %v4790_v57 = vld [vmem:[%s7705_s1 + $0x364] sm:$0xf]  ;;  %v3574_v11 = vld [vmem:[%s7705_s1 + $0x358] sm:$0xf0] }
  0xd5   :  { %2751 = vmatpush.bf16.msra.mxu1 %v3241_v17  ;;  %v4730_v17 = vld [vmem:[%s7705_s1 + $0x184] sm:$0xf]  ;;  %v2524_v23 = vpop.f32.mrf.mxu3  ;;  %v3281_v41 = vor.u32 %v4714_v14, %v3278_v16  ;;  %v4788_v14 = vld [vmem:[%s7705_s1 + $0x354] sm:$0xf]  ;;  %v3638_v16 = vld [vmem:[%s7705_s1 + $0x3d8] sm:$0xf0] }
  0xd6   :  { %2764 = vmatpush.bf16.msra.mxu2 %v3305_v20  ;;  %v3342_v20 = vld [vmem:[%s7705_s1 + $0x188] sm:$0xf0]  ;;  %v4806_v61 = vld [vmem:[%s7705_s1 + $0x3e4] sm:$0xf] }
  0xd7   :  { %2777 = vmatpush.bf16.msra.mxu3 %v3369_v30  ;;  %v3153_v30 = vor.u32 %v4682_v4, %v3150_v5  ;;  %v3585_v4 = vor.u32 %v4790_v57, %v3582_v58  ;;  %v4756_v5 = vld [vmem:[%s7705_s1 + $0x254] sm:$0xf]  ;;  %v3649_v10 = vor.u32 %v4806_v61, %v3646_v0  ;;  %v4754_v23 = vld [vmem:[%s7705_s1 + $0x244] sm:$0xf] }
  0xd8   :  { %2739 = vmatpush.bf16.msra.mxu0 %v3169_v47  ;;  %v3345_v47 = vor.u32 %v4730_v17, %v3342_v20  ;;  %v4750_v0 = vld [vmem:[%s7705_s1 + $0x224] sm:$0xf] }
  0xd9   :  { %2752 = vmatpush.bf16.msra.mxu1 %v3233_v50  ;;  %v3529_v50 = vor.u32 %v4776_v29, %v3526_v21  ;;  %v3566_v29 = vld [vmem:[%s7705_s1 + $0x348] sm:$0xf0]  ;;  %v4802_v21 = vld [vmem:[%s7705_s1 + $0x3c4] sm:$0xf] }
  0xda   :  { %2765 = vmatpush.bf16.msra.mxu2 %v3297_v51  ;;  %v3593_v51 = vor.u32 %v4792_v60, %v3590_v37  ;;  %v3630_v60 = vld [vmem:[%s7705_s1 + $0x3c8] sm:$0xf0]  ;;  %v3569_v46 = vor.u32 %v4786_v27, %v3566_v29  ;;  %v3478_v29 = vld [vmem:[%s7705_s1 + $0x298] sm:$0xf0] }
  0xdb   :  { %2778 = vmatpush.bf16.msra.mxu3 %v3361_v56  ;;  %v3518_v56 = vld [vmem:[%s7705_s1 + $0x2e8] sm:$0xf0] }
  0xdc   :  { %2740 = vmatpush.bf16.msra.mxu0 %v3161_v3  ;;  %v3521_v3 = vor.u32 %v4774_v54, %v3518_v56  ;;  %v3558_v54 = vld [vmem:[%s7705_s1 + $0x338] sm:$0xf0] }
  0xdd   :  { %2753 = vmatpush.bf16.msra.mxu1 %v3225_v6  ;;  %v3446_v6 = vld [vmem:[%s7705_s1 + $0x258] sm:$0xf0]  ;;  %v3561_v61 = vor.u32 %v4784_v53, %v3558_v54  ;;  %v4794_v53 = vld [vmem:[%s7705_s1 + $0x384] sm:$0xf]  ;;  %v3598_v54 = vld [vmem:[%s7705_s1 + $0x388] sm:$0xf0] }
  0xde   :  { %2766 = vmatpush.bf16.msra.mxu2 %v3289_v9  ;;  %v4772_v9 = vld [vmem:[%s7705_s1 + $0x2d4] sm:$0xf]  ;;  %v3449_v17 = vor.u32 %v4756_v5, %v3446_v6  ;;  %v3622_v56 = vld [vmem:[%s7705_s1 + $0x3b8] sm:$0xf0]  ;;  %v3486_v6 = vld [vmem:[%s7705_s1 + $0x2a8] sm:$0xf0] }
  0xdf   :  { %2779 = vmatpush.bf16.msra.mxu3 %v3353_v15  ;;  %v4804_v15 = vld [vmem:[%s7705_s1 + $0x3d4] sm:$0xf]  ;;  %v3513_v20 = vor.u32 %v4772_v9, %v3510_v13  ;;  %v4782_v9 = vld [vmem:[%s7705_s1 + $0x324] sm:$0xf] }
  0xe0   :  { %2741 = vmatpush.bf16.msra.mxu0 %v3153_v30  ;;  %v2535_v30 = vpop.f32.mrf.mxu0 }
  0xe1   :  { %2754 = vmatpush.bf16.msra.mxu1 %v3217_v62  ;;  %v2536_v37 = vadd.f32 %v2535_v30, %v6547_v48  ;;  %v3441_v62 = vor.u32 %v4754_v23, %v3438_v25  ;;  %v3633_v48 = vor.u32 %v4802_v21, %v3630_v60  ;;  %v4780_v30 = vld [vmem:[%s7705_s1 + $0x314] sm:$0xf]  ;;  %v3542_v21 = vld [vmem:[%s7705_s1 + $0x318] sm:$0xf0] }
  0xe2   :  { %2767 = vmatpush.bf16.msra.mxu2 %v3281_v41  ;;  %v2548_v41 = vpop.f32.mrf.mxu1  ;;  %v4796_v60 = vld [vmem:[%s7705_s1 + $0x394] sm:$0xf] }
  0xe3   :  { %2780 = vmatpush.bf16.msra.mxu3 %v3345_v47  ;;  %2742 = vmatmul.bf16.vlgmr.msra.gmra.mxu0 %v5458_v36  ;;  %v4770_v36 = vld [vmem:[%s7705_s1 + $0x2c4] sm:$0xf]  ;;  %v4752_v47 = vld [vmem:[%s7705_s1 + $0x234] sm:$0xf] }
  0xe4   :  { %2786 = vmatpush.bf16.msrb.mxu0 %v3465_v49  ;;  %2755 = vmatmul.bf16.vlgmr.msra.gmra.mxu1 %v5468_v43  ;;  %v3502_v43 = vld [vmem:[%s7705_s1 + $0x2c8] sm:$0xf0]  ;;  %v3430_v49 = vld [vmem:[%s7705_s1 + $0x238] sm:$0xf0] }
  0xe5   :  { %2799 = vmatpush.bf16.msrb.mxu1 %v3529_v50  ;;  %2768 = vmatmul.bf16.vlgmr.msra.gmra.mxu2 %v5456_v35  ;;  %v3577_v35 = vor.u32 %v4788_v14, %v3574_v11  ;;  %v3505_v63 = vor.u32 %v4770_v36, %v3502_v43  ;;  %v4768_v50 = vld [vmem:[%s7705_s1 + $0x2b4] sm:$0xf]  ;;  %v3433_v57 = vor.u32 %v4752_v47, %v3430_v49  ;;  %v4798_v11 = vld [vmem:[%s7705_s1 + $0x3a4] sm:$0xf] }
  0xe6   :  { %2812 = vmatpush.bf16.msrb.mxu2 %v3593_v51  ;;  %2781 = vmatmul.bf16.vlgmr.msra.gmra.mxu3 %v5466_v42  ;;  %v3641_v42 = vor.u32 %v4804_v15, %v3638_v16  ;;  %v2549_v51 = vadd.f32 %v2548_v41, %v2536_v37  ;;  %v3497_v58 = vor.u32 %v4768_v50, %v3494_v52  ;;  %v3614_v15 = vld [vmem:[%s7705_s1 + $0x3a8] sm:$0xf0]  ;;  %v4748_v36 = vld [vmem:[%s7705_s1 + $0x214] sm:$0xf]  ;;  %v3606_v37 = vld [vmem:[%s7705_s1 + $0x398] sm:$0xf0] }
  0xe7   :  { %2825 = vmatpush.bf16.msrb.mxu3 %v3657_v55  ;;  %v4800_v55 = vld [vmem:[%s7705_s1 + $0x3b4] sm:$0xf]  ;;  %v3617_v27 = vor.u32 %v4798_v11, %v3614_v15  ;;  %v4746_v41 = vld [vmem:[%s7705_s1 + $0x204] sm:$0xf]  ;;  %v3545_v47 = vor.u32 %v4780_v30, %v3542_v21  ;;  %v3470_v50 = vld [vmem:[%s7705_s1 + $0x288] sm:$0xf0] }
  0xe8   :  { %2787 = vmatpush.bf16.msrb.mxu0 %v3457_v1  ;;  %v3422_v1 = vld [vmem:[%s7705_s1 + $0x228] sm:$0xf0]  ;;  %v2561_v5 = vpop.f32.mrf.mxu2  ;;  %v2537_v16 = vpop.f32.mrf.mxu0  ;;  %v4764_v43 = vld [vmem:[%s7705_s1 + $0x294] sm:$0xf]  ;;  %v4762_v49 = vld [vmem:[%s7705_s1 + $0x284] sm:$0xf] }
  0xe9   :  { %2800 = vmatpush.bf16.msrb.mxu1 %v3521_v3  ;;  %v4766_v3 = vld [vmem:[%s7705_s1 + $0x2a4] sm:$0xf]  ;;  %v2562_v13 = vadd.f32 %v2561_v5, %v2549_v51  ;;  %v2574_v14 = vpop.f32.mrf.mxu3  ;;  %v3609_v51 = vor.u32 %v4796_v60, %v3606_v37  ;;  %v3534_v52 = vld [vmem:[%s7705_s1 + $0x308] sm:$0xf0]  ;;  %v3473_v5 = vor.u32 %v4762_v49, %v3470_v50  ;;  %v4820_v60 = vld [vmem:[%s7705_s1 + $0x454] sm:$0xf] }
  0xea   :  { %2813 = vmatpush.bf16.msrb.mxu2 %v3585_v4  ;;  %v3625_v4 = vor.u32 %v4800_v55, %v3622_v56  ;;  %v3489_v23 = vor.u32 %v4766_v3, %v3486_v6  ;;  %v4824_v56 = vld [vmem:[%s7705_s1 + $0x474] sm:$0xf]  ;;  %v4822_v16 = vld [vmem:[%s7705_s1 + $0x464] sm:$0xf]  ;;  %v3702_v37 = vld [vmem:[%s7705_s1 + $0x458] sm:$0xf0] }
  0xeb   :  { %2826 = vmatpush.bf16.msrb.mxu3 %v3649_v10  ;;  %v3550_v10 = vld [vmem:[%s7705_s1 + $0x328] sm:$0xf0]  ;;  %v4856_v3 = vld [vmem:[%s7705_s1 + $0x574] sm:$0xf]  ;;  %v3705_v50 = vor.u32 %v4820_v60, %v3702_v37 }
  0xec   :  { %2788 = vmatpush.bf16.msrb.mxu0 %v3449_v17  ;;  %v3425_v17 = vor.u32 %v4750_v0, %v3422_v1  ;;  %v3553_v25 = vor.u32 %v4782_v9, %v3550_v10  ;;  %v3782_v1 = vld [vmem:[%s7705_s1 + $0x4f8] sm:$0xf0]  ;;  %v4872_v9 = vld [vmem:[%s7705_s1 + $0x5f4] sm:$0xf] }
  0xed   :  { %2801 = vmatpush.bf16.msrb.mxu1 %v3513_v20  ;;  %v2550_v20 = vpop.f32.mrf.mxu1  ;;  %v3910_v10 = vld [vmem:[%s7705_s1 + $0x5f8] sm:$0xf0]  ;;  %v4868_v49 = vld [vmem:[%s7705_s1 + $0x5d4] sm:$0xf] }
  0xee   :  { %2814 = vmatpush.bf16.msrb.mxu2 %v3577_v35  ;;  %v6746_v35 = vadd.f32 %v2574_v14, %v2562_v13  ;;  %v3601_v13 = vor.u32 %v4794_v53, %v3598_v54  ;;  %v4838_v20 = vld [vmem:[%s7705_s1 + $0x4e4] sm:$0xf]  ;;  %v3694_v53 = vld [vmem:[%s7705_s1 + $0x448] sm:$0xf0] }
  0xef   :  { %2827 = vmatpush.bf16.msrb.mxu3 %v3641_v42  ;;  %v3414_v42 = vld [vmem:[%s7705_s1 + $0x218] sm:$0xf0]  ;;  %v4850_v54 = vld [vmem:[%s7705_s1 + $0x544] sm:$0xf] }
  0xf0   :  { %2789 = vmatpush.bf16.msrb.mxu0 %v3441_v62  ;;  %v3417_v62 = vor.u32 %v4748_v36, %v3414_v42  ;;  %v2563_v55 = vpop.f32.mrf.mxu2  ;;  %v4854_v36 = vld [vmem:[%s7705_s1 + $0x564] sm:$0xf]  ;;  %v3838_v42 = vld [vmem:[%s7705_s1 + $0x568] sm:$0xf0] }
  0xf1   :  { %2802 = vmatpush.bf16.msrb.mxu1 %v3505_v63  ;;  %v3406_v63 = vld [vmem:[%s7705_s1 + $0x208] sm:$0xf0]  ;;  %v3841_v21 = vor.u32 %v4854_v36, %v3838_v42  ;;  %v4830_v42 = vld [vmem:[%s7705_s1 + $0x4a4] sm:$0xf] }
  0xf2   :  { %2815 = vmatpush.bf16.msrb.mxu2 %v3569_v46  ;;  %v3481_v46 = vor.u32 %v4764_v43, %v3478_v29  ;;  %v3409_v0 = vor.u32 %v4746_v41, %v3406_v63  ;;  %v4870_v43 = vld [vmem:[%s7705_s1 + $0x5e4] sm:$0xf]  ;;  %v3766_v63 = vld [vmem:[%s7705_s1 + $0x4d8] sm:$0xf0]  ;;  %v3822_v55 = vld [vmem:[%s7705_s1 + $0x548] sm:$0xf0] }
  0xf3   :  { %2828 = vmatpush.bf16.msrb.mxu3 %v3633_v48  ;;  %v4778_v48 = vld [vmem:[%s7705_s1 + $0x304] sm:$0xf]  ;;  %v3678_v36 = vld [vmem:[%s7705_s1 + $0x428] sm:$0xf0] }
  0xf4   :  { %2790 = vmatpush.bf16.msrb.mxu0 %v3433_v57  ;;  %v3718_v57 = vld [vmem:[%s7705_s1 + $0x478] sm:$0xf0]  ;;  %v3537_v6 = vor.u32 %v4778_v48, %v3534_v52  ;;  %v4818_v52 = vld [vmem:[%s7705_s1 + $0x444] sm:$0xf] }
  0xf5   :  { %2803 = vmatpush.bf16.msrb.mxu1 %v3497_v58  ;;  %v4840_v58 = vld [vmem:[%s7705_s1 + $0x4f4] sm:$0xf]  ;;  %v3721_v14 = vor.u32 %v4824_v56, %v3718_v57  ;;  %v4866_v57 = vld [vmem:[%s7705_s1 + $0x5c4] sm:$0xf] }
  0xf6   :  { %2816 = vmatpush.bf16.msrb.mxu2 %v3561_v61  ;;  %v2576_v61 = vpop.f32.mrf.mxu3  ;;  %v3785_v11 = vor.u32 %v4840_v58, %v3782_v1  ;;  %v3886_v58 = vld [vmem:[%s7705_s1 + $0x5c8] sm:$0xf0] }
  0xf7   :  { %2829 = vmatpush.bf16.msrb.mxu3 %v3625_v4  ;;  %v3846_v4 = vld [vmem:[%s7705_s1 + $0x578] sm:$0xf0] }
  0xf8   :  { %2791 = vmatpush.bf16.msrb.mxu0 %v3425_v17  ;;  %v3849_v15 = vor.u32 %v4856_v3, %v3846_v4  ;;  %v3710_v17 = vld [vmem:[%s7705_s1 + $0x468] sm:$0xf0]  ;;  %v3825_v4 = vor.u32 %v4850_v54, %v3822_v55  ;;  %v4860_v54 = vld [vmem:[%s7705_s1 + $0x594] sm:$0xf]  ;;  %v3862_v55 = vld [vmem:[%s7705_s1 + $0x598] sm:$0xf0] }
  0xf9   :  { %2804 = vmatpush.bf16.msrb.mxu1 %v3489_v23  ;;  %v3913_v23 = vor.u32 %v4872_v9, %v3910_v10  ;;  %v3713_v29 = vor.u32 %v4822_v16, %v3710_v17  ;;  %v4832_v9 = vld [vmem:[%s7705_s1 + $0x4b4] sm:$0xf]  ;;  %v3878_v16 = vld [vmem:[%s7705_s1 + $0x5b8] sm:$0xf0] }
  0xfa   :  { %2817 = vmatpush.bf16.msrb.mxu2 %v3553_v25  ;;  %v3774_v25 = vld [vmem:[%s7705_s1 + $0x4e8] sm:$0xf0] }
  0xfb   :  { %2830 = vmatpush.bf16.msrb.mxu3 %v3617_v27  ;;  %v3902_v27 = vld [vmem:[%s7705_s1 + $0x5e8] sm:$0xf0]  ;;  %v3777_v30 = vor.u32 %v4838_v20, %v3774_v25  ;;  %v4814_v25 = vld [vmem:[%s7705_s1 + $0x424] sm:$0xf] }
  0xfc   :  { %2792 = vmatpush.bf16.msrb.mxu0 %v3417_v62  ;;  %v4836_v62 = vld [vmem:[%s7705_s1 + $0x4d4] sm:$0xf]  ;;  %v3905_v41 = vor.u32 %v4870_v43, %v3902_v27 }
  0xfd   :  { %2805 = vmatpush.bf16.msrb.mxu1 %v3481_v46  ;;  %v4852_v46 = vld [vmem:[%s7705_s1 + $0x554] sm:$0xf]  ;;  %v3769_v48 = vor.u32 %v4836_v62, %v3766_v63  ;;  %v4862_v62 = vld [vmem:[%s7705_s1 + $0x5a4] sm:$0xf] }
  0xfe   :  { %2818 = vmatpush.bf16.msrb.mxu2 %v3545_v47  ;;  %v3830_v47 = vld [vmem:[%s7705_s1 + $0x558] sm:$0xf0] }
  0xff   :  { %2831 = vmatpush.bf16.msrb.mxu3 %v3609_v51  ;;  %v3833_v51 = vor.u32 %v4852_v46, %v3830_v47  ;;  %v3681_v46 = vor.u32 %v4814_v25, %v3678_v36 }
 0x100   :  { %2793 = vmatpush.bf16.msrb.mxu0 %v3409_v0  ;;  %v2587_v56 = vpop.f32.mrf.mxu0  ;;  %v3697_v0 = vor.u32 %v4818_v52, %v3694_v53  ;;  %v4828_v52 = vld [vmem:[%s7705_s1 + $0x494] sm:$0xf] }
 0x101   :  { %2806 = vmatpush.bf16.msrb.mxu1 %v3473_v5  ;;  %v2588_v61 = vadd.f32 %v2587_v56, %v6746_v35  ;;  %v2600_v1 = vpop.f32.mrf.mxu1  ;;  %v4816_v5 = vld [vmem:[%s7705_s1 + $0x434] sm:$0xf]  ;;  %v3889_v35 = vor.u32 %v4866_v57, %v3886_v58  ;;  %v4810_v57 = vld [vmem:[%s7705_s1 + $0x404] sm:$0xf]  ;;  %v3662_v58 = vld [vmem:[%s7705_s1 + $0x408] sm:$0xf0] }
 0x102   :  { %2819 = vmatpush.bf16.msrb.mxu2 %v3537_v6  ;;  %v3686_v6 = vld [vmem:[%s7705_s1 + $0x438] sm:$0xf0] }
 0x103   :  { %2832 = vmatpush.bf16.msrb.mxu3 %v3601_v13  ;;  %2794 = vmatmul.bf16.vlgmr.msrb.gmra.mxu0 %v5584_v39  ;;  %v4834_v39 = vld [vmem:[%s7705_s1 + $0x4c4] sm:$0xf]  ;;  %v2601_v10 = vadd.f32 %v2600_v1, %v2588_v61  ;;  %v3750_v13 = vld [vmem:[%s7705_s1 + $0x4b8] sm:$0xf0]  ;;  %v3689_v17 = vor.u32 %v4816_v5, %v3686_v6  ;;  %v3865_v5 = vor.u32 %v4860_v54, %v3862_v55  ;;  %v3790_v6 = vld [vmem:[%s7705_s1 + $0x508] sm:$0xf0] }
 0x104   :  { %2838 = vmatpush.bf16.msra.mxu0 %v3721_v14  ;;  %2807 = vmatmul.bf16.vlgmr.msrb.gmra.mxu1 %v5588_v44  ;;  %v3758_v44 = vld [vmem:[%s7705_s1 + $0x4c8] sm:$0xf0]  ;;  %v4848_v14 = vld [vmem:[%s7705_s1 + $0x534] sm:$0xf]  ;;  %v3753_v20 = vor.u32 %v4832_v9, %v3750_v13  ;;  %v4826_v1 = vld [vmem:[%s7705_s1 + $0x484] sm:$0xf] }
 0x105   :  { %2851 = vmatpush.bf16.msra.mxu1 %v3785_v11  ;;  %2820 = vmatmul.bf16.vlgmr.msrb.gmra.mxu2 %v5576_v34  ;;  %v3894_v34 = vld [vmem:[%s7705_s1 + $0x5d8] sm:$0xf0]  ;;  %v3761_v3 = vor.u32 %v4834_v39, %v3758_v44  ;;  %v4858_v9 = vld [vmem:[%s7705_s1 + $0x584] sm:$0xf]  ;;  %v4888_v13 = vld [vmem:[%s7705_s1 + $0x674] sm:$0xf] }
 0x106   :  { %2864 = vmatpush.bf16.msra.mxu2 %v3849_v15  ;;  %2833 = vmatmul.bf16.vlgmr.msrb.gmra.mxu3 %v5586_v40  ;;  %v3897_v40 = vor.u32 %v4868_v49, %v3894_v34  ;;  %v3814_v11 = vld [vmem:[%s7705_s1 + $0x538] sm:$0xf0]  ;;  %v4864_v15 = vld [vmem:[%s7705_s1 + $0x5b4] sm:$0xf] }
 0x107   :  { %2877 = vmatpush.bf16.msra.mxu3 %v3913_v23  ;;  %v3817_v23 = vor.u32 %v4848_v14, %v3814_v11  ;;  %v3881_v43 = vor.u32 %v4864_v15, %v3878_v16  ;;  %v3734_v39 = vld [vmem:[%s7705_s1 + $0x498] sm:$0xf0]  ;;  %v4904_v11 = vld [vmem:[%s7705_s1 + $0x6f4] sm:$0xf]  ;;  %v3665_v16 = vor.u32 %v4810_v57, %v3662_v58 }
 0x108   :  { %2839 = vmatpush.bf16.msra.mxu0 %v3713_v29  ;;  %v2613_v27 = vpop.f32.mrf.mxu2  ;;  %v3742_v29 = vld [vmem:[%s7705_s1 + $0x4a8] sm:$0xf0]  ;;  %v2589_v63 = vpop.f32.mrf.mxu0  ;;  %v3798_v44 = vld [vmem:[%s7705_s1 + $0x518] sm:$0xf0]  ;;  %v3737_v61 = vor.u32 %v4828_v52, %v3734_v39  ;;  %v4916_v55 = vld [vmem:[%s7705_s1 + $0x754] sm:$0xf] }
 0x109   :  { %2852 = vmatpush.bf16.msra.mxu1 %v3777_v30  ;;  %v4846_v30 = vld [vmem:[%s7705_s1 + $0x524] sm:$0xf]  ;;  %v2614_v60 = vadd.f32 %v2613_v27, %v2601_v10  ;;  %v2626_v37 = vpop.f32.mrf.mxu3  ;;  %v2602_v47 = vpop.f32.mrf.mxu1  ;;  %v3745_v34 = vor.u32 %v4830_v42, %v3742_v29  ;;  %v3974_v14 = vld [vmem:[%s7705_s1 + $0x678] sm:$0xf0]  ;;  %v4936_v42 = vld [vmem:[%s7705_s1 + $0x7f4] sm:$0xf] }
 0x10a   :  { %2865 = vmatpush.bf16.msra.mxu2 %v3841_v21  ;;  %v3806_v21 = vld [vmem:[%s7705_s1 + $0x528] sm:$0xf0]  ;;  %v3977_v29 = vor.u32 %v4888_v13, %v3974_v14  ;;  %v3958_v39 = vld [vmem:[%s7705_s1 + $0x658] sm:$0xf0] }
 0x10b   :  { %2878 = vmatpush.bf16.msra.mxu3 %v3905_v41  ;;  %v3870_v41 = vld [vmem:[%s7705_s1 + $0x5a8] sm:$0xf0]  ;;  %v6945_v49 = vadd.f32 %v2626_v37, %v2614_v60  ;;  %v4886_v60 = vld [vmem:[%s7705_s1 + $0x664] sm:$0xf]  ;;  %v4022_v54 = vld [vmem:[%s7705_s1 + $0x6d8] sm:$0xf0] }
 0x10c   :  { %2840 = vmatpush.bf16.msra.mxu0 %v3705_v50  ;;  %v3809_v50 = vor.u32 %v4846_v30, %v3806_v21  ;;  %v3873_v53 = vor.u32 %v4862_v62, %v3870_v41  ;;  %v3966_v37 = vld [vmem:[%s7705_s1 + $0x668] sm:$0xf0]  ;;  %v4902_v62 = vld [vmem:[%s7705_s1 + $0x6e4] sm:$0xf]  ;;  %v4150_v57 = vld [vmem:[%s7705_s1 + $0x7d8] sm:$0xf0] }
 0x10d   :  { %2853 = vmatpush.bf16.msra.mxu1 %v3769_v48  ;;  %v4812_v48 = vld [vmem:[%s7705_s1 + $0x414] sm:$0xf]  ;;  %v4030_v63 = vld [vmem:[%s7705_s1 + $0x6e8] sm:$0xf0] }
 0x10e   :  { %2866 = vmatpush.bf16.msra.mxu2 %v3833_v51  ;;  %v3670_v51 = vld [vmem:[%s7705_s1 + $0x418] sm:$0xf0]  ;;  %v4094_v47 = vld [vmem:[%s7705_s1 + $0x768] sm:$0xf0] }
 0x10f   :  { %2879 = vmatpush.bf16.msra.mxu3 %v3897_v40  ;;  %v4844_v40 = vld [vmem:[%s7705_s1 + $0x514] sm:$0xf]  ;;  %v3673_v56 = vor.u32 %v4812_v48, %v3670_v51  ;;  %v3969_v48 = vor.u32 %v4886_v60, %v3966_v37  ;;  %v4033_v51 = vor.u32 %v4902_v62, %v4030_v63  ;;  %v4878_v60 = vld [vmem:[%s7705_s1 + $0x624] sm:$0xf]  ;;  %v3934_v37 = vld [vmem:[%s7705_s1 + $0x628] sm:$0xf0] }
 0x110   :  { %2841 = vmatpush.bf16.msra.mxu0 %v3697_v0  ;;  %v3801_v0 = vor.u32 %v4844_v40, %v3798_v44  ;;  %v2615_v10 = vpop.f32.mrf.mxu2  ;;  %v4900_v40 = vld [vmem:[%s7705_s1 + $0x6d4] sm:$0xf]  ;;  %v4894_v62 = vld [vmem:[%s7705_s1 + $0x6a4] sm:$0xf] }
 0x111   :  { %2854 = vmatpush.bf16.msra.mxu1 %v3761_v3  ;;  %v3726_v3 = vld [vmem:[%s7705_s1 + $0x488] sm:$0xf0]  ;;  %v2628_v15 = vpop.f32.mrf.mxu3 }
 0x112   :  { %2867 = vmatpush.bf16.msra.mxu2 %v3825_v4  ;;  %v4842_v4 = vld [vmem:[%s7705_s1 + $0x504] sm:$0xf]  ;;  %v3729_v25 = vor.u32 %v4826_v1, %v3726_v3  ;;  %v4014_v3 = vld [vmem:[%s7705_s1 + $0x6c8] sm:$0xf0] }
 0x113   :  { %2880 = vmatpush.bf16.msra.mxu3 %v3889_v35  ;;  %v3854_v35 = vld [vmem:[%s7705_s1 + $0x588] sm:$0xf0]  ;;  %v3793_v36 = vor.u32 %v4842_v4, %v3790_v6  ;;  %v4898_v1 = vld [vmem:[%s7705_s1 + $0x6c4] sm:$0xf] }
 0x114   :  { %2842 = vmatpush.bf16.msra.mxu0 %v3689_v17  ;;  %v4038_v17 = vld [vmem:[%s7705_s1 + $0x6f8] sm:$0xf0]  ;;  %v3857_v27 = vor.u32 %v4858_v9, %v3854_v35  ;;  %v4914_v4 = vld [vmem:[%s7705_s1 + $0x744] sm:$0xf]  ;;  %v4142_v35 = vld [vmem:[%s7705_s1 + $0x7c8] sm:$0xf0] }
 0x115   :  { %2855 = vmatpush.bf16.msra.mxu1 %v3753_v20  ;;  %v4920_v20 = vld [vmem:[%s7705_s1 + $0x774] sm:$0xf]  ;;  %v4041_v30 = vor.u32 %v4904_v11, %v4038_v17  ;;  %v4930_v9 = vld [vmem:[%s7705_s1 + $0x7c4] sm:$0xf]  ;;  %v4017_v11 = vor.u32 %v4898_v1, %v4014_v3  ;;  %v3942_v17 = vld [vmem:[%s7705_s1 + $0x638] sm:$0xf0] }
 0x116   :  { %2868 = vmatpush.bf16.msra.mxu2 %v3817_v23  ;;  %v4102_v23 = vld [vmem:[%s7705_s1 + $0x778] sm:$0xf0]  ;;  %v4874_v3 = vld [vmem:[%s7705_s1 + $0x604] sm:$0xf] }
 0x117   :  { %2881 = vmatpush.bf16.msra.mxu3 %v3881_v43  ;;  %v4166_v43 = vld [vmem:[%s7705_s1 + $0x7f8] sm:$0xf0]  ;;  %v4105_v21 = vor.u32 %v4920_v20, %v4102_v23  ;;  %v4896_v20 = vld [vmem:[%s7705_s1 + $0x6b4] sm:$0xf] }
 0x118   :  { %2843 = vmatpush.bf16.msra.mxu0 %v3681_v46  ;;  %v4169_v41 = vor.u32 %v4936_v42, %v4166_v43  ;;  %v4918_v46 = vld [vmem:[%s7705_s1 + $0x764] sm:$0xf]  ;;  %v4070_v42 = vld [vmem:[%s7705_s1 + $0x738] sm:$0xf0]  ;;  %v4928_v43 = vld [vmem:[%s7705_s1 + $0x7b4] sm:$0xf] }
 0x119   :  { %2856 = vmatpush.bf16.msra.mxu1 %v3745_v34  ;;  %v4934_v34 = vld [vmem:[%s7705_s1 + $0x7e4] sm:$0xf]  ;;  %v4097_v52 = vor.u32 %v4918_v46, %v4094_v47  ;;  %v3998_v46 = vld [vmem:[%s7705_s1 + $0x6a8] sm:$0xf0]  ;;  %v4118_v1 = vld [vmem:[%s7705_s1 + $0x798] sm:$0xf0] }
 0x11a   :  { %2869 = vmatpush.bf16.msra.mxu2 %v3809_v50  ;;  %v4158_v50 = vld [vmem:[%s7705_s1 + $0x7e8] sm:$0xf0]  ;;  %v4910_v47 = vld [vmem:[%s7705_s1 + $0x724] sm:$0xf] }
 0x11b   :  { %2882 = vmatpush.bf16.msra.mxu3 %v3873_v53  ;;  %v4884_v53 = vld [vmem:[%s7705_s1 + $0x654] sm:$0xf]  ;;  %v4161_v44 = vor.u32 %v4934_v34, %v4158_v50  ;;  %v4062_v34 = vld [vmem:[%s7705_s1 + $0x728] sm:$0xf0] }
 0x11c   :  { %2844 = vmatpush.bf16.msra.mxu0 %v3673_v56  ;;  %v4086_v56 = vld [vmem:[%s7705_s1 + $0x758] sm:$0xf0]  ;;  %v3961_v58 = vor.u32 %v4884_v53, %v3958_v39  ;;  %v3937_v39 = vor.u32 %v4878_v60, %v3934_v37 }
 0x11d   :  { %2857 = vmatpush.bf16.msra.mxu1 %v3737_v61  ;;  %v4025_v61 = vor.u32 %v4900_v40, %v4022_v54  ;;  %v4001_v54 = vor.u32 %v4894_v62, %v3998_v46  ;;  %v4222_v46 = vld [vmem:[%s7705_s1 + $0x868] sm:$0xf0] }
 0x11e   :  { %2870 = vmatpush.bf16.msra.mxu2 %v3801_v0  ;;  %v4089_v0 = vor.u32 %v4916_v55, %v4086_v56  ;;  %v4065_v55 = vor.u32 %v4910_v47, %v4062_v34  ;;  %v4876_v56 = vld [vmem:[%s7705_s1 + $0x614] sm:$0xf]  ;;  %v4966_v47 = vld [vmem:[%s7705_s1 + $0x8e4] sm:$0xf] }
 0x11f   :  { %2883 = vmatpush.bf16.msra.mxu3 %v3865_v5  ;;  %v4078_v5 = vld [vmem:[%s7705_s1 + $0x748] sm:$0xf0] }
 0x120   :  { %2845 = vmatpush.bf16.msra.mxu0 %v3665_v16  ;;  %v2639_v6 = vpop.f32.mrf.mxu0  ;;  %v4081_v15 = vor.u32 %v4914_v4, %v4078_v5  ;;  %v4880_v16 = vld [vmem:[%s7705_s1 + $0x634] sm:$0xf]  ;;  %v3918_v4 = vld [vmem:[%s7705_s1 + $0x608] sm:$0xf0] }
 0x121   :  { %2858 = vmatpush.bf16.msra.mxu1 %v3729_v25  ;;  %v2640_v10 = vadd.f32 %v2639_v6, %v6945_v49  ;;  %v2652_v14 = vpop.f32.mrf.mxu1  ;;  %v4145_v49 = vor.u32 %v4930_v9, %v4142_v35  ;;  %v4006_v25 = vld [vmem:[%s7705_s1 + $0x6b8] sm:$0xf0]  ;;  %v4890_v9 = vld [vmem:[%s7705_s1 + $0x684] sm:$0xf]  ;;  %v3982_v35 = vld [vmem:[%s7705_s1 + $0x688] sm:$0xf0] }
 0x122   :  { %2871 = vmatpush.bf16.msra.mxu2 %v3793_v36  ;;  %v4912_v36 = vld [vmem:[%s7705_s1 + $0x734] sm:$0xf] }
 0x123   :  { %2884 = vmatpush.bf16.msra.mxu3 %v3857_v27  ;;  %2846 = vmatmul.bf16.vlgmr.msra.gmra.mxu0 %v5784_v24  ;;  %v4932_v24 = vld [vmem:[%s7705_s1 + $0x7d4] sm:$0xf]  ;;  %v2653_v23 = vadd.f32 %v2652_v14, %v2640_v10  ;;  %v4134_v27 = vld [vmem:[%s7705_s1 + $0x7b8] sm:$0xf0]  ;;  %v4906_v10 = vld [vmem:[%s7705_s1 + $0x704] sm:$0xf] }
 0x124   :  { %2890 = vmatpush.bf16.msrb.mxu0 %v3977_v29  ;;  %2859 = vmatmul.bf16.vlgmr.msra.gmra.mxu1 %v5801_v18  ;;  %v3950_v18 = vld [vmem:[%s7705_s1 + $0x648] sm:$0xf0]  ;;  %v3945_v29 = vor.u32 %v4880_v16, %v3942_v17  ;;  %v4952_v17 = vld [vmem:[%s7705_s1 + $0x874] sm:$0xf] }
 0x125   :  { %2903 = vmatpush.bf16.msrb.mxu1 %v4041_v30  ;;  %2872 = vmatmul.bf16.vlgmr.msra.gmra.mxu2 %v5797_v28  ;;  %v4882_v28 = vld [vmem:[%s7705_s1 + $0x644] sm:$0xf]  ;;  %v4009_v30 = vor.u32 %v4896_v20, %v4006_v25  ;;  %v4046_v14 = vld [vmem:[%s7705_s1 + $0x708] sm:$0xf0]  ;;  %v4230_v20 = vld [vmem:[%s7705_s1 + $0x878] sm:$0xf0]  ;;  %v3921_v25 = vor.u32 %v4874_v3, %v3918_v4 }
 0x126   :  { %2916 = vmatpush.bf16.msrb.mxu2 %v4105_v21  ;;  %2885 = vmatmul.bf16.vlgmr.msra.gmra.mxu3 %v5811_v31  ;;  %v4153_v31 = vor.u32 %v4932_v24, %v4150_v57  ;;  %v3953_v13 = vor.u32 %v4882_v28, %v3950_v18  ;;  %v4073_v21 = vor.u32 %v4912_v36, %v4070_v42  ;;  %v3926_v24 = vld [vmem:[%s7705_s1 + $0x618] sm:$0xf0]  ;;  %v4892_v57 = vld [vmem:[%s7705_s1 + $0x694] sm:$0xf]  ;;  %v4962_v3 = vld [vmem:[%s7705_s1 + $0x8c4] sm:$0xf] }
 0x127   :  { %2929 = vmatpush.bf16.msrb.mxu3 %v4169_v41  ;;  %v4137_v41 = vor.u32 %v4928_v43, %v4134_v27  ;;  %v4054_v28 = vld [vmem:[%s7705_s1 + $0x718] sm:$0xf0]  ;;  %v4924_v18 = vld [vmem:[%s7705_s1 + $0x794] sm:$0xf]  ;;  %v3985_v27 = vor.u32 %v4890_v9, %v3982_v35  ;;  %v4233_v37 = vor.u32 %v4952_v17, %v4230_v20  ;;  %v4270_v4 = vld [vmem:[%s7705_s1 + $0x8c8] sm:$0xf0] }
 0x128   :  { %2891 = vmatpush.bf16.msrb.mxu0 %v3969_v48  ;;  %v2665_v63 = vpop.f32.mrf.mxu2  ;;  %v2641_v53 = vpop.f32.mrf.mxu0  ;;  %v4294_v36 = vld [vmem:[%s7705_s1 + $0x8f8] sm:$0xf0]  ;;  %v4984_v42 = vld [vmem:[%s7705_s1 + $0x974] sm:$0xf]  ;;  %v4994_v35 = vld [vmem:[%s7705_s1 + $0x9c4] sm:$0xf] }
 0x129   :  { %2904 = vmatpush.bf16.msrb.mxu1 %v4033_v51  ;;  %v2666_v50 = vadd.f32 %v2665_v63, %v2653_v23  ;;  %v2678_v48 = vpop.f32.mrf.mxu3  ;;  %v4926_v51 = vld [vmem:[%s7705_s1 + $0x7a4] sm:$0xf]  ;;  %v2654_v40 = vpop.f32.mrf.mxu1  ;;  %v4358_v43 = vld [vmem:[%s7705_s1 + $0x978] sm:$0xf0]  ;;  %v4414_v53 = vld [vmem:[%s7705_s1 + $0x9e8] sm:$0xf0] }
 0x12a   :  { %2917 = vmatpush.bf16.msrb.mxu2 %v4097_v52  ;;  %v4126_v52 = vld [vmem:[%s7705_s1 + $0x7a8] sm:$0xf0]  ;;  %v4950_v63 = vld [vmem:[%s7705_s1 + $0x864] sm:$0xf]  ;;  %v4944_v17 = vld [vmem:[%s7705_s1 + $0x834] sm:$0xf] }
 0x12b   :  { %2930 = vmatpush.bf16.msrb.mxu3 %v4161_v44  ;;  %v7144_v44 = vadd.f32 %v2678_v48, %v2666_v50  ;;  %v4286_v50 = vld [vmem:[%s7705_s1 + $0x8e8] sm:$0xf0]  ;;  %v4982_v48 = vld [vmem:[%s7705_s1 + $0x964] sm:$0xf]  ;;  %v4198_v20 = vld [vmem:[%s7705_s1 + $0x838] sm:$0xf0] }
 0x12c   :  { %2892 = vmatpush.bf16.msrb.mxu0 %v3961_v58  ;;  %v4129_v58 = vor.u32 %v4926_v51, %v4126_v52  ;;  %v4350_v51 = vld [vmem:[%s7705_s1 + $0x968] sm:$0xf0]  ;;  %v4998_v52 = vld [vmem:[%s7705_s1 + $0x9e4] sm:$0xf]  ;;  %v4289_v40 = vor.u32 %v4966_v47, %v4286_v50 }
 0x12d   :  { %2905 = vmatpush.bf16.msrb.mxu1 %v4025_v61  ;;  %v3990_v61 = vld [vmem:[%s7705_s1 + $0x698] sm:$0xf0]  ;;  %v4974_v47 = vld [vmem:[%s7705_s1 + $0x924] sm:$0xf] }
 0x12e   :  { %2918 = vmatpush.bf16.msrb.mxu2 %v4089_v0  ;;  %v4908_v0 = vld [vmem:[%s7705_s1 + $0x714] sm:$0xf]  ;;  %v3993_v5 = vor.u32 %v4892_v57, %v3990_v61  ;;  %v4417_v57 = vor.u32 %v4998_v52, %v4414_v53  ;;  %v4382_v52 = vld [vmem:[%s7705_s1 + $0x9a8] sm:$0xf0] }
 0x12f   :  { %2931 = vmatpush.bf16.msrb.mxu3 %v4153_v31  ;;  %v3929_v31 = vor.u32 %v4876_v56, %v3926_v24  ;;  %v4057_v6 = vor.u32 %v4908_v0, %v4054_v28  ;;  %v4214_v56 = vld [vmem:[%s7705_s1 + $0x858] sm:$0xf0]  ;;  %v4964_v24 = vld [vmem:[%s7705_s1 + $0x8d4] sm:$0xf] }
 0x130   :  { %2893 = vmatpush.bf16.msrb.mxu0 %v3953_v13  ;;  %v4121_v13 = vor.u32 %v4924_v18, %v4118_v1  ;;  %v2667_v16 = vpop.f32.mrf.mxu2  ;;  %v4980_v61 = vld [vmem:[%s7705_s1 + $0x954] sm:$0xf]  ;;  %v4342_v0 = vld [vmem:[%s7705_s1 + $0x958] sm:$0xf0] }
 0x131   :  { %2906 = vmatpush.bf16.msrb.mxu1 %v4017_v11  ;;  %v4922_v11 = vld [vmem:[%s7705_s1 + $0x784] sm:$0xf]  ;;  %v2680_v23 = vpop.f32.mrf.mxu3  ;;  %v4406_v28 = vld [vmem:[%s7705_s1 + $0x9d8] sm:$0xf0] }
 0x132   :  { %2919 = vmatpush.bf16.msrb.mxu2 %v4081_v15  ;;  %v4110_v15 = vld [vmem:[%s7705_s1 + $0x788] sm:$0xf0] }
 0x133   :  { %2932 = vmatpush.bf16.msrb.mxu3 %v4145_v49  ;;  %v4968_v49 = vld [vmem:[%s7705_s1 + $0x8f4] sm:$0xf]  ;;  %v4113_v60 = vor.u32 %v4922_v11, %v4110_v15  ;;  %v4273_v15 = vor.u32 %v4962_v3, %v4270_v4  ;;  %v4954_v4 = vld [vmem:[%s7705_s1 + $0x884] sm:$0xf] }
 0x134   :  { %2894 = vmatpush.bf16.msrb.mxu0 %v3945_v29  ;;  %v4049_v29 = vor.u32 %v4906_v10, %v4046_v14  ;;  %v4297_v62 = vor.u32 %v4968_v49, %v4294_v36  ;;  %v4398_v10 = vld [vmem:[%s7705_s1 + $0x9c8] sm:$0xf0]  ;;  %v4960_v49 = vld [vmem:[%s7705_s1 + $0x8b4] sm:$0xf] }
 0x135   :  { %2907 = vmatpush.bf16.msrb.mxu1 %v4009_v30  ;;  %v5000_v30 = vld [vmem:[%s7705_s1 + $0x9f4] sm:$0xf] }
 0x136   :  { %2920 = vmatpush.bf16.msrb.mxu2 %v4073_v21  ;;  %v4422_v21 = vld [vmem:[%s7705_s1 + $0x9f8] sm:$0xf0]  ;;  %v4976_v36 = vld [vmem:[%s7705_s1 + $0x934] sm:$0xf] }
 0x137   :  { %2933 = vmatpush.bf16.msrb.mxu3 %v4137_v41  ;;  %v4361_v41 = vor.u32 %v4984_v42, %v4358_v43  ;;  %v4425_v34 = vor.u32 %v5000_v30, %v4422_v21  ;;  %v4326_v42 = vld [vmem:[%s7705_s1 + $0x938] sm:$0xf0]  ;;  %v4992_v43 = vld [vmem:[%s7705_s1 + $0x9b4] sm:$0xf] }
 0x138   :  { %2895 = vmatpush.bf16.msrb.mxu0 %v3937_v39  ;;  %v4225_v39 = vor.u32 %v4950_v63, %v4222_v46  ;;  %v4329_v21 = vor.u32 %v4976_v36, %v4326_v42  ;;  %v4254_v46 = vld [vmem:[%s7705_s1 + $0x8a8] sm:$0xf0]  ;;  %v5064_v42 = vld [vmem:[%s7705_s1 + $0xbf4] sm:$0xf] }
 0x139   :  { %2908 = vmatpush.bf16.msrb.mxu1 %v4001_v54  ;;  %v4353_v54 = vor.u32 %v4982_v48, %v4350_v51  ;;  %v4990_v51 = vld [vmem:[%s7705_s1 + $0x9a4] sm:$0xf] }
 0x13a   :  { %2921 = vmatpush.bf16.msrb.mxu2 %v4065_v55  ;;  %v4948_v55 = vld [vmem:[%s7705_s1 + $0x854] sm:$0xf] }
 0x13b   :  { %2934 = vmatpush.bf16.msrb.mxu3 %v4129_v58  ;;  %v4278_v58 = vld [vmem:[%s7705_s1 + $0x8d8] sm:$0xf0]  ;;  %v4217_v18 = vor.u32 %v4948_v55, %v4214_v56 }
 0x13c   :  { %2896 = vmatpush.bf16.msrb.mxu0 %v3929_v31  ;;  %v4281_v1 = vor.u32 %v4964_v24, %v4278_v58  ;;  %v4345_v31 = vor.u32 %v4980_v61, %v4342_v0  ;;  %v4940_v24 = vld [vmem:[%s7705_s1 + $0x814] sm:$0xf]  ;;  %v4385_v61 = vor.u32 %v4990_v51, %v4382_v52  ;;  %v4246_v0 = vld [vmem:[%s7705_s1 + $0x898] sm:$0xf0] }
 0x13d   :  { %2909 = vmatpush.bf16.msrb.mxu1 %v3993_v5  ;;  %v4978_v5 = vld [vmem:[%s7705_s1 + $0x944] sm:$0xf]  ;;  %v4956_v58 = vld [vmem:[%s7705_s1 + $0x894] sm:$0xf] }
 0x13e   :  { %2922 = vmatpush.bf16.msrb.mxu2 %v4057_v6  ;;  %v4334_v6 = vld [vmem:[%s7705_s1 + $0x948] sm:$0xf0]  ;;  %v4249_v3 = vor.u32 %v4956_v58, %v4246_v0  ;;  %v4662_v58 = vld [vmem:[%s7705_s1 + $0xbd8] sm:$0xf0]  ;;  %v5010_v0 = vld [vmem:[%s7705_s1 + $0xa44] sm:$0xf] }
 0x13f   :  { %2935 = vmatpush.bf16.msrb.mxu3 %v4121_v13  ;;  %v4337_v16 = vor.u32 %v4978_v5, %v4334_v6  ;;  %v4238_v5 = vld [vmem:[%s7705_s1 + $0x888] sm:$0xf0]  ;;  %v4970_v6 = vld [vmem:[%s7705_s1 + $0x904] sm:$0xf] }
 0x140   :  { %2897 = vmatpush.bf16.msrb.mxu0 %v3921_v25  ;;  %v2691_v9 = vpop.f32.mrf.mxu0  ;;  %v4262_v25 = vld [vmem:[%s7705_s1 + $0x8b8] sm:$0xf0] }
 0x141   :  { %2910 = vmatpush.bf16.msrb.mxu1 %v3985_v27  ;;  %v2692_v13 = vadd.f32 %v2691_v9, %v7144_v44  ;;  %v2704_v11 = vpop.f32.mrf.mxu1  ;;  %v4401_v44 = vor.u32 %v4994_v35, %v4398_v10  ;;  %v4390_v27 = vld [vmem:[%s7705_s1 + $0x9b8] sm:$0xf0]  ;;  %v4265_v30 = vor.u32 %v4960_v49, %v4262_v25  ;;  %v4302_v35 = vld [vmem:[%s7705_s1 + $0x908] sm:$0xf0]  ;;  %v4986_v10 = vld [vmem:[%s7705_s1 + $0x984] sm:$0xf]  ;;  %v4241_v25 = vor.u32 %v4954_v4, %v4238_v5 }
 0x142   :  { %2923 = vmatpush.bf16.msrb.mxu2 %v4049_v29  ;;  %v4201_v29 = vor.u32 %v4944_v17, %v4198_v20  ;;  %v4550_v49 = vld [vmem:[%s7705_s1 + $0xaf8] sm:$0xf0]  ;;  %v4305_v36 = vor.u32 %v4970_v6, %v4302_v35  ;;  %v5008_v35 = vld [vmem:[%s7705_s1 + $0xa34] sm:$0xf] }
 0x143   :  { %2936 = vmatpush.bf16.msrb.mxu3 %v4113_v60  ;;  %2898 = vmatmul.bf16.vlgmr.msrb.gmra.mxu0 %v6007_v26  ;;  %v4996_v26 = vld [vmem:[%s7705_s1 + $0x9d4] sm:$0xf]  ;;  %v2705_v23 = vadd.f32 %v2704_v11, %v2692_v13  ;;  %v4942_v60 = vld [vmem:[%s7705_s1 + $0x824] sm:$0xf]  ;;  %v4366_v13 = vld [vmem:[%s7705_s1 + $0x988] sm:$0xf0] }
 0x144   :  { %2942 = vmatpush.bf16.msra.mxu0 %v4233_v37  ;;  %2911 = vmatmul.bf16.vlgmr.msrb.gmra.mxu1 %v6024_v59  ;;  %v4206_v59 = vld [vmem:[%s7705_s1 + $0x848] sm:$0xf0]  ;;  %v5016_v11 = vld [vmem:[%s7705_s1 + $0xa74] sm:$0xf] }
 0x145   :  { %2955 = vmatpush.bf16.msra.mxu1 %v4297_v62  ;;  %2924 = vmatmul.bf16.vlgmr.msrb.gmra.mxu2 %v6020_v19  ;;  %v4946_v19 = vld [vmem:[%s7705_s1 + $0x844] sm:$0xf]  ;;  %v4190_v37 = vld [vmem:[%s7705_s1 + $0x828] sm:$0xf0] }
 0x146   :  { %2968 = vmatpush.bf16.msra.mxu2 %v4361_v41  ;;  %2937 = vmatmul.bf16.vlgmr.msrb.gmra.mxu3 %v6034_v33  ;;  %v4409_v33 = vor.u32 %v4996_v26, %v4406_v28  ;;  %v4209_v14 = vor.u32 %v4946_v19, %v4206_v59  ;;  %v4958_v62 = vld [vmem:[%s7705_s1 + $0x8a4] sm:$0xf]  ;;  %v4393_v41 = vor.u32 %v4992_v43, %v4390_v27  ;;  %v4972_v26 = vld [vmem:[%s7705_s1 + $0x914] sm:$0xf]  ;;  %v4310_v28 = vld [vmem:[%s7705_s1 + $0x918] sm:$0xf0] }
 0x147   :  { %2981 = vmatpush.bf16.msra.mxu3 %v4425_v34  ;;  %v4318_v34 = vld [vmem:[%s7705_s1 + $0x928] sm:$0xf0]  ;;  %v4257_v55 = vor.u32 %v4958_v62, %v4254_v46  ;;  %v4938_v19 = vld [vmem:[%s7705_s1 + $0x804] sm:$0xf]  ;;  %v4678_v43 = vld [vmem:[%s7705_s1 + $0xbf8] sm:$0xf0]  ;;  %v4369_v27 = vor.u32 %v4986_v10, %v4366_v13 }
 0x148   :  { %2943 = vmatpush.bf16.msra.mxu0 %v4225_v39  ;;  %v2717_v63 = vpop.f32.mrf.mxu2  ;;  %v2693_v53 = vpop.f32.mrf.mxu0  ;;  %v4193_v39 = vor.u32 %v4942_v60, %v4190_v37  ;;  %v4321_v56 = vor.u32 %v4974_v47, %v4318_v34  ;;  %v4174_v59 = vld [vmem:[%s7705_s1 + $0x808] sm:$0xf0]  ;;  %v5014_v60 = vld [vmem:[%s7705_s1 + $0xa64] sm:$0xf]  ;;  %v4454_v10 = vld [vmem:[%s7705_s1 + $0xa38] sm:$0xf0] }
 0x149   :  { %2956 = vmatpush.bf16.msra.mxu1 %v4289_v40  ;;  %v2718_v50 = vadd.f32 %v2717_v63, %v2705_v23  ;;  %v2730_v48 = vpop.f32.mrf.mxu3  ;;  %v2706_v40 = vpop.f32.mrf.mxu1  ;;  %v4177_v20 = vor.u32 %v4938_v19, %v4174_v59  ;;  %v4614_v23 = vld [vmem:[%s7705_s1 + $0xb78] sm:$0xf0]  ;;  %v4478_v37 = vld [vmem:[%s7705_s1 + $0xa68] sm:$0xf0]  ;;  %v5030_v62 = vld [vmem:[%s7705_s1 + $0xae4] sm:$0xf] }
 0x14a   :  { %2969 = vmatpush.bf16.msra.mxu2 %v4353_v54  ;;  %v4542_v63 = vld [vmem:[%s7705_s1 + $0xae8] sm:$0xf0]  ;;  %v5046_v46 = vld [vmem:[%s7705_s1 + $0xb64] sm:$0xf]  ;;  %v5012_v53 = vld [vmem:[%s7705_s1 + $0xa54] sm:$0xf] }
 0x14b   :  { %2982 = vmatpush.bf16.msra.mxu3 %v4417_v57  ;;  %v7343_v54 = vadd.f32 %v2730_v48, %v2718_v50  ;;  %v4182_v57 = vld [vmem:[%s7705_s1 + $0x818] sm:$0xf0]  ;;  %v4606_v47 = vld [vmem:[%s7705_s1 + $0xb68] sm:$0xf0]  ;;  %v5062_v34 = vld [vmem:[%s7705_s1 + $0xbe4] sm:$0xf]  ;;  %v4481_v48 = vor.u32 %v5014_v60, %v4478_v37  ;;  %v4545_v51 = vor.u32 %v5030_v62, %v4542_v63 }
 0x14c   :  { %2944 = vmatpush.bf16.msra.mxu0 %v4217_v18  ;;  %v4988_v18 = vld [vmem:[%s7705_s1 + $0x994] sm:$0xf]  ;;  %v4670_v50 = vld [vmem:[%s7705_s1 + $0xbe8] sm:$0xf0]  ;;  %v4609_v52 = vor.u32 %v5046_v46, %v4606_v47  ;;  %v5042_v19 = vld [vmem:[%s7705_s1 + $0xb44] sm:$0xf] }
 0x14d   :  { %2957 = vmatpush.bf16.msra.mxu1 %v4281_v1  ;;  %v4374_v1 = vld [vmem:[%s7705_s1 + $0x998] sm:$0xf0]  ;;  %v5028_v40 = vld [vmem:[%s7705_s1 + $0xad4] sm:$0xf]  ;;  %v4590_v59 = vld [vmem:[%s7705_s1 + $0xb48] sm:$0xf0] }
 0x14e   :  { %2970 = vmatpush.bf16.msra.mxu2 %v4345_v31  ;;  %v4185_v31 = vor.u32 %v4940_v24, %v4182_v57  ;;  %v4377_v9 = vor.u32 %v4988_v18, %v4374_v1  ;;  %v5044_v24 = vld [vmem:[%s7705_s1 + $0xb54] sm:$0xf]  ;;  %v4598_v57 = vld [vmem:[%s7705_s1 + $0xb58] sm:$0xf0]  ;;  %v4510_v60 = vld [vmem:[%s7705_s1 + $0xaa8] sm:$0xf0] }
 0x14f   :  { %2983 = vmatpush.bf16.msra.mxu3 %v4409_v33  ;;  %v4313_v33 = vor.u32 %v4972_v26, %v4310_v28  ;;  %v4462_v26 = vld [vmem:[%s7705_s1 + $0xa48] sm:$0xf0]  ;;  %v5026_v28 = vld [vmem:[%s7705_s1 + $0xac4] sm:$0xf]  ;;  %v5024_v13 = vld [vmem:[%s7705_s1 + $0xab4] sm:$0xf] }
 0x150   :  { %2945 = vmatpush.bf16.msra.mxu0 %v4209_v14  ;;  %v2719_v14 = vpop.f32.mrf.mxu2  ;;  %v4465_v4 = vor.u32 %v5010_v0, %v4462_v26  ;;  %v5038_v37 = vld [vmem:[%s7705_s1 + $0xb24] sm:$0xf]  ;;  %v4574_v62 = vld [vmem:[%s7705_s1 + $0xb28] sm:$0xf0]  ;;  %vm3046_vm0 = vcmp.gt.f32.partialorder %v7343_v54, 0.0 }
 0x151   :  { %2958 = vmatpush.bf16.msra.mxu1 %v4273_v15  ;;  %v4486_v15 = vld [vmem:[%s7705_s1 + $0xa78] sm:$0xf0]  ;;  %v2732_v17 = vpop.f32.mrf.mxu3  ;;  %v5054_v46 = vld [vmem:[%s7705_s1 + $0xba4] sm:$0xf]  ;;  %v4638_v47 = vld [vmem:[%s7705_s1 + $0xba8] sm:$0xf0] }
 0x152   :  { %2971 = vmatpush.bf16.msra.mxu2 %v4337_v16  ;;  %v5032_v16 = vld [vmem:[%s7705_s1 + $0xaf4] sm:$0xf]  ;;  %v5002_v26 = vld [vmem:[%s7705_s1 + $0xa04] sm:$0xf] }
 0x153   :  { %2984 = vmatpush.bf16.msra.mxu3 %v4401_v44  ;;  %v5048_v44 = vld [vmem:[%s7705_s1 + $0xb74] sm:$0xf] }
 0x154   :  { %2946 = vmatpush.bf16.msra.mxu0 %v4201_v29  ;;  %v4489_v29 = vor.u32 %v5016_v11, %v4486_v15  ;;  %v5040_v17 = vld [vmem:[%s7705_s1 + $0xb34] sm:$0xf] }
 0x155   :  { %2959 = vmatpush.bf16.msra.mxu1 %v4265_v30  ;;  %v4553_v30 = vor.u32 %v5032_v16, %v4550_v49  ;;  %v4518_v16 = vld [vmem:[%s7705_s1 + $0xab8] sm:$0xf0]  ;;  %v5056_v49 = vld [vmem:[%s7705_s1 + $0xbb4] sm:$0xf] }
 0x156   :  { %2972 = vmatpush.bf16.msra.mxu2 %v4329_v21  ;;  %v4617_v21 = vor.u32 %v5048_v44, %v4614_v23  ;;  %v4646_v44 = vld [vmem:[%s7705_s1 + $0xbb8] sm:$0xf0] }
 0x157   :  { %2985 = vmatpush.bf16.msra.mxu3 %v4393_v41  ;;  %v4681_v41 = vor.u32 %v5064_v42, %v4678_v43  ;;  %v5006_v43 = vld [vmem:[%s7705_s1 + $0xa24] sm:$0xf] }
 0x158   :  { %2947 = vmatpush.bf16.msra.mxu0 %v4193_v39  ;;  %v4470_v39 = vld [vmem:[%s7705_s1 + $0xa58] sm:$0xf0] }
 0x159   :  { %2960 = vmatpush.bf16.msra.mxu1 %v4257_v55  ;;  %v4673_v55 = vor.u32 %v5062_v34, %v4670_v50 }
 0x15a   :  { %2973 = vmatpush.bf16.msra.mxu2 %v4321_v56  ;;  %v4534_v56 = vld [vmem:[%s7705_s1 + $0xad8] sm:$0xf0] }
 0x15b   :  { %2986 = vmatpush.bf16.msra.mxu3 %v4385_v61  ;;  %v4473_v61 = vor.u32 %v5012_v53, %v4470_v39  ;;  %v5004_v53 = vld [vmem:[%s7705_s1 + $0xa14] sm:$0xf]  ;;  %v4438_v39 = vld [vmem:[%s7705_s1 + $0xa18] sm:$0xf0] }
 0x15c   :  { %2948 = vmatpush.bf16.msra.mxu0 %v4185_v31  ;;  %v4526_v31 = vld [vmem:[%s7705_s1 + $0xac8] sm:$0xf0]  ;;  %v4441_v0 = vor.u32 %v5004_v53, %v4438_v39 }
 0x15d   :  { %2961 = vmatpush.bf16.msra.mxu1 %v4249_v3  ;;  %v5058_v3 = vld [vmem:[%s7705_s1 + $0xbc4] sm:$0xf]  ;;  %v4529_v6 = vor.u32 %v5026_v28, %v4526_v31  ;;  %v4430_v28 = vld [vmem:[%s7705_s1 + $0xa08] sm:$0xf0] }
 0x15e   :  { %2974 = vmatpush.bf16.msra.mxu2 %v4313_v33  ;;  %v4654_v33 = vld [vmem:[%s7705_s1 + $0xbc8] sm:$0xf0] }
 0x15f   :  { %2987 = vmatpush.bf16.msra.mxu3 %v4377_v9  ;;  %v4593_v9 = vor.u32 %v5042_v19, %v4590_v59  ;;  %v4657_v15 = vor.u32 %v5058_v3, %v4654_v33  ;;  %v4494_v31 = vld [vmem:[%s7705_s1 + $0xa88] sm:$0xf0]  ;;  %v5034_v19 = vld [vmem:[%s7705_s1 + $0xb04] sm:$0xf] }
 0x160   :  { %2949 = vmatpush.bf16.msra.mxu0 %v4177_v20  ;;  %v2743_v5 = vpop.f32.mrf.mxu0  ;;  %v4582_v20 = vld [vmem:[%s7705_s1 + $0xb38] sm:$0xf0]  ;;  %v4558_v59 = vld [vmem:[%s7705_s1 + $0xb08] sm:$0xf0]  ;;  %v5050_v33 = vld [vmem:[%s7705_s1 + $0xb84] sm:$0xf] }
 0x161   :  { %2962 = vmatpush.bf16.msra.mxu1 %v4241_v25  ;;  %v2756_v11 = vpop.f32.mrf.mxu1  ;;  %v4457_v25 = vor.u32 %v5008_v35, %v4454_v10  ;;  %v4585_v42 = vor.u32 %v5040_v17, %v4582_v20  ;;  %v3067_v10 = vld [vmem:[%s7707_s3 + $0x78] sm:$0xff]  ;;  %v3060_v20 = vld [vmem:[%s7707_s3 + $0x40] sm:$0xff] }
 0x162   :  { %2975 = vmatpush.bf16.msra.mxu2 %v4305_v36  ;;  %v4521_v36 = vor.u32 %v5024_v13, %v4518_v16  ;;  %v3066_v13 = vld [vmem:[%s7707_s3 + $0x70] sm:$0xff]  ;;  %v3061_v16 = vld [vmem:[%s7707_s3 + $0x48] sm:$0xff] }
 0x163   :  { %2988 = vmatpush.bf16.msra.mxu3 %v4369_v27  ;;  %2950 = vmatmul.bf16.vlgmr.msra.gmra.mxu0 %v6217_v32  ;;  %v5060_v32 = vld [vmem:[%s7705_s1 + $0xbd4] sm:$0xf]  ;;  %v4446_v27 = vld [vmem:[%s7705_s1 + $0xa28] sm:$0xf0] }
 0x164   :  { %2994 = vmatpush.bf16.msrb.mxu0 %v4489_v29  ;;  %2963 = vmatmul.bf16.vlgmr.msra.gmra.mxu1 %v6230_v22  ;;  %v4601_v22 = vor.u32 %v5044_v24, %v4598_v57  ;;  %v4665_v1 = vor.u32 %v5060_v32, %v4662_v58  ;;  %v5022_v29 = vld [vmem:[%s7705_s1 + $0xaa4] sm:$0xf]  ;;  %v4449_v34 = vor.u32 %v5006_v43, %v4446_v27  ;;  %v4502_v24 = vld [vmem:[%s7705_s1 + $0xa98] sm:$0xf0]  ;;  %v5036_v57 = vld [vmem:[%s7705_s1 + $0xb14] sm:$0xf] }
 0x165   :  { %3007 = vmatpush.bf16.msrb.mxu1 %v4553_v30  ;;  %2976 = vmatmul.bf16.vlgmr.msra.gmra.mxu2 %v6228_v38  ;;  %v4537_v38 = vor.u32 %v5028_v40, %v4534_v56  ;;  %v5020_v40 = vld [vmem:[%s7705_s1 + $0xa94] sm:$0xf]  ;;  %v4641_v56 = vor.u32 %v5054_v46, %v4638_v47  ;;  %v4566_v32 = vld [vmem:[%s7705_s1 + $0xb18] sm:$0xf0]  ;;  %v3052_v46 = vld [vmem:[%s7707_s3] sm:$0xff] }
 0x166   :  { %3020 = vmatpush.bf16.msrb.mxu2 %v4617_v21  ;;  %2989 = vmatmul.bf16.vlgmr.msra.gmra.mxu3 %v6238_v45  ;;  %v5068_v45 = vld [vmem:[%s7706_s2] sm:$0x3]  ;;  %v4649_v21 = vor.u32 %v5056_v49, %v4646_v44  ;;  %v5052_v58 = vld [vmem:[%s7705_s1 + $0xb94] sm:$0xf]  ;;  %v3059_v44 = vld [vmem:[%s7707_s3 + $0x38] sm:$0xff] }
 0x167   :  { %3033 = vmatpush.bf16.msrb.mxu3 %v4681_v41  ;;  %v499_v18 = vperm.slane %v5068_v45, 1  ;;  %v5018_v45 = vld [vmem:[%s7705_s1 + $0xa84] sm:$0xf] }
 0x168   :  { %2995 = vmatpush.bf16.msrb.mxu0 %v4481_v48  ;;  %v2769_v30 = vpop.f32.mrf.mxu2  ;;  %v2745_v48 = vpop.f32.mrf.mxu0 }
 0x169   :  { %3008 = vmatpush.bf16.msrb.mxu1 %v4545_v51  ;;  %v2744_v14 = vadd.f32 %v2743_v5, %v499_v18  ;;  %v2782_v63 = vpop.f32.mrf.mxu3  ;;  %v4513_v51 = vor.u32 %v5022_v29, %v4510_v60  ;;  %v4433_v5 = vor.u32 %v5002_v26, %v4430_v28  ;;  %v3057_v29 = vld [vmem:[%s7707_s3 + $0x28] sm:$0xff]  ;;  %v3055_v60 = vld [vmem:[%s7707_s3 + $0x18] sm:$0xff] }
 0x16a   :  { %3021 = vmatpush.bf16.msrb.mxu2 %v4609_v52  ;;  %v4577_v52 = vor.u32 %v5038_v37, %v4574_v62  ;;  %v3054_v62 = vld [vmem:[%s7707_s3 + $0x10] sm:$0xff]  ;;  %v3081_v28 = vld [vmem:[%s7707_s3 + $0xe8] sm:$0xff] }
 0x16b   :  { %3034 = vmatpush.bf16.msrb.mxu3 %v4673_v55  ;;  %v2757_v23 = vadd.f32 %v2756_v11, %v2744_v14  ;;  %v2758_v55 = vpop.f32.mrf.mxu1  ;;  %v3065_v14 = vld [vmem:[%s7707_s3 + $0x68] sm:$0xff]  ;;  %v3064_v11 = vld [vmem:[%s7707_s3 + $0x60] sm:$0xff] }
 0x16c   :  { %2996 = vmatpush.bf16.msrb.mxu0 %v4473_v61  ;;  %v4630_v61 = vld [vmem:[%s7705_s1 + $0xb98] sm:$0xf0] }
 0x16d   :  { %3009 = vmatpush.bf16.msrb.mxu1 %v4537_v38  ;;  %v2770_v41 = vadd.f32 %v2769_v30, %v2757_v23  ;;  %v4505_v38 = vor.u32 %v5020_v40, %v4502_v24  ;;  %v3056_v30 = vld [vmem:[%s7707_s3 + $0x20] sm:$0xff] }
 0x16e   :  { %3022 = vmatpush.bf16.msrb.mxu2 %v4601_v22  ;;  %v4569_v22 = vor.u32 %v5036_v57, %v4566_v32 }
 0x16f   :  { %3035 = vmatpush.bf16.msrb.mxu3 %v4665_v1  ;;  %v7544_v50 = vadd.f32 %v2782_v63, %v2770_v41  ;;  %v4633_v1 = vor.u32 %v5052_v58, %v4630_v61  ;;  %v3053_v41 = vld [vmem:[%s7707_s3 + $0x8] sm:$0xff]  ;;  %v3048_v63 = vmul.f32 0.1, %v7343_v54 }
 0x170   :  { %2997 = vmatpush.bf16.msrb.mxu0 %v4465_v4  ;;  %v2771_v18 = vpop.f32.mrf.mxu2  ;;  %v4622_v4 = vld [vmem:[%s7705_s1 + $0xb88] sm:$0xf0] }
 0x171   :  { %3010 = vmatpush.bf16.msrb.mxu1 %v4529_v6  ;;  %v2784_v3 = vpop.f32.mrf.mxu3  ;;  %v4497_v6 = vor.u32 %v5018_v45, %v4494_v31  ;;  %v4625_v35 = vor.u32 %v5050_v33, %v4622_v4  ;;  %v3050_v47 = vsel %vm3046_vm0, %v7343_v54, %v3048_v63  ;;  %v3083_v54 = vld [vmem:[%s7707_s3 + $0xf8] sm:$0xff]  ;;  %v3080_v45 = vld [vmem:[%s7707_s3 + $0xe0] sm:$0xff]  ;;  %v3074_v4 = vld [vmem:[%s7707_s3 + $0xb0] sm:$0xff] }
 0x172   :  { %3023 = vmatpush.bf16.msrb.mxu2 %v4593_v9  ;;  %v4561_v9 = vor.u32 %v5034_v19, %v4558_v59  ;;  %v3079_v18 = vld [vmem:[%s7707_s3 + $0xd8] sm:$0xff]  ;;  %v3078_v19 = vld [vmem:[%s7707_s3 + $0xd0] sm:$0xff]  ;;  %v3077_v59 = vld [vmem:[%s7707_s3 + $0xc8] sm:$0xff] }
 0x173   :  { %3036 = vmatpush.bf16.msrb.mxu3 %v4657_v15  ;;  %v3076_v3 = vld [vmem:[%s7707_s3 + $0xc0] sm:$0xff]  ;;  %v3075_v33 = vld [vmem:[%s7707_s3 + $0xb8] sm:$0xff] }
 0x174   :  { %2998 = vmatpush.bf16.msrb.mxu0 %v4457_v25 }
 0x175   :  { %3011 = vmatpush.bf16.msrb.mxu1 %v4521_v36  ;;  %v3058_v36 = vld [vmem:[%s7707_s3 + $0x30] sm:$0xff] }
 0x176   :  { %3024 = vmatpush.bf16.msrb.mxu2 %v4585_v42 }
 0x177   :  { %3037 = vmatpush.bf16.msrb.mxu3 %v4649_v21 }
 0x178   :  { %2999 = vmatpush.bf16.msrb.mxu0 %v4449_v34 }
 0x179   :  { %3012 = vmatpush.bf16.msrb.mxu1 %v4513_v51 }
 0x17a   :  { %3025 = vmatpush.bf16.msrb.mxu2 %v4577_v52 }
 0x17b   :  { %3038 = vmatpush.bf16.msrb.mxu3 %v4641_v56 }
 0x17c   :  { %3000 = vmatpush.bf16.msrb.mxu0 %v4441_v0 }
 0x17d   :  { %3013 = vmatpush.bf16.msrb.mxu1 %v4505_v38 }
 0x17e   :  { %3026 = vmatpush.bf16.msrb.mxu2 %v4569_v22  ;;  %v3082_v22 = vld [vmem:[%s7707_s3 + $0xf0] sm:$0xff] }
 0x17f   :  { %3039 = vmatpush.bf16.msrb.mxu3 %v4633_v1 }
 0x180   :  { %3001 = vmatpush.bf16.msrb.mxu0 %v4433_v5 }
 0x181   :  { %3014 = vmatpush.bf16.msrb.mxu1 %v4497_v6  ;;  %v3073_v6 = vld [vmem:[%s7707_s3 + $0xa8] sm:$0xff] }
 0x182   :  { %3027 = vmatpush.bf16.msrb.mxu2 %v4561_v9 }
 0x183   :  { %3040 = vmatpush.bf16.msrb.mxu3 %v4625_v35  ;;  %3002 = vmatmul.bf16.vlgmr.msrb.gmra.mxu0 %v6424_v2  ;;  %v3063_v2 = vld [vmem:[%s7707_s3 + $0x58] sm:$0xff]  ;;  %v3072_v35 = vld [vmem:[%s7707_s3 + $0xa0] sm:$0xff] }
 0x184   :  { %3088 = vmatpush.msra.mxu0 %v3067_v10  ;;  %3015 = vmatmul.bf16.vlgmr.msrb.gmra.mxu1 %v6437_v8  ;;  %v2795_v8 = vpop.f32.mrf.mxu0  ;;  %v3071_v10 = vld [vmem:[%s7707_s3 + $0x98] sm:$0xff] }
 0x185   :  { %3028 = vmatmul.bf16.vlgmr.msrb.gmra.mxu2 %v6435_v7  ;;  %v3062_v7 = vld [vmem:[%s7707_s3 + $0x50] sm:$0xff]  ;;  %v2796_v15 = vadd.f32 %v2795_v8, %v7544_v50  ;;  %3108 = vmatpush.msra.mxu1 %v3083_v54 }
 0x186   :  { %3041 = vmatmul.bf16.vlgmr.msrb.gmra.mxu3 %v6445_v12  ;;  %3089 = vmatpush.msra.mxu0 %v3066_v13  ;;  %v2808_v12 = vpop.f32.mrf.mxu1 }
 0x187   :  { %v2809_v17 = vadd.f32 %v2808_v12, %v2796_v15  ;;  %3109 = vmatpush.msra.mxu1 %v3082_v22  ;;  %v3069_v15 = vld [vmem:[%s7707_s3 + $0x88] sm:$0xff] }
 0x188   :  { %3090 = vmatpush.msra.mxu0 %v3065_v14  ;;  %v2821_v49 = vpop.f32.mrf.mxu2 }
 0x189   :  { %v2822_v23 = vadd.f32 %v2821_v49, %v2809_v17  ;;  %v2834_v25 = vpop.f32.mrf.mxu3  ;;  %3110 = vmatpush.msra.mxu1 %v3081_v28 }
 0x18a   :  { %3091 = vmatpush.msra.mxu0 %v3064_v11  ;;  %v3070_v11 = vld [vmem:[%s7707_s3 + $0x90] sm:$0xff] }
 0x18b   :  { %v2835_v42 = vadd.f32 %v2834_v25, %v2822_v23  ;;  %3111 = vmatpush.msra.mxu1 %v3080_v45 }
 0x18c   :  { %3092 = vmatpush.msra.mxu0 %v3063_v2  ;;  %v2797_v43 = vpop.f32.mrf.mxu0 }
 0x18d   :  { %3112 = vmatpush.msra.mxu1 %v3079_v18 }
 0x18e   :  { %3093 = vmatpush.msra.mxu0 %v3062_v7  ;;  %v2810_v27 = vpop.f32.mrf.mxu1 }
 0x18f   :  { %3113 = vmatpush.msra.mxu1 %v3078_v19 }
 0x190   :  { %3094 = vmatpush.msra.mxu0 %v3061_v16  ;;  %v2823_v21 = vpop.f32.mrf.mxu2  ;;  %v3068_v16 = vld [vmem:[%s7707_s3 + $0x80] sm:$0xff] }
 0x191   :  { %v2836_v37 = vpop.f32.mrf.mxu3  ;;  %3114 = vmatpush.msra.mxu1 %v3077_v59 }
 0x192   :  { %3095 = vmatpush.msra.mxu0 %v3060_v20 }
 0x193   :  { %3115 = vmatpush.msra.mxu1 %v3076_v3 }
 0x194   :  { %3096 = vmatpush.msra.mxu0 %v3059_v44 }
 0x195   :  { %3116 = vmatpush.msra.mxu1 %v3075_v33 }
 0x196   :  { %3097 = vmatpush.msra.mxu0 %v3058_v36 }
 0x197   :  { %3117 = vmatpush.msra.mxu1 %v3074_v4 }
 0x198   :  { %3098 = vmatpush.msra.mxu0 %v3057_v29 }
 0x199   :  { %3118 = vmatpush.msra.mxu1 %v3073_v6 }
 0x19a   :  { %3099 = vmatpush.msra.mxu0 %v3056_v30 }
 0x19b   :  { %3119 = vmatpush.msra.mxu1 %v3072_v35 }
 0x19c   :  { %3100 = vmatpush.msra.mxu0 %v3055_v60 }
 0x19d   :  { %3120 = vmatpush.msra.mxu1 %v3071_v10 }
 0x19e   :  { %3101 = vmatpush.msra.mxu0 %v3054_v62 }
 0x19f   :  { %3121 = vmatpush.msra.mxu1 %v3070_v11 }
 0x1a0   :  { %3102 = vmatpush.msra.mxu0 %v3053_v41  ;;  %v2847_v34 = vpop.f32.mrf.mxu0 }
 0x1a1   :  { %v2848_v50 = vadd.f32 %v2847_v34, %v2835_v42  ;;  %v2860_v48 = vpop.f32.mrf.mxu1  ;;  %3122 = vmatpush.msra.mxu1 %v3069_v15 }
 0x1a2   :  { %3103 = vmatpush.msra.mxu0 %v3052_v46 }
 0x1a3   :  { %3104 = vmatmul.f32.vlgmr.msra.gmra.mxu0 %v3050_v47  ;;  %v2861_v51 = vadd.f32 %v2860_v48, %v2848_v50  ;;  %3123 = vmatpush.msra.mxu1 %v3068_v16  ;;  %v5067_v48 = vld [vmem:[%s7708_s4] ss:$0 sm:$0xff] }
 0x1a8   :  { %v2873_v52 = vpop.f32.mrf.mxu2  ;;  %v2849_v40 = vpop.f32.mrf.mxu0 }
 0x1a9   :  { %v2874_v53 = vadd.f32 %v2873_v52, %v2861_v51  ;;  %v2886_v39 = vpop.f32.mrf.mxu3  ;;  %v2862_v55 = vpop.f32.mrf.mxu1 }
 0x1ab   :  { %v2887_v56 = vadd.f32 %v2886_v39, %v2874_v53 }
 0x1b0   :  { %v2875_v24 = vpop.f32.mrf.mxu2 }
 0x1b1   :  { %v2888_v57 = vpop.f32.mrf.mxu3 }
 0x1c0   :  { %v2899_v32 = vpop.f32.mrf.mxu0 }
 0x1c1   :  { %v2912_v58 = vpop.f32.mrf.mxu1  ;;  %v2900_v13 = vadd.f32 %v2899_v32, %v2887_v56 }
 0x1c3   :  { %v2913_v12 = vadd.f32 %v2912_v58, %v2900_v13 }
 0x1c8   :  { %v2925_v61 = vpop.f32.mrf.mxu2  ;;  %v2901_v38 = vpop.f32.mrf.mxu0 }
 0x1c9   :  { %v2938_v0 = vpop.f32.mrf.mxu3  ;;  %v2914_v26 = vpop.f32.mrf.mxu1  ;;  %v2926_v17 = vadd.f32 %v2925_v61, %v2913_v12 }
 0x1cb   :  { %v2939_v44 = vadd.f32 %v2938_v0, %v2926_v17 }
 0x1d0   :  { %v2927_v1 = vpop.f32.mrf.mxu2 }
 0x1d1   :  { %v2940_v31 = vpop.f32.mrf.mxu3 }
 0x1e0   :  { %v2951_v5 = vpop.f32.mrf.mxu0 }
 0x1e1   :  { %v2964_v9 = vpop.f32.mrf.mxu1  ;;  %v2952_v23 = vadd.f32 %v2951_v5, %v2939_v44 }
 0x1e3   :  { %v2965_v25 = vadd.f32 %v2964_v9, %v2952_v23 }
 0x1e8   :  { %v2977_v14 = vpop.f32.mrf.mxu2  ;;  %v2953_v7 = vpop.f32.mrf.mxu0 }
 0x1e9   :  { %v2990_v2 = vpop.f32.mrf.mxu3  ;;  %v2966_v8 = vpop.f32.mrf.mxu1  ;;  %v2978_v36 = vadd.f32 %v2977_v14, %v2965_v25 }
 0x1eb   :  { %v2991_v42 = vadd.f32 %v2990_v2, %v2978_v36 }
 0x1f0   :  { %v2979_v20 = vpop.f32.mrf.mxu2 }
 0x1f1   :  { %v2992_v49 = vpop.f32.mrf.mxu3 }
 0x200   :  { %v3003_v43 = vpop.f32.mrf.mxu0 }
 0x201   :  { %v3016_v27 = vpop.f32.mrf.mxu1  ;;  %v3004_v29 = vadd.f32 %v3003_v43, %v2991_v42 }
 0x203   :  { %v3017_v30 = vadd.f32 %v3016_v27, %v3004_v29 }
 0x208   :  { %v3029_v21 = vpop.f32.mrf.mxu2  ;;  %v3005_v62 = vpop.f32.mrf.mxu0 }
 0x209   :  { %v3030_v60 = vadd.f32 %v3029_v21, %v3017_v30  ;;  %v3042_v37 = vpop.f32.mrf.mxu3  ;;  %v3018_v41 = vpop.f32.mrf.mxu1 }
 0x20b   :  { %v3043_v63 = vadd.f32 %v3042_v37, %v3030_v60 }
 0x20d   :  { %vm3047_vm1 = vcmp.gt.f32.partialorder %v3043_v63, 0.0  ;;  %v3049_v46 = vmul.f32 0.1, %v3043_v63 }
 0x20f   :  { %v3051_v47 = vsel %vm3047_vm1, %v3043_v63, %v3049_v46 }
 0x210   :  { %v3031_v34 = vpop.f32.mrf.mxu2  ;;  %3124 = vmatmul.f32.vlgmr.msra.gmra.mxu1 %v3051_v47 }
 0x211   :  { %v3044_v50 = vpop.f32.mrf.mxu3 }
 0x220   :  { %v3105_v51 = vpop.f32.mrf.mxu0 }
 0x221   :  { %v3106_v52 = vadd.f32 %v5067_v48, %v3105_v51 }
 0x28d   :  { %v3125_v53 = vpop.f32.mrf.mxu1 }
 0x28e   :  { %v3126_v39 = vadd.f32 %v3125_v53, %v3106_v52 }
 0x290   :  { %3129 = vst.msk [vmem:[#allocation2] sm:$0x3] %vm3128_vm2, %v3126_v39 }
 0x291   :  { %3140 = dma.vmem_to_hbm [thread:$0]  %s3136_s8, 32, %s3138_s11, [#allocation3]  }
 0x292   :  { %5093 = dma.done.wait [#allocation3], 32  }
 0x293   :  { %5094 = vsyncadd [#allocation3], 4294967264 }
 0x294   :  { %3145 = vsyncpa [#allocation3], 1 }

</bundles_post_ra>
